<compile_context>
chip_gen: v7x
topology: tpu7x:2x2x1
jax: 0.10.0
libtpu: 0.0.40
codegen_flags: <defaults>
</compile_context>

<pallas_src>
import functools

import jax
import jax.numpy as jnp
from jax import lax
from jax.experimental import pallas as pl
from jax.experimental.pallas import tpu as pltpu


def _residual_block_kernel(x_ref, w1_ref, b1_ref, w2_ref, b2_ref, o_ref,
                           xpad_ref, hpad_ref, *,
                           H, W, Cin, Cmid, Cout, row_tile, compute_dtype):
    """Fused residual block, one batch element per grid step.

    x_ref    : (1, H, W, Cin)     f32 NHWC input (also the residual)
    w1_ref   : (3, 3*Cin, Cmid)   conv1 weights, BN1 scale folded, im2col packed
    b1_ref   : (1, Cmid)          folded BN1 bias (f32)
    w2_ref   : (3, 3*Cmid, Cout)  conv2 weights, BN2 scale folded, im2col packed
    b2_ref   : (1, Cout)          folded BN2 bias (f32)
    o_ref    : (1, H, W, Cout)    output
    xpad_ref : (H+2, W+2, Cin)    VMEM scratch: zero halo + input interior
    hpad_ref : (H+2, W+2, Cmid)   VMEM scratch: zero halo + relu(bn1(conv1))
    """
    Hp, Wp = H + 2, W + 2
    cdt = compute_dtype
    T = row_tile
    n_strips = H // T
    unroll = n_strips <= 8

    # Zero only the 1-pixel halo of both padded scratch buffers (the interior
    # is fully overwritten every step).  Re-done each step so the batch grid
    # axis can be sharded across TensorCores safely.
    for buf, C in ((xpad_ref, Cin), (hpad_ref, Cmid)):
        buf[0:1, :, :] = jnp.zeros((1, Wp, C), cdt)
        buf[Hp - 1:Hp, :, :] = jnp.zeros((1, Wp, C), cdt)
        buf[:, 0:1, :] = jnp.zeros((Hp, 1, C), cdt)
        buf[:, Wp - 1:Wp, :] = jnp.zeros((Hp, 1, C), cdt)

    # Stage the input into the padded scratch, cast to the MXU compute dtype.
    xpad_ref[1:H + 1, 1:W + 1, :] = x_ref[0].astype(cdt)

    # Bias broadcasts hoisted out of the strip loops (JAX does not CSE
    # broadcast_in_dim); they directly seed the conv accumulators.
    bias1 = jnp.broadcast_to(b1_ref[...].astype(jnp.float32), (T * W, Cmid))
    bias2 = jnp.broadcast_to(b2_ref[...].astype(jnp.float32), (T * W, Cout))

    def conv3x3(src_ref, w_ref, bias_rows, c_in, s):
        """Rows [s, s+T) of a 3x3 / pad-1 conv over the padded buffer src_ref.

        Per ky: one row-block load, an im2col patch of width 3*c_in, and a
        single MXU matmul (3 matmuls total, K = 3*c_in, M = T*W).
        """
        acc = bias_rows                                       # (T*W, c_out) f32
        for ky in range(3):
            row = src_ref[pl.ds(s + ky, T), :, :]             # (T, W+2, c_in)
            patch = jnp.concatenate(                          # (T, W, 3*c_in)
                [row[:, 0:W, :], row[:, 1:W + 1, :], row[:, 2:W + 2, :]],
                axis=-1)
            acc = acc + jnp.dot(patch.reshape(T * W, 3 * c_in), w_ref[ky],
                                preferred_element_type=jnp.float32)
        return acc                                            # (T*W, c_out) f32

    # Pass 1: conv1 + bn1 + relu -> hpad interior.  All strips first, since
    # conv2 needs halo rows belonging to neighbouring strips.
    def strip1(i, carry):
        s = pl.multiple_of(i * T, T)
        h = jnp.maximum(conv3x3(xpad_ref, w1_ref, bias1, Cin, s), 0.0)
        hpad_ref[pl.ds(s + 1, T), 1:W + 1, :] = (
            h.astype(cdt).reshape(T, W, Cmid))
        return carry

    lax.fori_loop(0, n_strips, strip1, 0, unroll=unroll)

    # Pass 2: conv2 + bn2 + residual add (f32) + relu -> output.
    def strip2(i, carry):
        s = pl.multiple_of(i * T, T)
        a = conv3x3(hpad_ref, w2_ref, bias2, Cmid, s)
        res = x_ref[0, pl.ds(s, T), :, :].reshape(T * W, Cout)   # f32 residual
        y = jnp.maximum(a + res, 0.0)
        o_ref[0, pl.ds(s, T), :, :] = y.reshape(T, W, Cout).astype(o_ref.dtype)
        return carry

    lax.fori_loop(0, n_strips, strip2, 0, unroll=unroll)


def _pick_row_tile(h, target=8):
    """Largest divisor of h that is <= target (keeps the f32 acc vreg-sized)."""
    for t in range(min(target, h), 0, -1):
        if h % t == 0:
            return t
    return h


def _fold_bn(gamma, beta, mean, var, eps=1e-5):
    scale = gamma / jnp.sqrt(var + eps)
    bias = beta - mean * scale
    return scale.astype(jnp.float32), bias.astype(jnp.float32)


def _prep_conv_weights(w_hwio, bn_scale, compute_dtype):
    """Fold BN scale into conv weights and pack to im2col layout.

    (3, 3, Cin, Cout) -> (3, 3*Cin, Cout); row index = kx*Cin + cin, matching
    the per-ky concatenate([kx=0, kx=1, kx=2], axis=-1) patch in the kernel.
    """
    kh, kw, cin, cout = w_hwio.shape
    w = w_hwio * bn_scale[None, None, None, :]
    return w.reshape(kh, kw * cin, cout).astype(compute_dtype)


def residual_block(x_nchw, params, *, compute_dtype=jnp.bfloat16):
    """Forward pass of ResidualBlock (stride=1, downsample=None) - one fused kernel."""
    x = jnp.transpose(x_nchw, (0, 2, 3, 1))                  # NCHW -> NHWC
    N, H, W, Cin = x.shape

    s1, b1 = _fold_bn(*params["bn1"])
    s2, b2 = _fold_bn(*params["bn2"])
    w1 = _prep_conv_weights(params["w1"], s1, compute_dtype)  # (3, 3*Cin, Cmid)
    w2 = _prep_conv_weights(params["w2"], s2, compute_dtype)  # (3, 3*Cmid, Cout)
    Cmid, Cout = w1.shape[-1], w2.shape[-1]
    assert Cin == Cout, "stride=1 / no downsample => in_channels == out_channels"

    row_tile = _pick_row_tile(H)

    kernel = functools.partial(
        _residual_block_kernel, H=H, W=W, Cin=Cin, Cmid=Cmid, Cout=Cout,
        row_tile=row_tile, compute_dtype=compute_dtype)

    y = pl.pallas_call(
        kernel,
        out_shape=jax.ShapeDtypeStruct((N, H, W, Cout), x.dtype),
        grid=(N,),
        in_specs=[
            pl.BlockSpec((1, H, W, Cin), lambda n: (n, 0, 0, 0)),      # x (f32)
            pl.BlockSpec((3, 3 * Cin, Cmid), lambda n: (0, 0, 0)),     # w1
            pl.BlockSpec((1, Cmid), lambda n: (0, 0)),                 # b1 (f32)
            pl.BlockSpec((3, 3 * Cmid, Cout), lambda n: (0, 0, 0)),    # w2
            pl.BlockSpec((1, Cout), lambda n: (0, 0)),                 # b2 (f32)
        ],
        out_specs=pl.BlockSpec((1, H, W, Cout), lambda n: (n, 0, 0, 0)),
        scratch_shapes=[
            pltpu.VMEM((H + 2, W + 2, Cin), compute_dtype),   # padded input
            pltpu.VMEM((H + 2, W + 2, Cmid), compute_dtype),  # padded relu(bn1(conv1))
        ],
        compiler_params=pltpu.CompilerParams(
            dimension_semantics=("parallel",)),
    )(x, w1, b1.reshape(1, Cmid), w2, b2.reshape(1, Cout))

    return jnp.transpose(y, (0, 3, 1, 2))                    # NHWC -> NCHW


def _reference(x_nchw, params):
    """Pure-JAX (f32) reference for verification."""
    x = jnp.transpose(x_nchw, (0, 2, 3, 1))

    def conv(z, w):
        return jax.lax.conv_general_dilated(
            z, w, window_strides=(1, 1), padding="SAME",
            dimension_numbers=("NHWC", "HWIO", "NHWC"))

    def bn(z, p):
        g, b, m, v = p
        return g * (z - m) / jnp.sqrt(v + 1e-5) + b

    h = jax.nn.relu(bn(conv(x, params["w1"]), params["bn1"]))
    y = jax.nn.relu(bn(conv(h, params["w2"]), params["bn2"]) + x)
    return jnp.transpose(y, (0, 3, 1, 2))


def _init_params(key, c_in, c_out):
    k = jax.random.split(key, 10)
    fan_in = c_in * 9
    # Conv weights in PyTorch OIHW layout, converted to HWIO for the kernel.
    w1_oihw = jax.random.normal(k[0], (c_out, c_in, 3, 3), jnp.float32) / jnp.sqrt(fan_in)
    w2_oihw = jax.random.normal(k[1], (c_out, c_out, 3, 3), jnp.float32) / jnp.sqrt(c_out * 9)
    w1 = jnp.transpose(w1_oihw, (2, 3, 1, 0))
    w2 = jnp.transpose(w2_oihw, (2, 3, 1, 0))
    bn1 = (jax.random.uniform(k[2], (c_out,), jnp.float32, 0.5, 1.5),   # gamma
           jax.random.normal(k[3], (c_out,), jnp.float32) * 0.1,        # beta
           jax.random.normal(k[4], (c_out,), jnp.float32) * 0.1,        # running_mean
           jax.random.uniform(k[5], (c_out,), jnp.float32, 0.5, 1.5))   # running_var
    bn2 = (jax.random.uniform(k[6], (c_out,), jnp.float32, 0.5, 1.5),
           jax.random.normal(k[7], (c_out,), jnp.float32) * 0.1,
           jax.random.normal(k[8], (c_out,), jnp.float32) * 0.1,
           jax.random.uniform(k[9], (c_out,), jnp.float32, 0.5, 1.5))
    return {"w1": w1, "w2": w2, "bn1": bn1, "bn2": bn2}


if __name__ == "__main__":
    key = jax.random.PRNGKey(0)
    k_x, k_p = jax.random.split(key)

    N, C, H, W = 2, 4, 16, 16           # NCHW, in_channels == out_channels
    x = jax.random.normal(k_x, (N, C, H, W), jnp.float32)
    params = _init_params(k_p, C, C)

    ref = jax.block_until_ready(_reference(x, params))

    # f32 compute path: tight algorithmic check against the pure-JAX reference.
    out_f32 = jax.block_until_ready(
        residual_block(x, params, compute_dtype=jnp.float32))
    assert out_f32.shape == (N, C, H, W)
    assert jnp.allclose(out_f32, ref, rtol=1e-3, atol=1e-3), "f32 mismatch vs reference"

    # bf16 MXU path (the performance configuration): f32 accumulation keeps the
    # error small; tolerance loosened only for the bf16 operand rounding.
    out_bf16 = jax.block_until_ready(residual_block(x, params))
    assert out_bf16.shape == (N, C, H, W)
    assert jnp.allclose(out_bf16, ref, rtol=5e-2, atol=5e-2), "bf16 mismatch vs reference"

    print("KERNEL_OK")
</pallas_src>

<mosaic_0001>
module attributes {stable_mosaic.version = 11 : i64} {
  func.func @_residual_block_kernel(%arg0: i32, %arg1: memref<1x16x16x4xf32, #tpu.memory_space<vmem>>, %arg2: memref<3x12x4xf32, #tpu.memory_space<vmem>>, %arg3: memref<1x4xf32, #tpu.memory_space<vmem>>, %arg4: memref<3x12x4xf32, #tpu.memory_space<vmem>>, %arg5: memref<1x4xf32, #tpu.memory_space<vmem>>, %arg6: memref<1x16x16x4xf32, #tpu.memory_space<vmem>>, %arg7: memref<18x18x4xf32, #tpu.memory_space<vmem>>, %arg8: memref<18x18x4xf32, #tpu.memory_space<vmem>>) attributes {dimension_semantics = [#tpu.dimension_semantics<parallel>], iteration_bounds = array<i64: 2>, scalar_prefetch = 0 : i64, scratch_operands = 2 : i64, tpu.core_type = #tpu.core_type<tc>, window_params = [{transform_indices = @transform_0, window_bounds = array<i64: 1, 16, 16, 4>}, {pipeline_mode = #tpu.pipeline_mode<synchronous>, transform_indices = @transform_1, window_bounds = array<i64: 3, 12, 4>}, {pipeline_mode = #tpu.pipeline_mode<synchronous>, transform_indices = @transform_2, window_bounds = array<i64: 1, 4>}, {pipeline_mode = #tpu.pipeline_mode<synchronous>, transform_indices = @transform_3, window_bounds = array<i64: 3, 12, 4>}, {pipeline_mode = #tpu.pipeline_mode<synchronous>, transform_indices = @transform_4, window_bounds = array<i64: 1, 4>}, {transform_indices = @transform_5, window_bounds = array<i64: 1, 16, 16, 4>}]} {
    %cst = arith.constant 0.000000e+00 : f32
    %0 = vector.broadcast %cst : f32 to vector<1x18x4xf32>
    %c0 = arith.constant 0 : index
    %c0_0 = arith.constant 0 : index
    %c0_1 = arith.constant 0 : index
    %1 = vector.load %arg7[%c0, %c0_0, %c0_1] : memref<18x18x4xf32, #tpu.memory_space<vmem>>, vector<1x18x4xf32>
    tpu.vector_store %arg7[%c0, %c0_0, %c0_1], %0 {strides = array<i32>} : memref<18x18x4xf32, #tpu.memory_space<vmem>>, vector<1x18x4xf32>,
    %cst_2 = arith.constant 0.000000e+00 : f32
    %2 = vector.broadcast %cst_2 : f32 to vector<1x18x4xf32>
    %c17 = arith.constant 17 : index
    %c0_3 = arith.constant 0 : index
    %c0_4 = arith.constant 0 : index
    %3 = vector.load %arg7[%c17, %c0_3, %c0_4] : memref<18x18x4xf32, #tpu.memory_space<vmem>>, vector<1x18x4xf32>
    tpu.vector_store %arg7[%c17, %c0_3, %c0_4], %2 {strides = array<i32>} : memref<18x18x4xf32, #tpu.memory_space<vmem>>, vector<1x18x4xf32>,
    %cst_5 = arith.constant 0.000000e+00 : f32
    %4 = vector.broadcast %cst_5 : f32 to vector<18x1x4xf32>
    %c0_6 = arith.constant 0 : index
    %c0_7 = arith.constant 0 : index
    %c0_8 = arith.constant 0 : index
    %5 = vector.load %arg7[%c0_6, %c0_7, %c0_8] : memref<18x18x4xf32, #tpu.memory_space<vmem>>, vector<18x1x4xf32>
    tpu.vector_store %arg7[%c0_6, %c0_7, %c0_8], %4 {strides = array<i32>} : memref<18x18x4xf32, #tpu.memory_space<vmem>>, vector<18x1x4xf32>,
    %cst_9 = arith.constant 0.000000e+00 : f32
    %6 = vector.broadcast %cst_9 : f32 to vector<18x1x4xf32>
    %c0_10 = arith.constant 0 : index
    %c17_11 = arith.constant 17 : index
    %c0_12 = arith.constant 0 : index
    %7 = vector.load %arg7[%c0_10, %c17_11, %c0_12] : memref<18x18x4xf32, #tpu.memory_space<vmem>>, vector<18x1x4xf32>
    tpu.vector_store %arg7[%c0_10, %c17_11, %c0_12], %6 {strides = array<i32>} : memref<18x18x4xf32, #tpu.memory_space<vmem>>, vector<18x1x4xf32>,
    %cst_13 = arith.constant 0.000000e+00 : f32
    %8 = vector.broadcast %cst_13 : f32 to vector<1x18x4xf32>
    %c0_14 = arith.constant 0 : index
    %c0_15 = arith.constant 0 : index
    %c0_16 = arith.constant 0 : index
    %9 = vector.load %arg8[%c0_14, %c0_15, %c0_16] : memref<18x18x4xf32, #tpu.memory_space<vmem>>, vector<1x18x4xf32>
    tpu.vector_store %arg8[%c0_14, %c0_15, %c0_16], %8 {strides = array<i32>} : memref<18x18x4xf32, #tpu.memory_space<vmem>>, vector<1x18x4xf32>,
    %cst_17 = arith.constant 0.000000e+00 : f32
    %10 = vector.broadcast %cst_17 : f32 to vector<1x18x4xf32>
    %c17_18 = arith.constant 17 : index
    %c0_19 = arith.constant 0 : index
    %c0_20 = arith.constant 0 : index
    %11 = vector.load %arg8[%c17_18, %c0_19, %c0_20] : memref<18x18x4xf32, #tpu.memory_space<vmem>>, vector<1x18x4xf32>
    tpu.vector_store %arg8[%c17_18, %c0_19, %c0_20], %10 {strides = array<i32>} : memref<18x18x4xf32, #tpu.memory_space<vmem>>, vector<1x18x4xf32>,
    %cst_21 = arith.constant 0.000000e+00 : f32
    %12 = vector.broadcast %cst_21 : f32 to vector<18x1x4xf32>
    %c0_22 = arith.constant 0 : index
    %c0_23 = arith.constant 0 : index
    %c0_24 = arith.constant 0 : index
    %13 = vector.load %arg8[%c0_22, %c0_23, %c0_24] : memref<18x18x4xf32, #tpu.memory_space<vmem>>, vector<18x1x4xf32>
    tpu.vector_store %arg8[%c0_22, %c0_23, %c0_24], %12 {strides = array<i32>} : memref<18x18x4xf32, #tpu.memory_space<vmem>>, vector<18x1x4xf32>,
    %cst_25 = arith.constant 0.000000e+00 : f32
    %14 = vector.broadcast %cst_25 : f32 to vector<18x1x4xf32>
    %c0_26 = arith.constant 0 : index
    %c17_27 = arith.constant 17 : index
    %c0_28 = arith.constant 0 : index
    %15 = vector.load %arg8[%c0_26, %c17_27, %c0_28] : memref<18x18x4xf32, #tpu.memory_space<vmem>>, vector<18x1x4xf32>
    tpu.vector_store %arg8[%c0_26, %c17_27, %c0_28], %14 {strides = array<i32>} : memref<18x18x4xf32, #tpu.memory_space<vmem>>, vector<18x1x4xf32>,
    %c0_29 = arith.constant 0 : index
    %c0_30 = arith.constant 0 : index
    %c0_31 = arith.constant 0 : index
    %c0_32 = arith.constant 0 : index
    %16 = vector.load %arg1[%c0_29, %c0_30, %c0_31, %c0_32] : memref<1x16x16x4xf32, #tpu.memory_space<vmem>>, vector<1x16x16x4xf32>
    %17 = vector.shape_cast %16 : vector<1x16x16x4xf32> to vector<16x16x4xf32>
    %c1 = arith.constant 1 : index
    %c1_33 = arith.constant 1 : index
    %c0_34 = arith.constant 0 : index
    %18 = vector.load %arg7[%c1, %c1_33, %c0_34] : memref<18x18x4xf32, #tpu.memory_space<vmem>>, vector<16x16x4xf32>
    tpu.vector_store %arg7[%c1, %c1_33, %c0_34], %17 {strides = array<i32>} : memref<18x18x4xf32, #tpu.memory_space<vmem>>, vector<16x16x4xf32>,
    %c0_35 = arith.constant 0 : index
    %c0_36 = arith.constant 0 : index
    %19 = vector.load %arg3[%c0_35, %c0_36] : memref<1x4xf32, #tpu.memory_space<vmem>>, vector<1x4xf32>
    %20 = vector.shape_cast %19 : vector<1x4xf32> to vector<1x4xf32>
    %21 = vector.broadcast %20 : vector<1x4xf32> to vector<128x4xf32>
    %c0_37 = arith.constant 0 : index
    %c0_38 = arith.constant 0 : index
    %22 = vector.load %arg5[%c0_37, %c0_38] : memref<1x4xf32, #tpu.memory_space<vmem>>, vector<1x4xf32>
    %23 = vector.shape_cast %22 : vector<1x4xf32> to vector<1x4xf32>
    %24 = vector.broadcast %23 : vector<1x4xf32> to vector<128x4xf32>
    %c0_i32 = arith.constant 0 : i32
    %c8_i32 = arith.constant 8 : i32
    %25 = arith.muli %c0_i32, %c8_i32 : i32
    %26 = tpu.assume_multiple %25, 8 : i32
    %c0_i32_39 = arith.constant 0 : i32
    %27 = arith.addi %26, %c0_i32_39 : i32
    %28 = arith.index_cast %27 : i32 to index
    %c0_40 = arith.constant 0 : index
    %c0_41 = arith.constant 0 : index
    %29 = vector.load %arg7[%28, %c0_40, %c0_41] : memref<18x18x4xf32, #tpu.memory_space<vmem>>, vector<8x18x4xf32>
    %30 = vector.extract_strided_slice %29 {offsets = [0, 0, 0], sizes = [8, 16, 4], strides = [1, 1, 1]} : vector<8x18x4xf32> to vector<8x16x4xf32>
    %31 = vector.extract_strided_slice %29 {offsets = [0, 1, 0], sizes = [8, 16, 4], strides = [1, 1, 1]} : vector<8x18x4xf32> to vector<8x16x4xf32>
    %32 = vector.extract_strided_slice %29 {offsets = [0, 2, 0], sizes = [8, 16, 4], strides = [1, 1, 1]} : vector<8x18x4xf32> to vector<8x16x4xf32>
    %33 = tpu.concatenate %30, %31, %32 in 2 : vector<8x16x4xf32>, vector<8x16x4xf32>, vector<8x16x4xf32> -> vector<8x16x12xf32>
    %34 = vector.shape_cast %33 : vector<8x16x12xf32> to vector<128x12xf32>
    %c0_42 = arith.constant 0 : index
    %c0_43 = arith.constant 0 : index
    %c0_44 = arith.constant 0 : index
    %35 = vector.load %arg2[%c0_42, %c0_43, %c0_44] : memref<3x12x4xf32, #tpu.memory_space<vmem>>, vector<1x12x4xf32>
    %36 = vector.shape_cast %35 : vector<1x12x4xf32> to vector<12x4xf32>
    %cst_45 = arith.constant dense<0.000000e+00> : vector<128x4xf32>
    %37 = tpu.matmul %34, %36, %cst_45 {dimension_numbers = #tpu.dot_dimension_numbers<[1], [0], [0], [1], [0, 0, 1, 1], [], []>} : vector<128x12xf32>, vector<12x4xf32>, vector<128x4xf32> -> vector<128x4xf32>
    %38 = arith.addf %21, %37 : vector<128x4xf32>
    %c1_i32 = arith.constant 1 : i32
    %39 = arith.addi %26, %c1_i32 : i32
    %40 = arith.index_cast %39 : i32 to index
    %c0_46 = arith.constant 0 : index
    %c0_47 = arith.constant 0 : index
    %41 = vector.load %arg7[%40, %c0_46, %c0_47] : memref<18x18x4xf32, #tpu.memory_space<vmem>>, vector<8x18x4xf32>
    %42 = vector.extract_strided_slice %41 {offsets = [0, 0, 0], sizes = [8, 16, 4], strides = [1, 1, 1]} : vector<8x18x4xf32> to vector<8x16x4xf32>
    %43 = vector.extract_strided_slice %41 {offsets = [0, 1, 0], sizes = [8, 16, 4], strides = [1, 1, 1]} : vector<8x18x4xf32> to vector<8x16x4xf32>
    %44 = vector.extract_strided_slice %41 {offsets = [0, 2, 0], sizes = [8, 16, 4], strides = [1, 1, 1]} : vector<8x18x4xf32> to vector<8x16x4xf32>
    %45 = tpu.concatenate %42, %43, %44 in 2 : vector<8x16x4xf32>, vector<8x16x4xf32>, vector<8x16x4xf32> -> vector<8x16x12xf32>
    %46 = vector.shape_cast %45 : vector<8x16x12xf32> to vector<128x12xf32>
    %c1_48 = arith.constant 1 : index
    %c0_49 = arith.constant 0 : index
    %c0_50 = arith.constant 0 : index
    %47 = vector.load %arg2[%c1_48, %c0_49, %c0_50] : memref<3x12x4xf32, #tpu.memory_space<vmem>>, vector<1x12x4xf32>
    %48 = vector.shape_cast %47 : vector<1x12x4xf32> to vector<12x4xf32>
    %cst_51 = arith.constant dense<0.000000e+00> : vector<128x4xf32>
    %49 = tpu.matmul %46, %48, %cst_51 {dimension_numbers = #tpu.dot_dimension_numbers<[1], [0], [0], [1], [0, 0, 1, 1], [], []>} : vector<128x12xf32>, vector<12x4xf32>, vector<128x4xf32> -> vector<128x4xf32>
    %50 = arith.addf %38, %49 : vector<128x4xf32>
    %c2_i32 = arith.constant 2 : i32
    %51 = arith.addi %26, %c2_i32 : i32
    %52 = arith.index_cast %51 : i32 to index
    %c0_52 = arith.constant 0 : index
    %c0_53 = arith.constant 0 : index
    %53 = vector.load %arg7[%52, %c0_52, %c0_53] : memref<18x18x4xf32, #tpu.memory_space<vmem>>, vector<8x18x4xf32>
    %54 = vector.extract_strided_slice %53 {offsets = [0, 0, 0], sizes = [8, 16, 4], strides = [1, 1, 1]} : vector<8x18x4xf32> to vector<8x16x4xf32>
    %55 = vector.extract_strided_slice %53 {offsets = [0, 1, 0], sizes = [8, 16, 4], strides = [1, 1, 1]} : vector<8x18x4xf32> to vector<8x16x4xf32>
    %56 = vector.extract_strided_slice %53 {offsets = [0, 2, 0], sizes = [8, 16, 4], strides = [1, 1, 1]} : vector<8x18x4xf32> to vector<8x16x4xf32>
    %57 = tpu.concatenate %54, %55, %56 in 2 : vector<8x16x4xf32>, vector<8x16x4xf32>, vector<8x16x4xf32> -> vector<8x16x12xf32>
    %58 = vector.shape_cast %57 : vector<8x16x12xf32> to vector<128x12xf32>
    %c2 = arith.constant 2 : index
    %c0_54 = arith.constant 0 : index
    %c0_55 = arith.constant 0 : index
    %59 = vector.load %arg2[%c2, %c0_54, %c0_55] : memref<3x12x4xf32, #tpu.memory_space<vmem>>, vector<1x12x4xf32>
    %60 = vector.shape_cast %59 : vector<1x12x4xf32> to vector<12x4xf32>
    %cst_56 = arith.constant dense<0.000000e+00> : vector<128x4xf32>
    %61 = tpu.matmul %58, %60, %cst_56 {dimension_numbers = #tpu.dot_dimension_numbers<[1], [0], [0], [1], [0, 0, 1, 1], [], []>} : vector<128x12xf32>, vector<12x4xf32>, vector<128x4xf32> -> vector<128x4xf32>
    %62 = arith.addf %50, %61 : vector<128x4xf32>
    %cst_57 = arith.constant 0.000000e+00 : f32
    %63 = vector.broadcast %cst_57 : f32 to vector<128x4xf32>
    %64 = arith.maximumf %62, %63 : vector<128x4xf32>
    %65 = vector.shape_cast %64 : vector<128x4xf32> to vector<8x16x4xf32>
    %c1_i32_58 = arith.constant 1 : i32
    %66 = arith.addi %26, %c1_i32_58 : i32
    %67 = arith.index_cast %66 : i32 to index
    %c1_59 = arith.constant 1 : index
    %c0_60 = arith.constant 0 : index
    %68 = vector.load %arg8[%67, %c1_59, %c0_60] : memref<18x18x4xf32, #tpu.memory_space<vmem>>, vector<8x16x4xf32>
    tpu.vector_store %arg8[%67, %c1_59, %c0_60], %65 {strides = array<i32>} : memref<18x18x4xf32, #tpu.memory_space<vmem>>, vector<8x16x4xf32>,
    %c1_i32_61 = arith.constant 1 : i32
    %c8_i32_62 = arith.constant 8 : i32
    %69 = arith.muli %c1_i32_61, %c8_i32_62 : i32
    %70 = tpu.assume_multiple %69, 8 : i32
    %c0_i32_63 = arith.constant 0 : i32
    %71 = arith.addi %70, %c0_i32_63 : i32
    %72 = arith.index_cast %71 : i32 to index
    %c0_64 = arith.constant 0 : index
    %c0_65 = arith.constant 0 : index
    %73 = vector.load %arg7[%72, %c0_64, %c0_65] : memref<18x18x4xf32, #tpu.memory_space<vmem>>, vector<8x18x4xf32>
    %74 = vector.extract_strided_slice %73 {offsets = [0, 0, 0], sizes = [8, 16, 4], strides = [1, 1, 1]} : vector<8x18x4xf32> to vector<8x16x4xf32>
    %75 = vector.extract_strided_slice %73 {offsets = [0, 1, 0], sizes = [8, 16, 4], strides = [1, 1, 1]} : vector<8x18x4xf32> to vector<8x16x4xf32>
    %76 = vector.extract_strided_slice %73 {offsets = [0, 2, 0], sizes = [8, 16, 4], strides = [1, 1, 1]} : vector<8x18x4xf32> to vector<8x16x4xf32>
    %77 = tpu.concatenate %74, %75, %76 in 2 : vector<8x16x4xf32>, vector<8x16x4xf32>, vector<8x16x4xf32> -> vector<8x16x12xf32>
    %78 = vector.shape_cast %77 : vector<8x16x12xf32> to vector<128x12xf32>
    %c0_66 = arith.constant 0 : index
    %c0_67 = arith.constant 0 : index
    %c0_68 = arith.constant 0 : index
    %79 = vector.load %arg2[%c0_66, %c0_67, %c0_68] : memref<3x12x4xf32, #tpu.memory_space<vmem>>, vector<1x12x4xf32>
    %80 = vector.shape_cast %79 : vector<1x12x4xf32> to vector<12x4xf32>
    %cst_69 = arith.constant dense<0.000000e+00> : vector<128x4xf32>
    %81 = tpu.matmul %78, %80, %cst_69 {dimension_numbers = #tpu.dot_dimension_numbers<[1], [0], [0], [1], [0, 0, 1, 1], [], []>} : vector<128x12xf32>, vector<12x4xf32>, vector<128x4xf32> -> vector<128x4xf32>
    %82 = arith.addf %21, %81 : vector<128x4xf32>
    %c1_i32_70 = arith.constant 1 : i32
    %83 = arith.addi %70, %c1_i32_70 : i32
    %84 = arith.index_cast %83 : i32 to index
    %c0_71 = arith.constant 0 : index
    %c0_72 = arith.constant 0 : index
    %85 = vector.load %arg7[%84, %c0_71, %c0_72] : memref<18x18x4xf32, #tpu.memory_space<vmem>>, vector<8x18x4xf32>
    %86 = vector.extract_strided_slice %85 {offsets = [0, 0, 0], sizes = [8, 16, 4], strides = [1, 1, 1]} : vector<8x18x4xf32> to vector<8x16x4xf32>
    %87 = vector.extract_strided_slice %85 {offsets = [0, 1, 0], sizes = [8, 16, 4], strides = [1, 1, 1]} : vector<8x18x4xf32> to vector<8x16x4xf32>
    %88 = vector.extract_strided_slice %85 {offsets = [0, 2, 0], sizes = [8, 16, 4], strides = [1, 1, 1]} : vector<8x18x4xf32> to vector<8x16x4xf32>
    %89 = tpu.concatenate %86, %87, %88 in 2 : vector<8x16x4xf32>, vector<8x16x4xf32>, vector<8x16x4xf32> -> vector<8x16x12xf32>
    %90 = vector.shape_cast %89 : vector<8x16x12xf32> to vector<128x12xf32>
    %c1_73 = arith.constant 1 : index
    %c0_74 = arith.constant 0 : index
    %c0_75 = arith.constant 0 : index
    %91 = vector.load %arg2[%c1_73, %c0_74, %c0_75] : memref<3x12x4xf32, #tpu.memory_space<vmem>>, vector<1x12x4xf32>
    %92 = vector.shape_cast %91 : vector<1x12x4xf32> to vector<12x4xf32>
    %cst_76 = arith.constant dense<0.000000e+00> : vector<128x4xf32>
    %93 = tpu.matmul %90, %92, %cst_76 {dimension_numbers = #tpu.dot_dimension_numbers<[1], [0], [0], [1], [0, 0, 1, 1], [], []>} : vector<128x12xf32>, vector<12x4xf32>, vector<128x4xf32> -> vector<128x4xf32>
    %94 = arith.addf %82, %93 : vector<128x4xf32>
    %c2_i32_77 = arith.constant 2 : i32
    %95 = arith.addi %70, %c2_i32_77 : i32
    %96 = arith.index_cast %95 : i32 to index
    %c0_78 = arith.constant 0 : index
    %c0_79 = arith.constant 0 : index
    %97 = vector.load %arg7[%96, %c0_78, %c0_79] : memref<18x18x4xf32, #tpu.memory_space<vmem>>, vector<8x18x4xf32>
    %98 = vector.extract_strided_slice %97 {offsets = [0, 0, 0], sizes = [8, 16, 4], strides = [1, 1, 1]} : vector<8x18x4xf32> to vector<8x16x4xf32>
    %99 = vector.extract_strided_slice %97 {offsets = [0, 1, 0], sizes = [8, 16, 4], strides = [1, 1, 1]} : vector<8x18x4xf32> to vector<8x16x4xf32>
    %100 = vector.extract_strided_slice %97 {offsets = [0, 2, 0], sizes = [8, 16, 4], strides = [1, 1, 1]} : vector<8x18x4xf32> to vector<8x16x4xf32>
    %101 = tpu.concatenate %98, %99, %100 in 2 : vector<8x16x4xf32>, vector<8x16x4xf32>, vector<8x16x4xf32> -> vector<8x16x12xf32>
    %102 = vector.shape_cast %101 : vector<8x16x12xf32> to vector<128x12xf32>
    %c2_80 = arith.constant 2 : index
    %c0_81 = arith.constant 0 : index
    %c0_82 = arith.constant 0 : index
    %103 = vector.load %arg2[%c2_80, %c0_81, %c0_82] : memref<3x12x4xf32, #tpu.memory_space<vmem>>, vector<1x12x4xf32>
    %104 = vector.shape_cast %103 : vector<1x12x4xf32> to vector<12x4xf32>
    %cst_83 = arith.constant dense<0.000000e+00> : vector<128x4xf32>
    %105 = tpu.matmul %102, %104, %cst_83 {dimension_numbers = #tpu.dot_dimension_numbers<[1], [0], [0], [1], [0, 0, 1, 1], [], []>} : vector<128x12xf32>, vector<12x4xf32>, vector<128x4xf32> -> vector<128x4xf32>
    %106 = arith.addf %94, %105 : vector<128x4xf32>
    %cst_84 = arith.constant 0.000000e+00 : f32
    %107 = vector.broadcast %cst_84 : f32 to vector<128x4xf32>
    %108 = arith.maximumf %106, %107 : vector<128x4xf32>
    %109 = vector.shape_cast %108 : vector<128x4xf32> to vector<8x16x4xf32>
    %c1_i32_85 = arith.constant 1 : i32
    %110 = arith.addi %70, %c1_i32_85 : i32
    %111 = arith.index_cast %110 : i32 to index
    %c1_86 = arith.constant 1 : index
    %c0_87 = arith.constant 0 : index
    %112 = vector.load %arg8[%111, %c1_86, %c0_87] : memref<18x18x4xf32, #tpu.memory_space<vmem>>, vector<8x16x4xf32>
    tpu.vector_store %arg8[%111, %c1_86, %c0_87], %109 {strides = array<i32>} : memref<18x18x4xf32, #tpu.memory_space<vmem>>, vector<8x16x4xf32>,
    %c2_i32_88 = arith.constant 2 : i32
    %c0_i32_89 = arith.constant 0 : i32
    %c8_i32_90 = arith.constant 8 : i32
    %113 = arith.muli %c0_i32_89, %c8_i32_90 : i32
    %114 = tpu.assume_multiple %113, 8 : i32
    %c0_i32_91 = arith.constant 0 : i32
    %115 = arith.addi %114, %c0_i32_91 : i32
    %116 = arith.index_cast %115 : i32 to index
    %c0_92 = arith.constant 0 : index
    %c0_93 = arith.constant 0 : index
    %117 = vector.load %arg8[%116, %c0_92, %c0_93] : memref<18x18x4xf32, #tpu.memory_space<vmem>>, vector<8x18x4xf32>
    %118 = vector.extract_strided_slice %117 {offsets = [0, 0, 0], sizes = [8, 16, 4], strides = [1, 1, 1]} : vector<8x18x4xf32> to vector<8x16x4xf32>
    %119 = vector.extract_strided_slice %117 {offsets = [0, 1, 0], sizes = [8, 16, 4], strides = [1, 1, 1]} : vector<8x18x4xf32> to vector<8x16x4xf32>
    %120 = vector.extract_strided_slice %117 {offsets = [0, 2, 0], sizes = [8, 16, 4], strides = [1, 1, 1]} : vector<8x18x4xf32> to vector<8x16x4xf32>
    %121 = tpu.concatenate %118, %119, %120 in 2 : vector<8x16x4xf32>, vector<8x16x4xf32>, vector<8x16x4xf32> -> vector<8x16x12xf32>
    %122 = vector.shape_cast %121 : vector<8x16x12xf32> to vector<128x12xf32>
    %c0_94 = arith.constant 0 : index
    %c0_95 = arith.constant 0 : index
    %c0_96 = arith.constant 0 : index
    %123 = vector.load %arg4[%c0_94, %c0_95, %c0_96] : memref<3x12x4xf32, #tpu.memory_space<vmem>>, vector<1x12x4xf32>
    %124 = vector.shape_cast %123 : vector<1x12x4xf32> to vector<12x4xf32>
    %cst_97 = arith.constant dense<0.000000e+00> : vector<128x4xf32>
    %125 = tpu.matmul %122, %124, %cst_97 {dimension_numbers = #tpu.dot_dimension_numbers<[1], [0], [0], [1], [0, 0, 1, 1], [], []>} : vector<128x12xf32>, vector<12x4xf32>, vector<128x4xf32> -> vector<128x4xf32>
    %126 = arith.addf %24, %125 : vector<128x4xf32>
    %c1_i32_98 = arith.constant 1 : i32
    %127 = arith.addi %114, %c1_i32_98 : i32
    %128 = arith.index_cast %127 : i32 to index
    %c0_99 = arith.constant 0 : index
    %c0_100 = arith.constant 0 : index
    %129 = vector.load %arg8[%128, %c0_99, %c0_100] : memref<18x18x4xf32, #tpu.memory_space<vmem>>, vector<8x18x4xf32>
    %130 = vector.extract_strided_slice %129 {offsets = [0, 0, 0], sizes = [8, 16, 4], strides = [1, 1, 1]} : vector<8x18x4xf32> to vector<8x16x4xf32>
    %131 = vector.extract_strided_slice %129 {offsets = [0, 1, 0], sizes = [8, 16, 4], strides = [1, 1, 1]} : vector<8x18x4xf32> to vector<8x16x4xf32>
    %132 = vector.extract_strided_slice %129 {offsets = [0, 2, 0], sizes = [8, 16, 4], strides = [1, 1, 1]} : vector<8x18x4xf32> to vector<8x16x4xf32>
    %133 = tpu.concatenate %130, %131, %132 in 2 : vector<8x16x4xf32>, vector<8x16x4xf32>, vector<8x16x4xf32> -> vector<8x16x12xf32>
    %134 = vector.shape_cast %133 : vector<8x16x12xf32> to vector<128x12xf32>
    %c1_101 = arith.constant 1 : index
    %c0_102 = arith.constant 0 : index
    %c0_103 = arith.constant 0 : index
    %135 = vector.load %arg4[%c1_101, %c0_102, %c0_103] : memref<3x12x4xf32, #tpu.memory_space<vmem>>, vector<1x12x4xf32>
    %136 = vector.shape_cast %135 : vector<1x12x4xf32> to vector<12x4xf32>
    %cst_104 = arith.constant dense<0.000000e+00> : vector<128x4xf32>
    %137 = tpu.matmul %134, %136, %cst_104 {dimension_numbers = #tpu.dot_dimension_numbers<[1], [0], [0], [1], [0, 0, 1, 1], [], []>} : vector<128x12xf32>, vector<12x4xf32>, vector<128x4xf32> -> vector<128x4xf32>
    %138 = arith.addf %126, %137 : vector<128x4xf32>
    %c2_i32_105 = arith.constant 2 : i32
    %139 = arith.addi %114, %c2_i32_105 : i32
    %140 = arith.index_cast %139 : i32 to index
    %c0_106 = arith.constant 0 : index
    %c0_107 = arith.constant 0 : index
    %141 = vector.load %arg8[%140, %c0_106, %c0_107] : memref<18x18x4xf32, #tpu.memory_space<vmem>>, vector<8x18x4xf32>
    %142 = vector.extract_strided_slice %141 {offsets = [0, 0, 0], sizes = [8, 16, 4], strides = [1, 1, 1]} : vector<8x18x4xf32> to vector<8x16x4xf32>
    %143 = vector.extract_strided_slice %141 {offsets = [0, 1, 0], sizes = [8, 16, 4], strides = [1, 1, 1]} : vector<8x18x4xf32> to vector<8x16x4xf32>
    %144 = vector.extract_strided_slice %141 {offsets = [0, 2, 0], sizes = [8, 16, 4], strides = [1, 1, 1]} : vector<8x18x4xf32> to vector<8x16x4xf32>
    %145 = tpu.concatenate %142, %143, %144 in 2 : vector<8x16x4xf32>, vector<8x16x4xf32>, vector<8x16x4xf32> -> vector<8x16x12xf32>
    %146 = vector.shape_cast %145 : vector<8x16x12xf32> to vector<128x12xf32>
    %c2_108 = arith.constant 2 : index
    %c0_109 = arith.constant 0 : index
    %c0_110 = arith.constant 0 : index
    %147 = vector.load %arg4[%c2_108, %c0_109, %c0_110] : memref<3x12x4xf32, #tpu.memory_space<vmem>>, vector<1x12x4xf32>
    %148 = vector.shape_cast %147 : vector<1x12x4xf32> to vector<12x4xf32>
    %cst_111 = arith.constant dense<0.000000e+00> : vector<128x4xf32>
    %149 = tpu.matmul %146, %148, %cst_111 {dimension_numbers = #tpu.dot_dimension_numbers<[1], [0], [0], [1], [0, 0, 1, 1], [], []>} : vector<128x12xf32>, vector<12x4xf32>, vector<128x4xf32> -> vector<128x4xf32>
    %150 = arith.addf %138, %149 : vector<128x4xf32>
    %c0_112 = arith.constant 0 : index
    %151 = arith.index_cast %114 : i32 to index
    %c0_113 = arith.constant 0 : index
    %c0_114 = arith.constant 0 : index
    %152 = vector.load %arg1[%c0_112, %151, %c0_113, %c0_114] : memref<1x16x16x4xf32, #tpu.memory_space<vmem>>, vector<1x8x16x4xf32>
    %153 = vector.shape_cast %152 : vector<1x8x16x4xf32> to vector<8x16x4xf32>
    %154 = vector.shape_cast %153 : vector<8x16x4xf32> to vector<128x4xf32>
    %155 = arith.addf %150, %154 : vector<128x4xf32>
    %cst_115 = arith.constant 0.000000e+00 : f32
    %156 = vector.broadcast %cst_115 : f32 to vector<128x4xf32>
    %157 = arith.maximumf %155, %156 : vector<128x4xf32>
    %158 = vector.shape_cast %157 : vector<128x4xf32> to vector<8x16x4xf32>
    %c0_116 = arith.constant 0 : index
    %159 = arith.index_cast %114 : i32 to index
    %c0_117 = arith.constant 0 : index
    %c0_118 = arith.constant 0 : index
    %160 = vector.load %arg6[%c0_116, %159, %c0_117, %c0_118] : memref<1x16x16x4xf32, #tpu.memory_space<vmem>>, vector<1x8x16x4xf32>
    %161 = vector.shape_cast %160 : vector<1x8x16x4xf32> to vector<8x16x4xf32>
    %162 = vector.shape_cast %158 : vector<8x16x4xf32> to vector<1x8x16x4xf32>
    tpu.vector_store %arg6[%c0_116, %159, %c0_117, %c0_118], %162 {strides = array<i32>} : memref<1x16x16x4xf32, #tpu.memory_space<vmem>>, vector<1x8x16x4xf32>,
    %c1_i32_119 = arith.constant 1 : i32
    %c8_i32_120 = arith.constant 8 : i32
    %163 = arith.muli %c1_i32_119, %c8_i32_120 : i32
    %164 = tpu.assume_multiple %163, 8 : i32
    %c0_i32_121 = arith.constant 0 : i32
    %165 = arith.addi %164, %c0_i32_121 : i32
    %166 = arith.index_cast %165 : i32 to index
    %c0_122 = arith.constant 0 : index
    %c0_123 = arith.constant 0 : index
    %167 = vector.load %arg8[%166, %c0_122, %c0_123] : memref<18x18x4xf32, #tpu.memory_space<vmem>>, vector<8x18x4xf32>
    %168 = vector.extract_strided_slice %167 {offsets = [0, 0, 0], sizes = [8, 16, 4], strides = [1, 1, 1]} : vector<8x18x4xf32> to vector<8x16x4xf32>
    %169 = vector.extract_strided_slice %167 {offsets = [0, 1, 0], sizes = [8, 16, 4], strides = [1, 1, 1]} : vector<8x18x4xf32> to vector<8x16x4xf32>
    %170 = vector.extract_strided_slice %167 {offsets = [0, 2, 0], sizes = [8, 16, 4], strides = [1, 1, 1]} : vector<8x18x4xf32> to vector<8x16x4xf32>
    %171 = tpu.concatenate %168, %169, %170 in 2 : vector<8x16x4xf32>, vector<8x16x4xf32>, vector<8x16x4xf32> -> vector<8x16x12xf32>
    %172 = vector.shape_cast %171 : vector<8x16x12xf32> to vector<128x12xf32>
    %c0_124 = arith.constant 0 : index
    %c0_125 = arith.constant 0 : index
    %c0_126 = arith.constant 0 : index
    %173 = vector.load %arg4[%c0_124, %c0_125, %c0_126] : memref<3x12x4xf32, #tpu.memory_space<vmem>>, vector<1x12x4xf32>
    %174 = vector.shape_cast %173 : vector<1x12x4xf32> to vector<12x4xf32>
    %cst_127 = arith.constant dense<0.000000e+00> : vector<128x4xf32>
    %175 = tpu.matmul %172, %174, %cst_127 {dimension_numbers = #tpu.dot_dimension_numbers<[1], [0], [0], [1], [0, 0, 1, 1], [], []>} : vector<128x12xf32>, vector<12x4xf32>, vector<128x4xf32> -> vector<128x4xf32>
    %176 = arith.addf %24, %175 : vector<128x4xf32>
    %c1_i32_128 = arith.constant 1 : i32
    %177 = arith.addi %164, %c1_i32_128 : i32
    %178 = arith.index_cast %177 : i32 to index
    %c0_129 = arith.constant 0 : index
    %c0_130 = arith.constant 0 : index
    %179 = vector.load %arg8[%178, %c0_129, %c0_130] : memref<18x18x4xf32, #tpu.memory_space<vmem>>, vector<8x18x4xf32>
    %180 = vector.extract_strided_slice %179 {offsets = [0, 0, 0], sizes = [8, 16, 4], strides = [1, 1, 1]} : vector<8x18x4xf32> to vector<8x16x4xf32>
    %181 = vector.extract_strided_slice %179 {offsets = [0, 1, 0], sizes = [8, 16, 4], strides = [1, 1, 1]} : vector<8x18x4xf32> to vector<8x16x4xf32>
    %182 = vector.extract_strided_slice %179 {offsets = [0, 2, 0], sizes = [8, 16, 4], strides = [1, 1, 1]} : vector<8x18x4xf32> to vector<8x16x4xf32>
    %183 = tpu.concatenate %180, %181, %182 in 2 : vector<8x16x4xf32>, vector<8x16x4xf32>, vector<8x16x4xf32> -> vector<8x16x12xf32>
    %184 = vector.shape_cast %183 : vector<8x16x12xf32> to vector<128x12xf32>
    %c1_131 = arith.constant 1 : index
    %c0_132 = arith.constant 0 : index
    %c0_133 = arith.constant 0 : index
    %185 = vector.load %arg4[%c1_131, %c0_132, %c0_133] : memref<3x12x4xf32, #tpu.memory_space<vmem>>, vector<1x12x4xf32>
    %186 = vector.shape_cast %185 : vector<1x12x4xf32> to vector<12x4xf32>
    %cst_134 = arith.constant dense<0.000000e+00> : vector<128x4xf32>
    %187 = tpu.matmul %184, %186, %cst_134 {dimension_numbers = #tpu.dot_dimension_numbers<[1], [0], [0], [1], [0, 0, 1, 1], [], []>} : vector<128x12xf32>, vector<12x4xf32>, vector<128x4xf32> -> vector<128x4xf32>
    %188 = arith.addf %176, %187 : vector<128x4xf32>
    %c2_i32_135 = arith.constant 2 : i32
    %189 = arith.addi %164, %c2_i32_135 : i32
    %190 = arith.index_cast %189 : i32 to index
    %c0_136 = arith.constant 0 : index
    %c0_137 = arith.constant 0 : index
    %191 = vector.load %arg8[%190, %c0_136, %c0_137] : memref<18x18x4xf32, #tpu.memory_space<vmem>>, vector<8x18x4xf32>
    %192 = vector.extract_strided_slice %191 {offsets = [0, 0, 0], sizes = [8, 16, 4], strides = [1, 1, 1]} : vector<8x18x4xf32> to vector<8x16x4xf32>
    %193 = vector.extract_strided_slice %191 {offsets = [0, 1, 0], sizes = [8, 16, 4], strides = [1, 1, 1]} : vector<8x18x4xf32> to vector<8x16x4xf32>
    %194 = vector.extract_strided_slice %191 {offsets = [0, 2, 0], sizes = [8, 16, 4], strides = [1, 1, 1]} : vector<8x18x4xf32> to vector<8x16x4xf32>
    %195 = tpu.concatenate %192, %193, %194 in 2 : vector<8x16x4xf32>, vector<8x16x4xf32>, vector<8x16x4xf32> -> vector<8x16x12xf32>
    %196 = vector.shape_cast %195 : vector<8x16x12xf32> to vector<128x12xf32>
    %c2_138 = arith.constant 2 : index
    %c0_139 = arith.constant 0 : index
    %c0_140 = arith.constant 0 : index
    %197 = vector.load %arg4[%c2_138, %c0_139, %c0_140] : memref<3x12x4xf32, #tpu.memory_space<vmem>>, vector<1x12x4xf32>
    %198 = vector.shape_cast %197 : vector<1x12x4xf32> to vector<12x4xf32>
    %cst_141 = arith.constant dense<0.000000e+00> : vector<128x4xf32>
    %199 = tpu.matmul %196, %198, %cst_141 {dimension_numbers = #tpu.dot_dimension_numbers<[1], [0], [0], [1], [0, 0, 1, 1], [], []>} : vector<128x12xf32>, vector<12x4xf32>, vector<128x4xf32> -> vector<128x4xf32>
    %200 = arith.addf %188, %199 : vector<128x4xf32>
    %c0_142 = arith.constant 0 : index
    %201 = arith.index_cast %164 : i32 to index
    %c0_143 = arith.constant 0 : index
    %c0_144 = arith.constant 0 : index
    %202 = vector.load %arg1[%c0_142, %201, %c0_143, %c0_144] : memref<1x16x16x4xf32, #tpu.memory_space<vmem>>, vector<1x8x16x4xf32>
    %203 = vector.shape_cast %202 : vector<1x8x16x4xf32> to vector<8x16x4xf32>
    %204 = vector.shape_cast %203 : vector<8x16x4xf32> to vector<128x4xf32>
    %205 = arith.addf %200, %204 : vector<128x4xf32>
    %cst_145 = arith.constant 0.000000e+00 : f32
    %206 = vector.broadcast %cst_145 : f32 to vector<128x4xf32>
    %207 = arith.maximumf %205, %206 : vector<128x4xf32>
    %208 = vector.shape_cast %207 : vector<128x4xf32> to vector<8x16x4xf32>
    %c0_146 = arith.constant 0 : index
    %209 = arith.index_cast %164 : i32 to index
    %c0_147 = arith.constant 0 : index
    %c0_148 = arith.constant 0 : index
    %210 = vector.load %arg6[%c0_146, %209, %c0_147, %c0_148] : memref<1x16x16x4xf32, #tpu.memory_space<vmem>>, vector<1x8x16x4xf32>
    %211 = vector.shape_cast %210 : vector<1x8x16x4xf32> to vector<8x16x4xf32>
    %212 = vector.shape_cast %208 : vector<8x16x4xf32> to vector<1x8x16x4xf32>
    tpu.vector_store %arg6[%c0_146, %209, %c0_147, %c0_148], %212 {strides = array<i32>} : memref<1x16x16x4xf32, #tpu.memory_space<vmem>>, vector<1x8x16x4xf32>,
    %c2_i32_149 = arith.constant 2 : i32
    return
  }
  func.func @transform_0(%arg0: i32) -> (i32, i32, i32, i32) {
    %c0_i32 = arith.constant 0 : i32
    %c0_i32_0 = arith.constant 0 : i32
    %c0_i32_1 = arith.constant 0 : i32
    %c0_i32_2 = arith.constant 0 : i32
    return %arg0, %c0_i32, %c0_i32_0, %c0_i32_1 : i32, i32, i32, i32
  }
  func.func @transform_1(%arg0: i32) -> (i32, i32, i32) {
    %c0_i32 = arith.constant 0 : i32
    %c0_i32_0 = arith.constant 0 : i32
    %c0_i32_1 = arith.constant 0 : i32
    %c0_i32_2 = arith.constant 0 : i32
    return %c0_i32, %c0_i32_0, %c0_i32_1 : i32, i32, i32
  }
  func.func @transform_2(%arg0: i32) -> (i32, i32) {
    %c0_i32 = arith.constant 0 : i32
    %c0_i32_0 = arith.constant 0 : i32
    %c0_i32_1 = arith.constant 0 : i32
    return %c0_i32, %c0_i32_0 : i32, i32
  }
  func.func @transform_3(%arg0: i32) -> (i32, i32, i32) {
    %c0_i32 = arith.constant 0 : i32
    %c0_i32_0 = arith.constant 0 : i32
    %c0_i32_1 = arith.constant 0 : i32
    %c0_i32_2 = arith.constant 0 : i32
    return %c0_i32, %c0_i32_0, %c0_i32_1 : i32, i32, i32
  }
  func.func @transform_4(%arg0: i32) -> (i32, i32) {
    %c0_i32 = arith.constant 0 : i32
    %c0_i32_0 = arith.constant 0 : i32
    %c0_i32_1 = arith.constant 0 : i32
    return %c0_i32, %c0_i32_0 : i32, i32
  }
  func.func @transform_5(%arg0: i32) -> (i32, i32, i32, i32) {
    %c0_i32 = arith.constant 0 : i32
    %c0_i32_0 = arith.constant 0 : i32
    %c0_i32_1 = arith.constant 0 : i32
    %c0_i32_2 = arith.constant 0 : i32
    return %arg0, %c0_i32, %c0_i32_0, %c0_i32_1 : i32, i32, i32, i32
  }
}

</mosaic_0001>

<bundles_post_ra>
// kernel: tpu_custom_call.1
= control target key start
LH: loop header
LB: loop body
LE: loop exit
PB: predicated region body
PF: predicated region fallthrough
CT: control target
= control target key end

     0   :  { %s7524_s18 = smov 0   ;;  %s10673_s0 = inlined_call_operand.vmem [shape: f32[2,16,16,4], index: 0, kind: input, shape index: {}]   ;;  %s10674_s1 = inlined_call_operand.vmem [shape: f32[3,12,4], index: 1, kind: input, shape index: {}]   ;;  %s10675_s2 = inlined_call_operand.vmem [shape: f32[1,4], index: 2, kind: input, shape index: {}]   ;;  %s10676_s3 = inlined_call_operand.vmem [shape: f32[3,12,4], index: 3, kind: input, shape index: {}]   ;;  %s10677_s4 = inlined_call_operand.vmem [shape: f32[1,4], index: 4, kind: input, shape index: {}]   ;;  %s10678_s5 = inlined_call_operand.vmem [shape: f32[2,16,16,4], index: 5, kind: output, shape index: {}]  }
   0x1 LB: > { %s6329_s19 = sadd.s32 4294967295, %s7488_s18   ;;  %p6333_p0 = scmp.ge.s32.totalorder %s7488_s18, 1  ;;  %s7488_s18 = sphi %s7524_s18, %s15_s18  }
   0x2   : > { %p187_p1 = scmp.lt.s32.totalorder %s7488_s18, 3 }
   0x4   : > { %p188_p2 = pnand %p6333_p0, %p187_p1 }
   0x6   : > { %191 = sbr.rel (%p188_p2) target bundleno = 1430 (0x596), region = 40 }
   0xd   : > { %vm225_vm0 = vcmask 31744   ;;  %vm234_vm1 = vcmask 24576   ;;  %v7490_v0 = vmov 0.0   ;;  %vm228_vm2 = vcmask 25600   ;;  %p215_p3 = scmp.lt.s32.totalorder %s6329_s19, 1  ;;  %v7705_v1 = vld [vmem:[%s10674_s1] sm:$0xff] }
   0xe   : > { %226 = vst.msk [vmem:[#allocation2] sm:$0xff] %vm225_vm0, %v7490_v0  ;;  %227 = vst.msk [vmem:[#allocation2 + $0x8] sm:$0xff] %vm225_vm0, %v7490_v0  ;;  %v655_v2 = vld [vmem:[%s10674_s1 + $0x8] sm:$0xf]  ;;  %vm705_vm3 = vcmask 1043456   ;;  %vm7491_vm4 = vmmov 1  }
   0xf   : > { %231 = vst.msk [vmem:[#allocation2 + $0x198] sm:$0xff] %vm225_vm0, %v7490_v0  ;;  %232 = vst.msk [vmem:[#allocation2 + $0x1a0] sm:$0xff] %vm225_vm0, %v7490_v0  ;;  %s10820_s19 = smov (!%p215_p3, %s6329_s19), 1  ;;  %v7148_v3 = vpack.c.bf16 %v655_v2, %v7705_v1  ;;  %vm443_vm6 = vcmask 1046528   ;;  %vm532_vm7 = vcmask 1045504   ;;  %s7492_s28 = smov 4  }
  0x10   : > { %236 = vst.msk [vmem:[#allocation2 + $0x18] sm:$0x1] %vm234_vm1, %v7490_v0  ;;  %237 = vst.msk [vmem:[#allocation2 + $0x30] sm:$0x1] %vm234_vm1, %v7490_v0  ;;  %s6594_s24 = sshll.u32 %s10820_s19, 8  ;;  %s7493_s29 = smov 8  }
  0x11   : > { %238 = vst.msk [vmem:[#allocation2 + $0x48] sm:$0x1] %vm234_vm1, %v7490_v0  ;;  %239 = vst.msk [vmem:[#allocation2 + $0x60] sm:$0x1] %vm234_vm1, %v7490_v0  ;;  %s7717_s27 = scalar_lea.vmem %s10673_s0, %s6594_s24  ;;  %vm637_vm8 = vcmask 64512   ;;  %vm656_vm9 = vcmask 97280   ;;  %s10548_s25 = scalar_lea.vmem %s10678_s5, %s6594_s24 }
  0x12   : > { %240 = vst.msk [vmem:[#allocation2 + $0x78] sm:$0x1] %vm234_vm1, %v7490_v0  ;;  %241 = vst.msk [vmem:[#allocation2 + $0x90] sm:$0x1] %vm234_vm1, %v7490_v0  ;;  %v314_v5 = vld [vmem:[%s7717_s27] sm:$0xff]  ;;  %v315_v6 = vld [vmem:[%s7717_s27 + $0x8] sm:$0xff] }
  0x13   : > { %242 = vst.msk [vmem:[#allocation2 + $0xa8] sm:$0x1] %vm234_vm1, %v7490_v0  ;;  %243 = vst.msk [vmem:[#allocation2 + $0xc0] sm:$0x1] %vm234_vm1, %v7490_v0  ;;  %v316_v7 = vld [vmem:[%s7717_s27 + $0x10] sm:$0xff]  ;;  %v317_v9 = vld [vmem:[%s7717_s27 + $0x18] sm:$0xff] }
  0x14   : > { %244 = vst.msk [vmem:[#allocation2 + $0xd8] sm:$0x1] %vm234_vm1, %v7490_v0  ;;  %245 = vst.msk [vmem:[#allocation2 + $0xf0] sm:$0x1] %vm234_vm1, %v7490_v0  ;;  %v318_v10 = vld [vmem:[%s7717_s27 + $0x20] sm:$0xff]  ;;  %v319_v14 = vld [vmem:[%s7717_s27 + $0x28] sm:$0xff] }
  0x15   : > { %246 = vst.msk [vmem:[#allocation2 + $0x108] sm:$0x1] %vm234_vm1, %v7490_v0  ;;  %247 = vst.msk [vmem:[#allocation2 + $0x120] sm:$0x1] %vm234_vm1, %v7490_v0  ;;  %v7728_v8 = vld [vmem:[#allocation2 + $0x8] sm:$0xff]  ;;  %v320_v15 = vld [vmem:[%s7717_s27 + $0x30] sm:$0xff] }
  0x16   : > { %248 = vst.msk [vmem:[#allocation2 + $0x138] sm:$0x1] %vm234_vm1, %v7490_v0  ;;  %249 = vst.msk [vmem:[#allocation2 + $0x150] sm:$0x1] %vm234_vm1, %v7490_v0  ;;  %v445_v12 = vrot.slane %v7728_v8, 1  ;;  %v534_v13 = vrot.slane %v7728_v8, 2 }
  0x17   : > { %250 = vst.msk [vmem:[#allocation2 + $0x168] sm:$0x1] %vm234_vm1, %v7490_v0  ;;  %251 = vst.msk [vmem:[#allocation2 + $0x180] sm:$0x1] %vm234_vm1, %v7490_v0  ;;  %v321_v18 = vld [vmem:[%s7717_s27 + $0x38] sm:$0xff]  ;;  %v322_v19 = vld [vmem:[%s7717_s27 + $0x40] sm:$0xff] }
  0x18   : > { %254 = vst.msk [vmem:[#allocation2 + $0x29] sm:$0x1] %vm234_vm1, %v7490_v0  ;;  %255 = vst.msk [vmem:[#allocation2 + $0x41] sm:$0x1] %vm234_vm1, %v7490_v0  ;;  %v323_v22 = vld [vmem:[%s7717_s27 + $0x48] sm:$0xff]  ;;  %v324_v23 = vld [vmem:[%s7717_s27 + $0x50] sm:$0xff] }
  0x19   : > { %256 = vst.msk [vmem:[#allocation2 + $0x59] sm:$0x1] %vm234_vm1, %v7490_v0  ;;  %257 = vst.msk [vmem:[#allocation2 + $0x71] sm:$0x1] %vm234_vm1, %v7490_v0  ;;  %v325_v24 = vld [vmem:[%s7717_s27 + $0x58] sm:$0xff]  ;;  %v326_v26 = vld [vmem:[%s7717_s27 + $0x60] sm:$0xff] }
  0x1a   : > { %258 = vst.msk [vmem:[#allocation2 + $0x89] sm:$0x1] %vm234_vm1, %v7490_v0  ;;  %259 = vst.msk [vmem:[#allocation2 + $0xa1] sm:$0x1] %vm234_vm1, %v7490_v0  ;;  %v327_v27 = vld [vmem:[%s7717_s27 + $0x68] sm:$0xff]  ;;  %v328_v28 = vld [vmem:[%s7717_s27 + $0x70] sm:$0xff] }
  0x1b   : > { %260 = vst.msk [vmem:[#allocation2 + $0xb9] sm:$0x1] %vm234_vm1, %v7490_v0  ;;  %261 = vst.msk [vmem:[#allocation2 + $0xd1] sm:$0x1] %vm234_vm1, %v7490_v0  ;;  %v329_v30 = vld [vmem:[%s7717_s27 + $0x78] sm:$0xff]  ;;  %v330_v31 = vld [vmem:[%s7717_s27 + $0x80] sm:$0xff] }
  0x1c   : > { %262 = vst.msk [vmem:[#allocation2 + $0xe9] sm:$0x1] %vm234_vm1, %v7490_v0  ;;  %263 = vst.msk [vmem:[#allocation2 + $0x101] sm:$0x1] %vm234_vm1, %v7490_v0  ;;  %v331_v32 = vld [vmem:[%s7717_s27 + $0x88] sm:$0xff]  ;;  %v332_v35 = vld [vmem:[%s7717_s27 + $0x90] sm:$0xff] }
  0x1d   : > { %264 = vst.msk [vmem:[#allocation2 + $0x119] sm:$0x1] %vm234_vm1, %v7490_v0  ;;  %265 = vst.msk [vmem:[#allocation2 + $0x131] sm:$0x1] %vm234_vm1, %v7490_v0  ;;  %v333_v36 = vld [vmem:[%s7717_s27 + $0x98] sm:$0xff]  ;;  %v334_v37 = vld [vmem:[%s7717_s27 + $0xa0] sm:$0xff] }
  0x1e   : > { %266 = vst.msk [vmem:[#allocation2 + $0x149] sm:$0x1] %vm234_vm1, %v7490_v0  ;;  %267 = vst.msk [vmem:[#allocation2 + $0x161] sm:$0x1] %vm234_vm1, %v7490_v0 }
  0x1f   : > { %268 = vst.msk [vmem:[#allocation2 + $0x179] sm:$0x1] %vm234_vm1, %v7490_v0  ;;  %269 = vst.msk [vmem:[#allocation2 + $0x191] sm:$0x1] %vm234_vm1, %v7490_v0 }
  0x20   : > { %271 = vst.msk [vmem:[#allocation3] sm:$0xff] %vm225_vm0, %v7490_v0  ;;  %272 = vst.msk [vmem:[#allocation3 + $0x8] sm:$0xff] %vm225_vm0, %v7490_v0 }
  0x21   : > { %275 = vst.msk [vmem:[#allocation3 + $0x198] sm:$0xff] %vm225_vm0, %v7490_v0  ;;  %276 = vst.msk [vmem:[#allocation3 + $0x1a0] sm:$0xff] %vm225_vm0, %v7490_v0 }
  0x22   : > { %279 = vst.msk [vmem:[#allocation3 + $0x18] sm:$0x1] %vm234_vm1, %v7490_v0  ;;  %280 = vst.msk [vmem:[#allocation3 + $0x30] sm:$0x1] %vm234_vm1, %v7490_v0 }
  0x23   : > { %281 = vst.msk [vmem:[#allocation3 + $0x48] sm:$0x1] %vm234_vm1, %v7490_v0  ;;  %282 = vst.msk [vmem:[#allocation3 + $0x60] sm:$0x1] %vm234_vm1, %v7490_v0 }
  0x24   : > { %283 = vst.msk [vmem:[#allocation3 + $0x78] sm:$0x1] %vm234_vm1, %v7490_v0  ;;  %284 = vst.msk [vmem:[#allocation3 + $0x90] sm:$0x1] %vm234_vm1, %v7490_v0 }
  0x25   : > { %285 = vst.msk [vmem:[#allocation3 + $0xa8] sm:$0x1] %vm234_vm1, %v7490_v0  ;;  %286 = vst.msk [vmem:[#allocation3 + $0xc0] sm:$0x1] %vm234_vm1, %v7490_v0 }
  0x26   : > { %287 = vst.msk [vmem:[#allocation3 + $0xd8] sm:$0x1] %vm234_vm1, %v7490_v0  ;;  %288 = vst.msk [vmem:[#allocation3 + $0xf0] sm:$0x1] %vm234_vm1, %v7490_v0 }
  0x27   : > { %289 = vst.msk [vmem:[#allocation3 + $0x108] sm:$0x1] %vm234_vm1, %v7490_v0  ;;  %290 = vst.msk [vmem:[#allocation3 + $0x120] sm:$0x1] %vm234_vm1, %v7490_v0 }
  0x28   : > { %291 = vst.msk [vmem:[#allocation3 + $0x138] sm:$0x1] %vm234_vm1, %v7490_v0  ;;  %292 = vst.msk [vmem:[#allocation3 + $0x150] sm:$0x1] %vm234_vm1, %v7490_v0 }
  0x29   : > { %293 = vst.msk [vmem:[#allocation3 + $0x168] sm:$0x1] %vm234_vm1, %v7490_v0  ;;  %294 = vst.msk [vmem:[#allocation3 + $0x180] sm:$0x1] %vm234_vm1, %v7490_v0 }
  0x2a   : > { %297 = vst.msk [vmem:[#allocation3 + $0x29] sm:$0x1] %vm234_vm1, %v7490_v0  ;;  %298 = vst.msk [vmem:[#allocation3 + $0x41] sm:$0x1] %vm234_vm1, %v7490_v0 }
  0x2b   : > { %299 = vst.msk [vmem:[#allocation3 + $0x59] sm:$0x1] %vm234_vm1, %v7490_v0  ;;  %300 = vst.msk [vmem:[#allocation3 + $0x71] sm:$0x1] %vm234_vm1, %v7490_v0 }
  0x2c   : > { %301 = vst.msk [vmem:[#allocation3 + $0x89] sm:$0x1] %vm234_vm1, %v7490_v0  ;;  %302 = vst.msk [vmem:[#allocation3 + $0xa1] sm:$0x1] %vm234_vm1, %v7490_v0 }
  0x2d   : > { %303 = vst.msk [vmem:[#allocation3 + $0xb9] sm:$0x1] %vm234_vm1, %v7490_v0  ;;  %304 = vst.msk [vmem:[#allocation3 + $0xd1] sm:$0x1] %vm234_vm1, %v7490_v0 }
  0x2e   : > { %305 = vst.msk [vmem:[#allocation3 + $0xe9] sm:$0x1] %vm234_vm1, %v7490_v0  ;;  %306 = vst.msk [vmem:[#allocation3 + $0x101] sm:$0x1] %vm234_vm1, %v7490_v0 }
  0x2f   : > { %307 = vst.msk [vmem:[#allocation3 + $0x119] sm:$0x1] %vm234_vm1, %v7490_v0  ;;  %308 = vst.msk [vmem:[#allocation3 + $0x131] sm:$0x1] %vm234_vm1, %v7490_v0 }
  0x30   : > { %309 = vst.msk [vmem:[#allocation3 + $0x149] sm:$0x1] %vm234_vm1, %v7490_v0  ;;  %310 = vst.msk [vmem:[#allocation3 + $0x161] sm:$0x1] %vm234_vm1, %v7490_v0 }
  0x31   : > { %311 = vst.msk [vmem:[#allocation3 + $0x179] sm:$0x1] %vm234_vm1, %v7490_v0  ;;  %312 = vst.msk [vmem:[#allocation3 + $0x191] sm:$0x1] %vm234_vm1, %v7490_v0 }
  0x32   : > { %235 = vst.msk [vmem:[#allocation2] sm:$0x1] %vm234_vm1, %v7490_v0  ;;  %252 = vst.msk [vmem:[#allocation2 + $0x198] sm:$0x1] %vm234_vm1, %v7490_v0 }
  0x33   : > { %229 = vst.msk [vmem:[#allocation2 + $0x10] sm:$0x3] %vm228_vm2, %v7490_v0  ;;  %233 = vst.msk [vmem:[#allocation2 + $0x1a8] sm:$0x3] %vm228_vm2, %v7490_v0 }
  0x34   : > { %273 = vst.msk [vmem:[#allocation3 + $0x10] sm:$0x3] %vm228_vm2, %v7490_v0  ;;  %277 = vst.msk [vmem:[#allocation3 + $0x1a8] sm:$0x3] %vm228_vm2, %v7490_v0 }
  0x35   : > { %278 = vst.msk [vmem:[#allocation3] sm:$0x1] %vm234_vm1, %v7490_v0  ;;  %295 = vst.msk [vmem:[#allocation3 + $0x198] sm:$0x1] %vm234_vm1, %v7490_v0 }
  0x36   : > { %253 = vst.msk [vmem:[#allocation2 + $0x11] sm:$0x1] %vm234_vm1, %v7490_v0  ;;  %270 = vst.msk [vmem:[#allocation2 + $0x1a9] sm:$0x1] %vm234_vm1, %v7490_v0 }
  0x37   : > { %296 = vst.msk [vmem:[#allocation3 + $0x11] sm:$0x1] %vm234_vm1, %v7490_v0  ;;  %313 = vst.msk [vmem:[#allocation3 + $0x1a9] sm:$0x1] %vm234_vm1, %v7490_v0 }
  0x38   : > { %vm7719_vm5 = vmpackc.low %vm705_vm3, %vm7491_vm4  ;;  %347 = vst.msk [vmem:[#allocation2 + $0x19] sm:$0xff] %vm225_vm0, %v314_v5  ;;  %v336_v5 = vld [vmem:[%s7717_s27 + $0xb0] sm:$0xff] }
  0x39   : > { %7150 = vmatprep.subr.msk.bf16.mxu0 %vm7719_vm5, %v7148_v3  ;;  %348 = vst.msk [vmem:[#allocation2 + $0x21] sm:$0xff] %vm225_vm0, %v315_v6  ;;  %349 = vst.msk [vmem:[#allocation2 + $0x31] sm:$0xff] %vm225_vm0, %v316_v7  ;;  %v7737_v11 = vld [vmem:[#allocation2] sm:$0xff]  ;;  %v337_v6 = vld [vmem:[%s7717_s27 + $0xb8] sm:$0xff] }
  0x3a   : > { %7153 = vmatpush3.bf16.msk.msra.mxu0 %vm7719_vm5, %v7148_v3  ;;  %350 = vst.msk [vmem:[#allocation2 + $0x39] sm:$0xff] %vm225_vm0, %v317_v9  ;;  %351 = vst.msk [vmem:[#allocation2 + $0x49] sm:$0xff] %vm225_vm0, %v318_v10  ;;  %v444_v16 = vrot.slane %v7737_v11, 1  ;;  %v533_v34 = vrot.slane %v7737_v11, 2  ;;  %v335_v3 = vld [vmem:[%s7717_s27 + $0xa8] sm:$0xff] }
  0x3b   : > { %352 = vst.msk [vmem:[#allocation2 + $0x51] sm:$0xff] %vm225_vm0, %v319_v14  ;;  %353 = vst.msk [vmem:[#allocation2 + $0x61] sm:$0xff] %vm225_vm0, %v320_v15 }
  0x3c   : > { %354 = vst.msk [vmem:[#allocation2 + $0x69] sm:$0xff] %vm225_vm0, %v321_v18  ;;  %355 = vst.msk [vmem:[#allocation2 + $0x79] sm:$0xff] %vm225_vm0, %v322_v19  ;;  %v446_v25 = vsel %vm443_vm6, %v444_v16, %v445_v12  ;;  %v535_v48 = vsel %vm532_vm7, %v533_v34, %v534_v13 }
  0x3d   : > { %v397_v17 = vld [vmem:[#allocation2 + $0x10] sm:$0x3]  ;;  %356 = vst.msk [vmem:[#allocation2 + $0x81] sm:$0xff] %vm225_vm0, %v323_v22  ;;  %357 = vst.msk [vmem:[#allocation2 + $0x91] sm:$0xff] %vm225_vm0, %v324_v23  ;;  %484 = vrot.lane.b32.xlu0 %v446_v25, %s7492_s28  ;;  %v341_v22 = vld [vmem:[%s7717_s27 + $0xd8] sm:$0xff] }
  0x3e   : > { %v536_v20 = vrot.slane %v397_v17, 2  ;;  %v447_v21 = vrot.slane %v397_v17, 1  ;;  %358 = vst.msk [vmem:[#allocation2 + $0x99] sm:$0xff] %vm225_vm0, %v325_v24  ;;  %359 = vst.msk [vmem:[#allocation2 + $0xa9] sm:$0xff] %vm225_vm0, %v326_v26 }
  0x3f   : > { %360 = vst.msk [vmem:[#allocation2 + $0xb1] sm:$0xff] %vm225_vm0, %v327_v27  ;;  %361 = vst.msk [vmem:[#allocation2 + $0xc1] sm:$0xff] %vm225_vm0, %v328_v28  ;;  %v7779_v38 = vld [vmem:[#allocation2 + $0x18] sm:$0xff] }
  0x40   : > { %v537_v29 = vsel %vm532_vm7, %v534_v13, %v536_v20  ;;  %v448_v33 = vsel %vm443_vm6, %v445_v12, %v447_v21  ;;  %362 = vst.msk [vmem:[#allocation2 + $0xc9] sm:$0xff] %vm225_vm0, %v329_v30  ;;  %363 = vst.msk [vmem:[#allocation2 + $0xd9] sm:$0xff] %vm225_vm0, %v330_v31  ;;  %v7781_v39 = vld [vmem:[#allocation2 + $0x20] sm:$0xff]  ;;  %v400_v40 = vld [vmem:[#allocation2 + $0x28] sm:$0x3]  ;;  %v449_v41 = vrot.slane %v7779_v38, 1 }
  0x41   : > { %575 = vrot.lane.b32.xlu1 %v537_v29, %s7493_s29  ;;  %364 = vst.msk [vmem:[#allocation2 + $0xe1] sm:$0xff] %vm225_vm0, %v331_v32  ;;  %365 = vst.msk [vmem:[#allocation2 + $0xf1] sm:$0xff] %vm225_vm0, %v332_v35  ;;  %v7788_v42 = vrot.slane %v7781_v39, 1  ;;  %v452_v43 = vrot.slane %v400_v40, 1  ;;  %v7790_v44 = vld [vmem:[#allocation2 + $0x30] sm:$0xff]  ;;  %v7792_v45 = vld [vmem:[#allocation2 + $0x38] sm:$0xff]  ;;  %486 = vrot.lane.b32.xlu0 %v448_v33, %s7492_s28 }
  0x42   : > { %366 = vst.msk [vmem:[#allocation2 + $0xf9] sm:$0xff] %vm225_vm0, %v333_v36  ;;  %367 = vst.msk [vmem:[#allocation2 + $0x109] sm:$0xff] %vm225_vm0, %v334_v37  ;;  %v403_v46 = vld [vmem:[#allocation2 + $0x40] sm:$0x3]  ;;  %v454_v49 = vrot.slane %v7790_v44, 1  ;;  %v7802_v50 = vrot.slane %v7792_v45, 1 }
  0x43   : > { %v7797_v47 = vsel %vm443_vm6, %v449_v41, %v7788_v42  ;;  %v7806_v51 = vld [vmem:[#allocation2 + $0x48] sm:$0xff]  ;;  %v7808_v52 = vld [vmem:[#allocation2 + $0x50] sm:$0xff]  ;;  %v453_v53 = vsel %vm443_vm6, %v7788_v42, %v452_v43  ;;  %v457_v54 = vrot.slane %v403_v46, 1  ;;  %v406_v55 = vld [vmem:[#allocation2 + $0x58] sm:$0x3]  ;;  %v538_v62 = vrot.slane %v7779_v38, 2 }
  0x44   : > { %v7815_v56 = vsel %vm443_vm6, %v454_v49, %v7802_v50  ;;  %v459_v57 = vrot.slane %v7806_v51, 1  ;;  %v7819_v58 = vrot.slane %v7808_v52, 1  ;;  %v462_v60 = vrot.slane %v406_v55, 1  ;;  %368 = vst.msk [vmem:[#allocation2 + $0x111] sm:$0xff] %vm225_vm0, %v335_v3  ;;  %369 = vst.msk [vmem:[#allocation2 + $0x121] sm:$0xff] %vm225_vm0, %v336_v5  ;;  %v338_v12 = vld [vmem:[%s7717_s27 + $0xc0] sm:$0xff] }
  0x45   : > { %488 = vrot.lane.b32.xlu1 %v7797_v47, %s7492_s28  ;;  %573 = vrot.lane.b32.xlu0 %v535_v48, %s7493_s29  ;;  %v458_v59 = vsel %vm443_vm6, %v7802_v50, %v457_v54  ;;  %v7832_v63 = vrot.slane %v7781_v39, 2  ;;  %v541_v2 = vrot.slane %v400_v40, 2  ;;  %v543_v9 = vrot.slane %v7790_v44, 2  ;;  %370 = vst.msk [vmem:[#allocation2 + $0x129] sm:$0xff] %vm225_vm0, %v337_v6  ;;  %v339_v13 = vld [vmem:[%s7717_s27 + $0xc8] sm:$0xff]  ;;  %371 = vst.msk [vmem:[#allocation2 + $0x139] sm:$0xff] %vm225_vm0, %v338_v12 }
  0x46   : > { %v7828_v61 = vsel %vm443_vm6, %v459_v57, %v7819_v58  ;;  %v463_v0 = vsel %vm443_vm6, %v7819_v58, %v462_v60  ;;  %v7849_v10 = vrot.slane %v7792_v45, 2  ;;  %372 = vst.msk [vmem:[#allocation2 + $0x141] sm:$0xff] %vm225_vm0, %v339_v13  ;;  %v546_v15 = vrot.slane %v403_v46, 2  ;;  %v7870_v19 = vld [vmem:[#allocation2 + $0x60] sm:$0xff]  ;;  %v7873_v20 = vld [vmem:[#allocation2 + $0x68] sm:$0xff]  ;;  %v340_v21 = vld [vmem:[%s7717_s27 + $0xd0] sm:$0xff] }
  0x47   : > { %v7845_v7 = vsel %vm532_vm7, %v538_v62, %v7832_v63  ;;  %v542_v14 = vsel %vm532_vm7, %v7832_v63, %v541_v2  ;;  %v548_v17 = vrot.slane %v7806_v51, 2  ;;  %v7868_v18 = vrot.slane %v7808_v52, 2  ;;  %373 = vst.msk [vmem:[#allocation2 + $0x151] sm:$0xff] %vm225_vm0, %v340_v21  ;;  %374 = vst.msk [vmem:[#allocation2 + $0x159] sm:$0xff] %vm225_vm0, %v341_v22  ;;  %v409_v25 = vld [vmem:[#allocation2 + $0x70] sm:$0x3] }
  0x48   : > { %v7864_v16 = vsel %vm532_vm7, %v543_v9, %v7849_v10  ;;  %v547_v23 = vsel %vm532_vm7, %v7849_v10, %v546_v15  ;;  %v551_v24 = vrot.slane %v406_v55, 2  ;;  %v464_v27 = vrot.slane %v7870_v19, 1  ;;  %v7905_v34 = vld [vmem:[#allocation2 + $0x78] sm:$0xff]  ;;  %v7907_v35 = vld [vmem:[#allocation2 + $0x80] sm:$0xff]  ;;  %v412_v40 = vld [vmem:[#allocation2 + $0x88] sm:$0x3] }
  0x49   : > { %490 = vrot.lane.b32.xlu1 %v453_v53, %s7492_s28  ;;  %492 = vrot.lane.b32.xlu0 %v7815_v56, %s7492_s28  ;;  %v7885_v26 = vsel %vm532_vm7, %v548_v17, %v7868_v18  ;;  %v7889_v28 = vrot.slane %v7873_v20, 1  ;;  %v467_v30 = vrot.slane %v409_v25, 1  ;;  %v553_v32 = vrot.slane %v7870_v19, 2  ;;  %v7934_v57 = vld [vmem:[#allocation2 + $0x90] sm:$0xff]  ;;  %v342_v60 = vld [vmem:[%s7717_s27 + $0xe0] sm:$0xff]  ;;  %v343_v62 = vld [vmem:[%s7717_s27 + $0xe8] sm:$0xff] }
  0x4a   : > { %v552_v29 = vsel %vm532_vm7, %v7868_v18, %v551_v24  ;;  %v7902_v33 = vrot.slane %v7873_v20, 2  ;;  %v556_v37 = vrot.slane %v409_v25, 2  ;;  %v469_v43 = vrot.slane %v7905_v34, 1  ;;  %375 = vst.msk [vmem:[#allocation2 + $0x169] sm:$0xff] %vm225_vm0, %v342_v60  ;;  %376 = vst.msk [vmem:[#allocation2 + $0x171] sm:$0xff] %vm225_vm0, %v343_v62  ;;  %v7969_v21 = vld [vmem:[#allocation2 + $0xa8] sm:$0xff] }
  0x4b   : > { %v7898_v31 = vsel %vm443_vm6, %v464_v27, %v7889_v28  ;;  %v468_v36 = vsel %vm443_vm6, %v7889_v28, %v467_v30  ;;  %v7919_v46 = vrot.slane %v7907_v35, 1  ;;  %v472_v49 = vrot.slane %v412_v40, 1  ;;  %v415_v3 = vld [vmem:[#allocation2 + $0xa0] sm:$0x3]  ;;  %v7971_v22 = vld [vmem:[#allocation2 + $0xb0] sm:$0xff]  ;;  %v8005_v60 = vld [vmem:[#allocation2 + $0xc8] sm:$0xff] }
  0x4c   : > { %v7915_v41 = vsel %vm532_vm7, %v553_v32, %v7902_v33  ;;  %v557_v48 = vsel %vm532_vm7, %v7902_v33, %v556_v37  ;;  %v558_v54 = vrot.slane %v7905_v34, 2  ;;  %v7932_v55 = vrot.slane %v7907_v35, 2  ;;  %v418_v25 = vld [vmem:[#allocation2 + $0xb8] sm:$0x3] }
  0x4d   : > { %494 = vrot.lane.b32.xlu1 %v458_v59, %s7492_s28  ;;  %496 = vrot.lane.b32.xlu0 %v7828_v61, %s7492_s28  ;;  %v7928_v53 = vsel %vm443_vm6, %v469_v43, %v7919_v46  ;;  %v7937_v59 = vld [vmem:[#allocation2 + $0x98] sm:$0xff]  ;;  %v561_v2 = vrot.slane %v412_v40, 2  ;;  %v474_v6 = vrot.slane %v7934_v57, 1  ;;  %v477_v13 = vrot.slane %v415_v3, 1 }
  0x4e   : > { %v7949_v5 = vsel %vm532_vm7, %v558_v54, %v7932_v55  ;;  %v7953_v9 = vrot.slane %v7937_v59, 1  ;;  %v563_v15 = vrot.slane %v7934_v57, 2  ;;  %v7966_v17 = vrot.slane %v7937_v59, 2  ;;  %v8003_v54 = vld [vmem:[#allocation2 + $0xc0] sm:$0xff] }
  0x4f   : > { %v562_v12 = vsel %vm532_vm7, %v7932_v55, %v561_v2  ;;  %v566_v24 = vrot.slane %v415_v3, 2  ;;  %v7983_v30 = vrot.slane %v7971_v22, 1  ;;  %v568_v40 = vrot.slane %v7969_v21, 2  ;;  %v8015_v2 = vld [vmem:[%s10674_s1 + $0x10] sm:$0xff]  ;;  %v6358_v3 = vld [vmem:[%s10674_s1 + $0x18] sm:$0xf] }
  0x50   : > { %v7979_v27 = vsel %vm532_vm7, %v563_v15, %v7966_v17  ;;  %v7996_v43 = vrot.slane %v7971_v22, 2  ;;  %v8027_v15 = vpack.c.bf16 %v6358_v3, %v8015_v2 }
  0x51   : > { %498 = vrot.lane.b32.xlu1 %v463_v0, %s7492_s28  ;;  %577 = vrot.lane.b32.xlu0 %v7845_v7, %s7493_s29  ;;  %v473_v0 = vsel %vm443_vm6, %v7919_v46, %v472_v49  ;;  %v567_v32 = vsel %vm532_vm7, %v7966_v17, %v566_v24  ;;  %v571_v49 = vrot.slane %v418_v25, 2 }
  0x52   : > { %v8009_v62 = vsel %vm532_vm7, %v568_v40, %v7996_v43  ;;  %7156 = vmatprep.subr.msk.bf16.mxu0 %vm7719_vm5, %v8027_v15  ;;  %v1989_v40 = vrot.slane %v8003_v54, 2 }
  0x55   : > { %579 = vrot.lane.b32.xlu1 %v542_v14, %s7493_s29  ;;  %581 = vrot.lane.b32.xlu0 %v7864_v16, %s7493_s29  ;;  %v7962_v14 = vsel %vm443_vm6, %v474_v6, %v7953_v9  ;;  %v572_v6 = vsel %vm532_vm7, %v7996_v43, %v571_v49 }
  0x59   : > { %583 = vrot.lane.b32.xlu1 %v547_v23, %s7493_s29  ;;  %585 = vrot.lane.b32.xlu0 %v7885_v26, %s7493_s29  ;;  %v478_v23 = vsel %vm443_vm6, %v7953_v9, %v477_v13  ;;  %v8024_v13 = vrot.slane %v8005_v60, 1 }
  0x5d   : > { %587 = vrot.lane.b32.xlu1 %v552_v29, %s7493_s29  ;;  %500 = vrot.lane.b32.xlu0 %v7898_v31, %s7492_s28  ;;  %v479_v29 = vrot.slane %v7969_v21, 1 }
  0x5f   : > { %v7992_v37 = vsel %vm443_vm6, %v479_v29, %v7983_v30  ;;  %v1855_v29 = vld [vmem:[#allocation2 + $0xd0] sm:$0x3] }
  0x61   : > { %502 = vrot.lane.b32.xlu1 %v468_v36, %s7492_s28  ;;  %589 = vrot.lane.b32.xlu0 %v7915_v41, %s7493_s29  ;;  %v482_v36 = vrot.slane %v418_v25, 1 }
  0x65   : > { %591 = vrot.lane.b32.xlu1 %v557_v48, %s7493_s29  ;;  %504 = vrot.lane.b32.xlu0 %v7928_v53, %s7492_s28  ;;  %v483_v48 = vsel %vm443_vm6, %v7983_v30, %v482_v36  ;;  %v1904_v36 = vrot.slane %v1855_v29, 1 }
  0x67   : > { %v1905_v49 = vsel %vm443_vm6, %v8024_v13, %v1904_v36 }
  0x69   : > { %506 = vrot.lane.b32.xlu1 %v473_v0, %s7492_s28  ;;  %593 = vrot.lane.b32.xlu0 %v7949_v5, %s7493_s29  ;;  %v875_v0 = vld [vmem:[#allocation2 + $0x28] sm:$0x3] }
  0x6a   : > { %v924_v25 = vrot.slane %v875_v0, 1  ;;  %v1012_v3 = vrot.slane %v875_v0, 2  ;;  %v878_v0 = vld [vmem:[#allocation2 + $0x40] sm:$0x3] }
  0x6d   : > { %595 = vrot.lane.b32.xlu1 %v562_v12, %s7493_s29  ;;  %508 = vrot.lane.b32.xlu0 %v7962_v14, %s7492_s28  ;;  %v1901_v12 = vrot.slane %v8003_v54, 1 }
  0x71   : > { %510 = vrot.lane.b32.xlu1 %v478_v23, %s7492_s28  ;;  %597 = vrot.lane.b32.xlu0 %v7979_v27, %s7493_s29  ;;  %v2110_v23 = vld [vmem:[%s10674_s1 + $0x8] sm:$0xf] }
  0x72   : > { %v7166_v24 = vpack.c.bf16 %v2110_v23, %v7705_v1  ;;  %v925_v1 = vsel %vm443_vm6, %v7788_v42, %v924_v25  ;;  %v1013_v23 = vsel %vm532_vm7, %v7832_v63, %v1012_v3 }
  0x74   : > { %7168 = vmatprep.subr.msk.bf16.mxu1 %vm7719_vm5, %v7166_v24 }
  0x75   : > { %599 = vrot.lane.b32.xlu1 %v567_v32, %s7493_s29  ;;  %512 = vrot.lane.b32.xlu0 %v7992_v37, %s7492_s28  ;;  %v8043_v32 = vsel %vm443_vm6, %v1901_v12, %v8024_v13  ;;  %v8069_v12 = vld [vmem:[#allocation2 + $0xe0] sm:$0xff] }
  0x76   : > { %7171 = vmatpush3.bf16.msk.msra.mxu1 %vm7719_vm5, %v7166_v24  ;;  %v8079_v25 = vrot.slane %v8069_v12, 1  ;;  %v8095_v3 = vrot.slane %v8069_v12, 2 }
  0x79   : > { %514 = vrot.lane.b32.xlu1 %v483_v48, %s7492_s28  ;;  %601 = vrot.lane.b32.xlu0 %v8009_v62, %s7493_s29  ;;  %v8055_v48 = vrot.slane %v8005_v60, 2 }
  0x7b   : > { %v8064_v42 = vsel %vm532_vm7, %v1989_v40, %v8055_v48 }
  0x7d   : > { %603 = vrot.lane.b32.xlu1 %v572_v6, %s7493_s29  ;;  %961 = vrot.lane.b32.xlu0 %v7797_v47, %s7492_s28  ;;  %v1992_v47 = vrot.slane %v1855_v29, 2  ;;  %v8067_v6 = vld [vmem:[#allocation2 + $0xd8] sm:$0xff]  ;;  %v929_v29 = vrot.slane %v878_v0, 1 }
  0x7e   : > { %v1906_v24 = vrot.slane %v8067_v6, 1 }
  0x7f   : > { %v930_v36 = vsel %vm443_vm6, %v7802_v50, %v929_v29 }
  0x80   : > { %v8085_v63 = vsel %vm443_vm6, %v1906_v24, %v8079_v25  ;;  %v8109_v24 = vld [vmem:[#allocation2 + $0xf8] sm:$0xff] }
  0x81   : > { %1941 = vrot.lane.b32.xlu1 %v8043_v32, %s7492_s28  ;;  %963 = vrot.lane.b32.xlu0 %v925_v1, %s7492_s28  ;;  %v1858_v1 = vld [vmem:[#allocation2 + $0xe8] sm:$0x3]  ;;  %10728 = vst [vmem:[#allocation5_spill] sm:$0xff] %v8109_v24 }
  0x82   : > { %v1909_v40 = vrot.slane %v1858_v1, 1 }
  0x85   : > { %1049 = vrot.lane.b32.xlu1 %v7845_v7, %s7493_s29  ;;  %1943 = vrot.lane.b32.xlu0 %v1905_v49, %s7492_s28  ;;  %v1993_v7 = vsel %vm532_vm7, %v8055_v48, %v1992_v47  ;;  %v1994_v49 = vrot.slane %v8067_v6, 2  ;;  %v1910_v47 = vsel %vm443_vm6, %v8079_v25, %v1909_v40 }
  0x87   : > { %v8104_v50 = vsel %vm532_vm7, %v1994_v49, %v8095_v3  ;;  %v1861_v49 = vld [vmem:[#allocation2 + $0x100] sm:$0x3] }
  0x89   : > { %2029 = vrot.lane.b32.xlu1 %v8064_v42, %s7493_s29  ;;  %1051 = vrot.lane.b32.xlu0 %v1013_v23, %s7493_s29  ;;  %v1017_v23 = vrot.slane %v878_v0, 2  ;;  %v881_v0 = vld [vmem:[#allocation2 + $0x58] sm:$0x3] }
  0x8a   : > { %v934_v40 = vrot.slane %v881_v0, 1 }
  0x8b   : > { %v1018_v29 = vsel %vm532_vm7, %v7849_v10, %v1017_v23  ;;  %v1914_v23 = vrot.slane %v1861_v49, 1 }
  0x8d   : > { %2031 = vrot.lane.b32.xlu1 %v1993_v7, %s7493_s29  ;;  %965 = vrot.lane.b32.xlu0 %v7815_v56, %s7492_s28  ;;  %v1997_v56 = vrot.slane %v1858_v1, 2  ;;  %v8107_v7 = vld [vmem:[#allocation2 + $0xf0] sm:$0xff]  ;;  %v8119_v1 = vrot.slane %v8109_v24, 1 }
  0x8e   : > { %10727 = vst [vmem:[#allocation4_spill] sm:$0xff] %v8107_v7 }
  0x91   : > { %1945 = vrot.lane.b32.xlu1 %v8085_v63, %s7492_s28  ;;  %967 = vrot.lane.b32.xlu0 %v930_v36, %s7492_s28  ;;  %v1911_v36 = vrot.slane %v8107_v7, 1 }
  0x93   : > { %v8125_v10 = vsel %vm443_vm6, %v1911_v36, %v8119_v1  ;;  %v1022_v36 = vrot.slane %v881_v0, 2  ;;  %v884_v0 = vld [vmem:[#allocation2 + $0x70] sm:$0x3] }
  0x95   : > { %1053 = vrot.lane.b32.xlu1 %v7864_v16, %s7493_s29  ;;  %1947 = vrot.lane.b32.xlu0 %v1910_v47, %s7492_s28  ;;  %v1998_v16 = vsel %vm532_vm7, %v8095_v3, %v1997_v56  ;;  %v935_v47 = vsel %vm443_vm6, %v7819_v58, %v934_v40  ;;  %v1999_v56 = vrot.slane %v8107_v7, 2  ;;  %v8147_v40 = vld [vmem:[#allocation2 + $0x108] sm:$0xff] }
  0x96   : > { %10731 = vst [vmem:[#allocation8_spill] sm:$0xff] %v8147_v40 }
  0x99   : > { %2033 = vrot.lane.b32.xlu1 %v8104_v50, %s7493_s29  ;;  %1055 = vrot.lane.b32.xlu0 %v1018_v29, %s7493_s29  ;;  %v8135_v29 = vrot.slane %v8109_v24, 2  ;;  %v8149_v24 = vld [vmem:[#allocation2 + $0x110] sm:$0xff] }
  0x9a   : > { %10732 = vst [vmem:[#allocation9_spill] sm:$0xff] %v8149_v24 }
  0x9b   : > { %10729 = vst [vmem:[#allocation6_spill] sm:$0xff] %v8135_v29  ;;  %v8144_v58 = vsel %vm532_vm7, %v1999_v56, %v8135_v29  ;;  %v939_v56 = vrot.slane %v884_v0, 1 }
  0x9c   : > { %10730 = vst [vmem:[#allocation7_spill] sm:$0xff] %v8144_v58 }
  0x9d   : > { %2035 = vrot.lane.b32.xlu1 %v1998_v16, %s7493_s29  ;;  %969 = vrot.lane.b32.xlu0 %v7828_v61, %s7492_s28  ;;  %v1915_v16 = vsel %vm443_vm6, %v8119_v1, %v1914_v23  ;;  %v2002_v61 = vrot.slane %v1861_v49, 2  ;;  %v1916_v23 = vrot.slane %v8147_v40, 1  ;;  %v8159_v49 = vrot.slane %v8149_v24, 1 }
  0x9f   : > { %10733 = vst [vmem:[#allocation10_spill] sm:$0xff] %v8159_v49 }
  0xa1   : > { %1949 = vrot.lane.b32.xlu1 %v8125_v10, %s7492_s28  ;;  %971 = vrot.lane.b32.xlu0 %v935_v47, %s7492_s28  ;;  %v1023_v47 = vsel %vm532_vm7, %v7868_v18, %v1022_v36  ;;  %v8165_v18 = vsel %vm443_vm6, %v1916_v23, %v8159_v49  ;;  %v940_v36 = vsel %vm443_vm6, %v7889_v28, %v939_v56 }
  0xa2   : > { %10734 = vst [vmem:[#allocation11_spill] sm:$0xff] %v8165_v18 }
  0xa5   : > { %1057 = vrot.lane.b32.xlu1 %v7885_v26, %s7493_s29  ;;  %1951 = vrot.lane.b32.xlu0 %v1915_v16, %s7492_s28  ;;  %v2003_v26 = vsel %vm532_vm7, %v8135_v29, %v2002_v61  ;;  %v1864_v16 = vld [vmem:[#allocation2 + $0x118] sm:$0x3]  ;;  %v2004_v29 = vrot.slane %v8147_v40, 2  ;;  %v8189_v40 = vld [vmem:[#allocation2 + $0x128] sm:$0xff] }
  0xa6   : > { %v1919_v61 = vrot.slane %v1864_v16, 1  ;;  %10736 = vst [vmem:[#allocation13_spill] sm:$0xff] %v8189_v40 }
  0xa8   : > { %v1920_v23 = vsel %vm443_vm6, %v8159_v49, %v1919_v61 }
  0xa9   : > { %2037 = vrot.lane.b32.xlu1 %v8144_v58, %s7493_s29  ;;  %1059 = vrot.lane.b32.xlu0 %v1023_v47, %s7493_s29 }
  0xad   : > { %2039 = vrot.lane.b32.xlu1 %v2003_v26, %s7493_s29  ;;  %973 = vrot.lane.b32.xlu0 %v7898_v31, %s7492_s28  ;;  %v8175_v26 = vrot.slane %v8149_v24, 2  ;;  %v1027_v31 = vrot.slane %v884_v0, 2  ;;  %v8187_v24 = vld [vmem:[#allocation2 + $0x120] sm:$0xff] }
  0xae   : > { %10735 = vst [vmem:[#allocation12_spill] sm:$0xff] %v8187_v24 }
  0xaf   : > { %v485_v7 = vpop.permute.xlu0 %484  ;;  %v8184_v56 = vsel %vm532_vm7, %v2004_v29, %v8175_v26 }
  0xb0   : > { %v621_v29 = vsel %vm225_vm0, %v7737_v11, %v485_v7 }
  0xb1   : > { %1953 = vrot.lane.b32.xlu1 %v8165_v18, %s7492_s28  ;;  %975 = vrot.lane.b32.xlu0 %v940_v36, %s7492_s28  ;;  %v2007_v18 = vrot.slane %v1864_v16, 2  ;;  %v887_v16 = vld [vmem:[#allocation2 + $0x88] sm:$0x3] }
  0xb3   : > { %v576_v47 = vpop.permute.xlu1 %575  ;;  %v487_v28 = vpop.permute.xlu0 %486 }
  0xb4   : > { %v622_v36 = vsel %vm225_vm0, %v7728_v8, %v487_v28  ;;  %v1921_v8 = vrot.slane %v8187_v24, 1  ;;  %v8204_v28 = vrot.slane %v8189_v40, 1 }
  0xb5   : > { %1061 = vrot.lane.b32.xlu1 %v7915_v41, %s7493_s29  ;;  %1955 = vrot.lane.b32.xlu0 %v1920_v23, %s7492_s28  ;;  %v1028_v41 = vsel %vm532_vm7, %v7902_v33, %v1027_v31  ;;  %v2008_v23 = vsel %vm532_vm7, %v8175_v26, %v2007_v18  ;;  %v639_v11 = vsel %vm637_vm8, %v622_v36, %v576_v47  ;;  %v944_v33 = vrot.slane %v887_v16, 1  ;;  %v1867_v31 = vld [vmem:[#allocation2 + $0x130] sm:$0x3] }
  0xb6   : > { %v8216_v18 = vsel %vm443_vm6, %v1921_v8, %v8204_v28  ;;  %v1924_v36 = vrot.slane %v1867_v31, 1 }
  0xb7   : > { %v489_v58 = vpop.permute.xlu1 %488  ;;  %v574_v0 = vpop.permute.xlu0 %573  ;;  %v945_v47 = vsel %vm443_vm6, %v7919_v46, %v944_v33 }
  0xb8   : > { %v638_v61 = vsel %vm637_vm8, %v621_v29, %v574_v0  ;;  %v2009_v0 = vrot.slane %v8187_v24, 2  ;;  %v623_v46 = vsel %vm225_vm0, %v7779_v38, %v489_v58  ;;  %v8244_v58 = vld [vmem:[#allocation2 + $0x138] sm:$0xff] }
  0xb9   : > { %2041 = vrot.lane.b32.xlu1 %v8184_v56, %s7493_s29  ;;  %6816 = vmatprep.mubr.msk.f32.mxu0 %vm656_vm9, %v638_v61 }
  0xba   : > { %1063 = vrot.lane.b32.xlu0 %v1028_v41, %s7493_s29  ;;  %6817 = vmatmul.mubr.msk.f32.vlgmr.msra.gmra.mrb[0].mxu0 %vm656_vm9, %v639_v11 }
  0xbb   : > { %v491_v49 = vpop.permute.xlu1 %490  ;;  %v493_v7 = vpop.permute.xlu0 %492  ;;  %7159 = vmatpush3.bf16.msk.msra.mxu0 %vm7719_vm5, %v8027_v15  ;;  %v8226_v15 = vrot.slane %v8189_v40, 2  ;;  %v2012_v40 = vrot.slane %v1867_v31, 2 }
  0xbc   : > { %v625_v31 = vsel %vm225_vm0, %v7790_v44, %v493_v7 }
  0xbd   : > { %2043 = vrot.lane.b32.xlu1 %v2008_v23, %s7493_s29  ;;  %v1925_v23 = vsel %vm443_vm6, %v8204_v28, %v1924_v36  ;;  %v8238_v33 = vsel %vm532_vm7, %v2009_v0, %v8226_v15  ;;  %v890_v0 = vld [vmem:[#allocation2 + $0xa0] sm:$0x3] }
  0xbe   : > { %977 = vrot.lane.b32.xlu0 %v7928_v53, %s7492_s28  ;;  %v1032_v53 = vrot.slane %v887_v16, 2  ;;  %v8246_v16 = vld [vmem:[#allocation2 + $0x140] sm:$0xff] }
  0xbf   : > { %v495_v29 = vpop.permute.xlu1 %494  ;;  %v497_v41 = vpop.permute.xlu0 %496 }
  0xc0   : > { %v1033_v36 = vsel %vm532_vm7, %v7932_v55, %v1032_v53  ;;  %v626_v55 = vsel %vm225_vm0, %v7792_v45, %v495_v29 }
  0xc1   : > { %1957 = vrot.lane.b32.xlu1 %v8216_v18, %s7492_s28 }
  0xc2   : > { %979 = vrot.lane.b32.xlu0 %v945_v47, %s7492_s28  ;;  %v624_v47 = vsel %vm225_vm0, %v7781_v39, %v491_v49 }
  0xc3   : > { %v499_v61 = vpop.permute.xlu1 %498  ;;  %v578_v8 = vpop.permute.xlu0 %577 }
  0xc4   : > { %v640_v11 = vsel %vm637_vm8, %v623_v46, %v578_v8  ;;  %v2013_v46 = vsel %vm532_vm7, %v8226_v15, %v2012_v40  ;;  %v8261_v8 = vrot.slane %v8246_v16, 1 }
  0xc5   : > { %1065 = vrot.lane.b32.xlu1 %v7949_v5, %s7493_s29  ;;  %6819 = vmatprep.mubr.msk.f32.mxu0 %vm656_vm9, %v640_v11  ;;  %v949_v11 = vrot.slane %v890_v0, 1 }
  0xc6   : > { %1959 = vrot.lane.b32.xlu0 %v1925_v23, %s7492_s28 }
  0xc7   : > { %v580_v24 = vpop.permute.xlu1 %579  ;;  %v582_v49 = vpop.permute.xlu0 %581 }
  0xc8   : > { %v641_v5 = vsel %vm637_vm8, %v624_v47, %v580_v24  ;;  %v642_v23 = vsel %vm637_vm8, %v625_v31, %v582_v49  ;;  %v1926_v24 = vrot.slane %v8244_v58, 1  ;;  %v627_v47 = vsel %vm225_vm0, %v7806_v51, %v497_v41 }
  0xc9   : > { %2045 = vrot.lane.b32.xlu1 %v8238_v33, %s7493_s29  ;;  %6820 = vmatmul.mubr.msk.f32.gmra.mrb[2].mxu0 %vm656_vm9, %v641_v5  ;;  %v1870_v5 = vld [vmem:[#allocation2 + $0x148] sm:$0x3]  ;;  %v950_v41 = vsel %vm443_vm6, %v7953_v9, %v949_v11 }
  0xca   : > { %1067 = vrot.lane.b32.xlu0 %v1033_v36, %s7493_s29  ;;  %6822 = vmatprep.mubr.msk.f32.mxu0 %vm656_vm9, %v642_v23  ;;  %v8275_v29 = vsel %vm443_vm6, %v1926_v24, %v8261_v8  ;;  %v628_v36 = vsel %vm225_vm0, %v7808_v52, %v499_v61  ;;  %v1929_v23 = vrot.slane %v1870_v5, 1  ;;  %v2014_v52 = vrot.slane %v8244_v58, 2 }
  0xcb   : > { %v584_v7 = vpop.permute.xlu1 %583  ;;  %v586_v40 = vpop.permute.xlu0 %585  ;;  %v8290_v61 = vrot.slane %v8246_v16, 2 }
  0xcc   : > { %v643_v53 = vsel %vm637_vm8, %v626_v55, %v584_v7  ;;  %v644_v31 = vsel %vm637_vm8, %v627_v47, %v586_v40  ;;  %v1930_v24 = vsel %vm443_vm6, %v8261_v8, %v1929_v23  ;;  %v1037_v55 = vrot.slane %v890_v0, 2  ;;  %v8310_v0 = vld [vmem:[#allocation2 + $0x158] sm:$0xff] }
  0xcd   : > { %2047 = vrot.lane.b32.xlu1 %v2013_v46, %s7493_s29  ;;  %6823 = vmatmul.mubr.msk.f32.gmra.mrb[4].mxu0 %vm656_vm9, %v643_v53  ;;  %v8302_v11 = vsel %vm532_vm7, %v2014_v52, %v8290_v61  ;;  %v2017_v47 = vrot.slane %v1870_v5, 2  ;;  %v893_v5 = vld [vmem:[#allocation2 + $0xb8] sm:$0x3] }
  0xce   : > { %981 = vrot.lane.b32.xlu0 %v7962_v14, %s7492_s28  ;;  %6825 = vmatprep.mubr.msk.f32.mxu0 %vm656_vm9, %v644_v31 }
  0xcf   : > { %v588_v49 = vpop.permute.xlu1 %587  ;;  %v501_v46 = vpop.permute.xlu0 %500 }
  0xd0   : > { %v645_v51 = vsel %vm637_vm8, %v628_v36, %v588_v49  ;;  %v629_v9 = vsel %vm225_vm0, %v7870_v19, %v501_v46  ;;  %v8308_v19 = vld [vmem:[#allocation2 + $0x150] sm:$0xff]  ;;  %v1038_v36 = vsel %vm532_vm7, %v7966_v17, %v1037_v55  ;;  %v2018_v49 = vsel %vm532_vm7, %v8290_v61, %v2017_v47 }
  0xd1   : > { %1961 = vrot.lane.b32.xlu1 %v8275_v29, %s7492_s28  ;;  %6826 = vmatmul.mubr.msk.f32.gmra.mrb[6].mxu0 %vm656_vm9, %v645_v51  ;;  %v1931_v51 = vrot.slane %v8308_v19, 1  ;;  %v954_v46 = vrot.slane %v893_v5, 1 }
  0xd2   : > { %983 = vrot.lane.b32.xlu0 %v950_v41, %s7492_s28  ;;  %v8322_v41 = vrot.slane %v8310_v0, 1 }
  0xd3   : > { %v503_v14 = vpop.permute.xlu1 %502  ;;  %v590_v7 = vpop.permute.xlu0 %589 }
  0xd4   : > { %v646_v53 = vsel %vm637_vm8, %v629_v9, %v590_v7  ;;  %v630_v40 = vsel %vm225_vm0, %v7873_v20, %v503_v14  ;;  %v1873_v14 = vld [vmem:[#allocation2 + $0x160] sm:$0x3]  ;;  %v8331_v55 = vsel %vm443_vm6, %v1931_v51, %v8322_v41  ;;  %v345_v51 = vld [vmem:[%s7717_s27 + $0xf8] sm:$0xff] }
  0xd5   : > { %1069 = vrot.lane.b32.xlu1 %v7979_v27, %s7493_s29  ;;  %6828 = vmatprep.mubr.msk.f32.mxu0 %vm656_vm9, %v646_v53  ;;  %v955_v53 = vsel %vm443_vm6, %v7983_v30, %v954_v46  ;;  %v1934_v47 = vrot.slane %v1873_v14, 1  ;;  %378 = vst.msk [vmem:[#allocation2 + $0x189] sm:$0xff] %vm225_vm0, %v345_v51 }
  0xd6   : > { %1963 = vrot.lane.b32.xlu0 %v1930_v24, %s7492_s28 }
  0xd7   : > { %v592_v31 = vpop.permute.xlu1 %591  ;;  %v505_v20 = vpop.permute.xlu0 %504 }
  0xd8   : > { %v647_v27 = vsel %vm637_vm8, %v630_v40, %v592_v31  ;;  %v631_v17 = vsel %vm225_vm0, %v7905_v34, %v505_v20  ;;  %v2019_v40 = vrot.slane %v8308_v19, 2 }
  0xd9   : > { %2049 = vrot.lane.b32.xlu1 %v8302_v11, %s7493_s29  ;;  %6829 = vmatmul.mubr.msk.f32.gmra.mrb[8].mxu0 %vm656_vm9, %v647_v27  ;;  %v1935_v27 = vsel %vm443_vm6, %v8322_v41, %v1934_v47 }
  0xda   : > { %1071 = vrot.lane.b32.xlu0 %v1038_v36, %s7493_s29  ;;  %v1042_v36 = vrot.slane %v893_v5, 2 }
  0xdb   : > { %v507_v23 = vpop.permute.xlu1 %506  ;;  %v594_v52 = vpop.permute.xlu0 %593 }
  0xdc   : > { %v648_v24 = vsel %vm637_vm8, %v631_v17, %v594_v52  ;;  %v632_v9 = vsel %vm225_vm0, %v7907_v35, %v507_v23  ;;  %v2022_v17 = vrot.slane %v1873_v14, 2  ;;  %v8370_v52 = vld [vmem:[#allocation2 + $0x170] sm:$0xff]  ;;  %v1043_v14 = vsel %vm532_vm7, %v7996_v43, %v1042_v36 }
  0xdd   : > { %2051 = vrot.lane.b32.xlu1 %v2018_v49, %s7493_s29  ;;  %6831 = vmatprep.mubr.msk.f32.mxu0 %vm656_vm9, %v648_v24  ;;  %v344_v49 = vld [vmem:[%s7717_s27 + $0xf0] sm:$0xff] }
  0xde   : > { %985 = vrot.lane.b32.xlu0 %v7992_v37, %s7492_s28  ;;  %v8346_v37 = vrot.slane %v8310_v0, 2  ;;  %377 = vst.msk [vmem:[#allocation2 + $0x181] sm:$0xff] %vm225_vm0, %v344_v49 }
  0xdf   : > { %v596_v7 = vpop.permute.xlu1 %595  ;;  %v509_v35 = vpop.permute.xlu0 %508 }
  0xe0   : > { %v649_v34 = vsel %vm637_vm8, %v632_v9, %v596_v7  ;;  %v633_v30 = vsel %vm225_vm0, %v7934_v57, %v509_v35  ;;  %v8360_v46 = vsel %vm532_vm7, %v2019_v40, %v8346_v37  ;;  %v896_v9 = vld [vmem:[#allocation2 + $0xd0] sm:$0x3]  ;;  %v2023_v7 = vsel %vm532_vm7, %v8346_v37, %v2022_v17 }
  0xe1   : > { %1965 = vrot.lane.b32.xlu1 %v8331_v55, %s7492_s28  ;;  %6832 = vmatmul.mubr.msk.f32.gmra.mrb[10].mxu0 %vm656_vm9, %v649_v34  ;;  %v959_v35 = vrot.slane %v896_v9, 1  ;;  %v8406_v17 = vrot.slane %v8370_v52, 2 }
  0xe2   : > { %987 = vrot.lane.b32.xlu0 %v955_v53, %s7492_s28  ;;  %v8382_v53 = vrot.slane %v8370_v52, 1 }
  0xe3   : > { %v511_v31 = vpop.permute.xlu1 %510  ;;  %v598_v20 = vpop.permute.xlu0 %597  ;;  %v960_v49 = vsel %vm443_vm6, %v8024_v13, %v959_v35 }
  0xe4   : > { %v650_v23 = vsel %vm637_vm8, %v633_v30, %v598_v20  ;;  %v634_v57 = vsel %vm225_vm0, %v7937_v59, %v511_v31  ;;  %v1876_v31 = vld [vmem:[#allocation2 + $0x178] sm:$0x3] }
  0xe5   : > { %1073 = vrot.lane.b32.xlu1 %v8009_v62, %s7493_s29  ;;  %6834 = vmatprep.mubr.msk.f32.mxu0 %vm656_vm9, %v650_v23  ;;  %v8368_v62 = vld [vmem:[#allocation2 + $0x168] sm:$0xff]  ;;  %v1939_v51 = vrot.slane %v1876_v31, 1 }
  0xe6   : > { %1967 = vrot.lane.b32.xlu0 %v1935_v27, %s7492_s28  ;;  %v1936_v34 = vrot.slane %v8368_v62, 1 }
  0xe7   : > { %v600_v5 = vpop.permute.xlu1 %599  ;;  %v513_v59 = vpop.permute.xlu0 %512 }
  0xe8   : > { %v651_v24 = vsel %vm637_vm8, %v634_v57, %v600_v5  ;;  %v635_v43 = vsel %vm225_vm0, %v7969_v21, %v513_v59  ;;  %v8391_v36 = vsel %vm443_vm6, %v1936_v34, %v8382_v53  ;;  %v1940_v57 = vsel %vm443_vm6, %v8382_v53, %v1939_v51 }
  0xe9   : > { %2053 = vrot.lane.b32.xlu1 %v8360_v46, %s7493_s29  ;;  %6835 = vmatmul.mubr.msk.f32.gmra.mrb[12].mxu0 %vm656_vm9, %v651_v24  ;;  %v1047_v5 = vrot.slane %v896_v9, 2  ;;  %v8413_v24 = vld [vmem:[#allocation2 + $0x30] sm:$0xff] }
  0xea   : > { %1075 = vrot.lane.b32.xlu0 %v1043_v14, %s7493_s29  ;;  %v8415_v14 = vld [vmem:[#allocation2 + $0x38] sm:$0xff]  ;;  %v1395_v35 = vrot.slane %v8413_v24, 1 }
  0xeb   : > { %v515_v47 = vpop.permute.xlu1 %514  ;;  %v602_v40 = vpop.permute.xlu0 %601 }
  0xec   : > { %v652_v27 = vsel %vm637_vm8, %v635_v43, %v602_v40  ;;  %v636_v30 = vsel %vm225_vm0, %v7971_v22, %v515_v47  ;;  %v2024_v22 = vrot.slane %v8368_v62, 2  ;;  %v1396_v43 = vrot.slane %v8415_v14, 1 }
  0xed   : > { %2055 = vrot.lane.b32.xlu1 %v2023_v7, %s7493_s29  ;;  %6837 = vmatprep.mubr.msk.f32.mxu0 %vm656_vm9, %v652_v27  ;;  %v2027_v7 = vrot.slane %v1876_v31, 2  ;;  %v1349_v31 = vld [vmem:[#allocation2 + $0x40] sm:$0x3] }
  0xee   : > { %989 = vrot.lane.b32.xlu0 %v8043_v32, %s7492_s28  ;;  %v8419_v59 = vsel %vm532_vm7, %v2024_v22, %v8406_v17  ;;  %v1397_v22 = vsel %vm443_vm6, %v1395_v35, %v1396_v43 }
  0xef   : > { %v604_v20 = vpop.permute.xlu1 %603  ;;  %v962_v23 = vpop.permute.xlu0 %961  ;;  %v2028_v27 = vsel %vm532_vm7, %v8406_v17, %v2027_v7 }
  0xf0   : > { %v653_v21 = vsel %vm637_vm8, %v636_v30, %v604_v20  ;;  %v1097_v34 = vsel %vm225_vm0, %v7779_v38, %v962_v23  ;;  %v8435_v38 = vld [vmem:[%s10674_s1 + $0x20] sm:$0xff]  ;;  %v6413_v20 = vld [vmem:[%s10674_s1 + $0x18] sm:$0xf] }
  0xf1   : > { %1969 = vrot.lane.b32.xlu1 %v8391_v36, %s7492_s28  ;;  %6838 = vmatmul.mubr.msk.f32.gmra.mrb[14].mxu0 %vm656_vm9, %v653_v21  ;;  %v7172_v51 = vpack.c.bf16 %v6413_v20, %v8015_v2  ;;  %v1483_v2 = vrot.slane %v8413_v24, 2 }
  0xf2   : > { %991 = vrot.lane.b32.xlu0 %v960_v49, %s7492_s28 }
  0xf3   : > { %v1942_v32 = vpop.permute.xlu1 %1941  ;;  %v964_v13 = vpop.permute.xlu0 %963  ;;  %7174 = vmatprep.subr.msk.bf16.mxu1 %vm7719_vm5, %v7172_v51 }
  0xf4   : > { %v2077_v21 = vsel %vm225_vm0, %v8003_v54, %v1942_v32  ;;  %v2328_v32 = vld [vmem:[#allocation2 + $0xe8] sm:$0x3] }
  0xf5   : > { %1077 = vrot.lane.b32.xlu1 %v8064_v42, %s7493_s29  ;;  %v1048_v42 = vsel %vm532_vm7, %v8055_v48, %v1047_v5  ;;  %v6377_v48 = vld [vmem:[%s10674_s1 + $0x28] sm:$0xf]  ;;  %v1098_v5 = vsel %vm225_vm0, %v7781_v39, %v964_v13  ;;  %v2465_v20 = vrot.slane %v2328_v32, 2 }
  0xf6   : > { %1971 = vrot.lane.b32.xlu0 %v1940_v57, %s7492_s28  ;;  %v7160_v30 = vpack.c.bf16 %v6377_v48, %v8435_v38  ;;  %v1398_v57 = vrot.slane %v1349_v31, 1  ;;  %v1486_v48 = vrot.slane %v1349_v31, 2 }
  0xf7   : > { %v1050_v47 = vpop.permute.xlu1 %1049  ;;  %v1944_v40 = vpop.permute.xlu0 %1943 }
  0xf8   : > { %v1113_v9 = vsel %vm637_vm8, %v1097_v34, %v1050_v47  ;;  %7162 = vmatprep.subr.msk.bf16.mxu0 %vm7719_vm5, %v7160_v30  ;;  %v1484_v34 = vrot.slane %v8415_v14, 2  ;;  %v2078_v47 = vsel %vm225_vm0, %v8005_v60, %v1944_v40  ;;  %v1399_v13 = vsel %vm443_vm6, %v1396_v43, %v1398_v57  ;;  %v1352_v57 = vld [vmem:[#allocation2 + $0x58] sm:$0x3] }
  0xf9   : > { %2057 = vrot.lane.b32.xlu1 %v8419_v59, %s7493_s29  ;;  %6844 = vmatprep.mubr.msk.f32.mxu0 %vm656_vm9, %v1113_v9 }
  0xfa   : > { %1079 = vrot.lane.b32.xlu0 %v1048_v42, %s7493_s29  ;;  %v2377_v42 = vrot.slane %v2328_v32, 1  ;;  %v1485_v60 = vsel %vm532_vm7, %v1483_v2, %v1484_v34  ;;  %v1403_v2 = vrot.slane %v1352_v57, 1 }
  0xfb   : > { %v2030_v49 = vpop.permute.xlu1 %2029  ;;  %v1052_v54 = vpop.permute.xlu0 %1051 }
  0xfc   : > { %v2093_v23 = vsel %vm637_vm8, %v2077_v21, %v2030_v49  ;;  %v1114_v7 = vsel %vm637_vm8, %v1098_v5, %v1052_v54  ;;  %v2378_v43 = vsel %vm443_vm6, %v8079_v25, %v2377_v42 }
  0xfd   : > { %2059 = vrot.lane.b32.xlu1 %v2028_v27, %s7493_s29  ;;  %6900 = vmatprep.mubr.msk.f32.mxu1 %vm656_vm9, %v2093_v23  ;;  %v1487_v23 = vsel %vm532_vm7, %v1484_v34, %v1486_v48  ;;  %v1491_v48 = vrot.slane %v1352_v57, 2  ;;  %v10737_v57 = vld [vmem:[#allocation7_spill] sm:$0xff] }
  0xfe   : > { %1435 = vrot.lane.b32.xlu0 %v1397_v22, %s7492_s28  ;;  %6845 = vmatmul.mubr.msk.f32.vlgmr.msra.gmra.mrb[0].mxu0 %vm656_vm9, %v1114_v7 }
  0xff   : > { %v2032_v9 = vpop.permute.xlu1 %2031  ;;  %7165 = vmatpush3.bf16.msk.msra.mxu0 %vm7719_vm5, %v7160_v30  ;;  %v966_v35 = vpop.permute.xlu0 %965  ;;  %v8481_v30 = vld [vmem:[#allocation2 + $0x48] sm:$0xff] }
 0x100   : > { %v2094_v39 = vsel %vm637_vm8, %v2078_v47, %v2032_v9  ;;  %v1099_v21 = vsel %vm225_vm0, %v7790_v44, %v966_v35  ;;  %v1400_v25 = vrot.slane %v8481_v30, 1  ;;  %v2466_v44 = vsel %vm532_vm7, %v8095_v3, %v2465_v20  ;;  %v2331_v3 = vld [vmem:[#allocation2 + $0x100] sm:$0x3] }
 0x101   : > { %2414 = vrot.lane.b32.xlu1 %v8085_v63, %s7492_s28  ;;  %6901 = vmatmul.mubr.msk.f32.vlgmr.msra.gmra.mrb[0].mxu1 %vm656_vm9, %v2094_v39  ;;  %v8483_v63 = vld [vmem:[#allocation2 + $0x50] sm:$0xff]  ;;  %v2382_v35 = vrot.slane %v2331_v3, 1  ;;  %v8523_v20 = vld [vmem:[#allocation2 + $0x60] sm:$0xff] }
 0x102   : > { %7177 = vmatpush3.bf16.msk.msra.mxu1 %vm7719_vm5, %v7172_v51  ;;  %1437 = vrot.lane.b32.xlu0 %v1399_v13, %s7492_s28  ;;  %v1401_v31 = vrot.slane %v8483_v63, 1  ;;  %v1489_v9 = vrot.slane %v8483_v63, 2 }
 0x103   : > { %v1946_v40 = vpop.permute.xlu1 %1945  ;;  %v968_v27 = vpop.permute.xlu0 %967 }
 0x104   : > { %v2079_v5 = vsel %vm225_vm0, %v8067_v6, %v1946_v40  ;;  %v1402_v7 = vsel %vm443_vm6, %v1400_v25, %v1401_v31  ;;  %v1488_v6 = vrot.slane %v8481_v30, 2  ;;  %v1404_v42 = vsel %vm443_vm6, %v1401_v31, %v1403_v2 }
 0x105   : > { %1523 = vrot.lane.b32.xlu1 %v1485_v60, %s7493_s29  ;;  %v1492_v31 = vsel %vm532_vm7, %v1489_v9, %v1491_v48 }
 0x106   : > { %2416 = vrot.lane.b32.xlu0 %v2378_v43, %s7492_s28  ;;  %v1490_v40 = vsel %vm532_vm7, %v1488_v6, %v1489_v9  ;;  %v7425_v6 = vld [vmem:[#allocation2 + $0x50] sm:$0xff] }
 0x107   : > { %v1054_v49 = vpop.permute.xlu1 %1053  ;;  %v1948_v22 = vpop.permute.xlu0 %1947 }
 0x108   : > { %v1115_v51 = vsel %vm637_vm8, %v1099_v21, %v1054_v49  ;;  %v2080_v39 = vsel %vm225_vm0, %v8069_v12, %v1948_v22  ;;  %v2383_v12 = vsel %vm443_vm6, %v8119_v1, %v2382_v35  ;;  %v8525_v21 = vld [vmem:[#allocation2 + $0x68] sm:$0xff]  ;;  %v1405_v1 = vrot.slane %v8523_v20, 1 }
 0x109   : > { %2502 = vrot.lane.b32.xlu1 %v8104_v50, %s7493_s29  ;;  %6847 = vmatprep.mubr.msk.f32.mxu0 %vm656_vm9, %v1115_v51  ;;  %v1100_v50 = vsel %vm225_vm0, %v7792_v45, %v968_v27  ;;  %v7424_v49 = vld [vmem:[#allocation2 + $0x48] sm:$0xff]  ;;  %v1406_v22 = vrot.slane %v8525_v21, 1  ;;  %v1494_v35 = vrot.slane %v8525_v21, 2 }
 0x10a   : > { %1525 = vrot.lane.b32.xlu0 %v1487_v23, %s7493_s29 }
 0x10b   : > { %v2034_v54 = vpop.permute.xlu1 %2033  ;;  %v1056_v34 = vpop.permute.xlu0 %1055 }
 0x10c   : > { %v2095_v32 = vsel %vm637_vm8, %v2079_v5, %v2034_v54  ;;  %v1116_v47 = vsel %vm637_vm8, %v1100_v50, %v1056_v34  ;;  %v1355_v5 = vld [vmem:[#allocation2 + $0x70] sm:$0x3] }
 0x10d   : > { %2504 = vrot.lane.b32.xlu1 %v2466_v44, %s7493_s29  ;;  %6903 = vmatprep.mubr.msk.f32.mxu1 %vm656_vm9, %v2095_v32  ;;  %v10738_v54 = vld [vmem:[#allocation6_spill] sm:$0xff] }
 0x10e   : > { %1439 = vrot.lane.b32.xlu0 %v1402_v7, %s7492_s28  ;;  %6848 = vmatmul.mubr.msk.f32.gmra.mrb[2].mxu0 %vm656_vm9, %v1116_v47  ;;  %v10739_v7 = vld [vmem:[#allocation4_spill] sm:$0xff]  ;;  %v1408_v47 = vrot.slane %v1355_v5, 1 }
 0x10f   : > { %v2036_v13 = vpop.permute.xlu1 %2035  ;;  %v970_v60 = vpop.permute.xlu0 %969 }
 0x110   : > { %v2096_v45 = vsel %vm637_vm8, %v2080_v39, %v2036_v13  ;;  %v1101_v51 = vsel %vm225_vm0, %v7424_v49, %v970_v60  ;;  %v2334_v13 = vld [vmem:[#allocation2 + $0x118] sm:$0x3]  ;;  %v10740_v60 = vld [vmem:[#allocation5_spill] sm:$0xff]  ;;  %v1409_v48 = vsel %vm443_vm6, %v1406_v22, %v1408_v47 }
 0x111   : > { %2418 = vrot.lane.b32.xlu1 %v8125_v10, %s7492_s28  ;;  %6904 = vmatmul.mubr.msk.f32.gmra.mrb[2].mxu1 %vm656_vm9, %v2096_v45  ;;  %v2470_v10 = vrot.slane %v2331_v3, 2  ;;  %v1407_v3 = vsel %vm443_vm6, %v1405_v1, %v1406_v22  ;;  %v1496_v1 = vrot.slane %v1355_v5, 2  ;;  %v8563_v22 = vld [vmem:[#allocation2 + $0x78] sm:$0xff] }
 0x112   : > { %1441 = vrot.lane.b32.xlu0 %v1404_v42, %s7492_s28  ;;  %v1493_v42 = vrot.slane %v8523_v20, 2  ;;  %v1410_v5 = vrot.slane %v8563_v22, 1 }
 0x113   : > { %v1950_v43 = vpop.permute.xlu1 %1949  ;;  %v972_v27 = vpop.permute.xlu0 %971  ;;  %v2471_v32 = vsel %vm532_vm7, %v10738_v54, %v2470_v10  ;;  %v10741_v10 = vld [vmem:[#allocation11_spill] sm:$0xff]  ;;  %v2475_v54 = vrot.slane %v2334_v13, 2 }
 0x114   : > { %v2081_v2 = vsel %vm225_vm0, %v10739_v7, %v1950_v43  ;;  %v1102_v9 = vsel %vm225_vm0, %v7425_v6, %v972_v27  ;;  %v2387_v27 = vrot.slane %v2334_v13, 1  ;;  %v1358_v6 = vld [vmem:[#allocation2 + $0x88] sm:$0x3] }
 0x115   : > { %1527 = vrot.lane.b32.xlu1 %v1490_v40, %s7493_s29 }
 0x116   : > { %2420 = vrot.lane.b32.xlu0 %v2383_v12, %s7492_s28 }
 0x117   : > { %v1058_v23 = vpop.permute.xlu1 %1057  ;;  %v1952_v44 = vpop.permute.xlu0 %1951 }
 0x118   : > { %v1117_v25 = vsel %vm637_vm8, %v1101_v51, %v1058_v23  ;;  %v2082_v40 = vsel %vm225_vm0, %v10740_v60, %v1952_v44  ;;  %v1495_v51 = vsel %vm532_vm7, %v1493_v42, %v1494_v35  ;;  %v8565_v44 = vld [vmem:[#allocation2 + $0x80] sm:$0xff]  ;;  %v1413_v60 = vrot.slane %v1358_v6, 1 }
 0x119   : > { %2506 = vrot.lane.b32.xlu1 %v10737_v57, %s7493_s29  ;;  %6850 = vmatprep.mubr.msk.f32.mxu0 %vm656_vm9, %v1117_v25  ;;  %v10742_v25 = vld [vmem:[#allocation10_spill] sm:$0xff] }
 0x11a   : > { %1529 = vrot.lane.b32.xlu0 %v1492_v31, %s7493_s29  ;;  %v2388_v31 = vsel %vm443_vm6, %v10742_v25, %v2387_v27  ;;  %v1499_v27 = vrot.slane %v8565_v44, 2 }
 0x11b   : > { %v2038_v50 = vpop.permute.xlu1 %2037  ;;  %v1060_v39 = vpop.permute.xlu0 %1059 }
 0x11c   : > { %v2097_v34 = vsel %vm637_vm8, %v2081_v2, %v2038_v50  ;;  %v1118_v45 = vsel %vm637_vm8, %v1102_v9, %v1060_v39  ;;  %v2476_v9 = vsel %vm532_vm7, %v8175_v26, %v2475_v54  ;;  %v10743_v39 = vld [vmem:[#allocation8_spill] sm:$0xff]  ;;  %v2337_v26 = vld [vmem:[#allocation2 + $0x130] sm:$0x3] }
 0x11d   : > { %2508 = vrot.lane.b32.xlu1 %v2471_v32, %s7493_s29  ;;  %6906 = vmatprep.mubr.msk.f32.mxu1 %vm656_vm9, %v2097_v34  ;;  %v7426_v32 = vld [vmem:[#allocation2 + $0x60] sm:$0xff]  ;;  %v1497_v34 = vsel %vm532_vm7, %v1494_v35, %v1496_v1 }
 0x11e   : > { %1443 = vrot.lane.b32.xlu0 %v1407_v3, %s7492_s28  ;;  %6851 = vmatmul.mubr.msk.f32.gmra.mrb[4].mxu0 %vm656_vm9, %v1118_v45  ;;  %v1411_v3 = vrot.slane %v8565_v44, 1 }
 0x11f   : > { %v2040_v43 = vpop.permute.xlu1 %2039  ;;  %v974_v49 = vpop.permute.xlu0 %973 }
 0x120   : > { %v2098_v12 = vsel %vm637_vm8, %v2082_v40, %v2040_v43  ;;  %v1103_v7 = vsel %vm225_vm0, %v7426_v32, %v974_v49  ;;  %v1412_v35 = vsel %vm443_vm6, %v1410_v5, %v1411_v3  ;;  %v7427_v40 = vld [vmem:[#allocation2 + $0x68] sm:$0xff]  ;;  %v1414_v25 = vsel %vm443_vm6, %v1411_v3, %v1413_v60  ;;  %v7428_v5 = vld [vmem:[#allocation2 + $0x78] sm:$0xff] }
 0x121   : > { %2422 = vrot.lane.b32.xlu1 %v10741_v10, %s7492_s28  ;;  %6907 = vmatmul.mubr.msk.f32.gmra.mrb[4].mxu1 %vm656_vm9, %v2098_v12  ;;  %v10744_v10 = vld [vmem:[#allocation9_spill] sm:$0xff] }
 0x122   : > { %1445 = vrot.lane.b32.xlu0 %v1409_v48, %s7492_s28  ;;  %v1498_v48 = vrot.slane %v8563_v22, 2 }
 0x123   : > { %v1954_v23 = vpop.permute.xlu1 %1953  ;;  %v976_v57 = vpop.permute.xlu0 %975 }
 0x124   : > { %v2083_v13 = vsel %vm225_vm0, %v10743_v39, %v1954_v23 }
 0x125   : > { %1531 = vrot.lane.b32.xlu1 %v1495_v51, %s7493_s29 }
 0x126   : > { %2424 = vrot.lane.b32.xlu0 %v2388_v31, %s7492_s28  ;;  %v2392_v31 = vrot.slane %v2337_v26, 1 }
 0x127   : > { %v1062_v2 = vpop.permute.xlu1 %1061  ;;  %v1956_v47 = vpop.permute.xlu0 %1955 }
 0x128   : > { %v1119_v50 = vsel %vm637_vm8, %v1103_v7, %v1062_v2  ;;  %v2084_v49 = vsel %vm225_vm0, %v10744_v10, %v1956_v47  ;;  %v2393_v32 = vsel %vm443_vm6, %v8204_v28, %v2392_v31  ;;  %v1501_v7 = vrot.slane %v1358_v6, 2 }
 0x129   : > { %2510 = vrot.lane.b32.xlu1 %v8184_v56, %s7493_s29  ;;  %6853 = vmatprep.mubr.msk.f32.mxu0 %vm656_vm9, %v1119_v50  ;;  %v1104_v56 = vsel %vm225_vm0, %v7427_v40, %v976_v57  ;;  %v1500_v57 = vsel %vm532_vm7, %v1498_v48, %v1499_v27  ;;  %v8603_v50 = vld [vmem:[#allocation2 + $0x90] sm:$0xff] }
 0x12a   : > { %1533 = vrot.lane.b32.xlu0 %v1497_v34, %s7493_s29  ;;  %v8605_v34 = vld [vmem:[#allocation2 + $0x98] sm:$0xff]  ;;  %v1502_v39 = vsel %vm532_vm7, %v1499_v27, %v1501_v7  ;;  %v1415_v28 = vrot.slane %v8603_v50, 1  ;;  %v1503_v10 = vrot.slane %v8603_v50, 2 }
 0x12b   : > { %v2042_v45 = vpop.permute.xlu1 %2041  ;;  %v1416_v6 = vrot.slane %v8605_v34, 1 }
 0x12c   : > { %v2099_v42 = vsel %vm637_vm8, %v2083_v13, %v2042_v45  ;;  %v1064_v43 = vpop.permute.xlu0 %1063  ;;  %v1361_v45 = vld [vmem:[#allocation2 + $0xa0] sm:$0x3] }
 0x12d   : > { %2512 = vrot.lane.b32.xlu1 %v2476_v9, %s7493_s29  ;;  %6909 = vmatprep.mubr.msk.f32.mxu1 %vm656_vm9, %v2099_v42  ;;  %v1120_v12 = vsel %vm637_vm8, %v1104_v56, %v1064_v43  ;;  %v1417_v43 = vsel %vm443_vm6, %v1415_v28, %v1416_v6 }
 0x12e   : > { %1447 = vrot.lane.b32.xlu0 %v1412_v35, %s7492_s28  ;;  %6854 = vmatmul.mubr.msk.f32.gmra.mrb[6].mxu0 %vm656_vm9, %v1120_v12  ;;  %v10745_v35 = vld [vmem:[#allocation12_spill] sm:$0xff] }
 0x12f   : > { %v2044_v51 = vpop.permute.xlu1 %2043  ;;  %v7429_v12 = vld [vmem:[#allocation2 + $0x80] sm:$0xff] }
 0x130   : > { %v2100_v23 = vsel %vm637_vm8, %v2084_v49, %v2044_v51  ;;  %v978_v1 = vpop.permute.xlu0 %977  ;;  %v1504_v49 = vrot.slane %v8605_v34, 2  ;;  %v10746_v51 = vld [vmem:[#allocation13_spill] sm:$0xff] }
 0x131   : > { %2426 = vrot.lane.b32.xlu1 %v8216_v18, %s7492_s28  ;;  %6910 = vmatmul.mubr.msk.f32.gmra.mrb[6].mxu1 %vm656_vm9, %v2100_v23  ;;  %v2480_v18 = vrot.slane %v2337_v26, 2  ;;  %v1105_v3 = vsel %vm225_vm0, %v7428_v5, %v978_v1  ;;  %v1418_v26 = vrot.slane %v1361_v45, 1 }
 0x132   : > { %1449 = vrot.lane.b32.xlu0 %v1414_v25, %s7492_s28 }
 0x133   : > { %v1958_v54 = vpop.permute.xlu1 %1957  ;;  %v2481_v42 = vsel %vm532_vm7, %v8226_v15, %v2480_v18  ;;  %v2340_v15 = vld [vmem:[#allocation2 + $0x148] sm:$0x3]  ;;  %v1419_v1 = vsel %vm443_vm6, %v1416_v6, %v1418_v26  ;;  %v1506_v18 = vrot.slane %v1361_v45, 2 }
 0x134   : > { %v980_v2 = vpop.permute.xlu0 %979  ;;  %v2085_v60 = vsel %vm225_vm0, %v10745_v35, %v1958_v54  ;;  %v1364_v35 = vld [vmem:[#allocation2 + $0xb8] sm:$0x3] }
 0x135   : > { %1535 = vrot.lane.b32.xlu1 %v1500_v57, %s7493_s29  ;;  %v2397_v57 = vrot.slane %v2340_v15, 1 }
 0x136   : > { %2428 = vrot.lane.b32.xlu0 %v2393_v32, %s7492_s28  ;;  %v1505_v32 = vsel %vm532_vm7, %v1503_v10, %v1504_v49 }
 0x137   : > { %v1066_v47 = vpop.permute.xlu1 %1065 }
 0x138   : > { %v1121_v9 = vsel %vm637_vm8, %v1105_v3, %v1066_v47  ;;  %v1960_v13 = vpop.permute.xlu0 %1959  ;;  %v8643_v3 = vld [vmem:[#allocation2 + $0xa8] sm:$0xff]  ;;  %v8645_v47 = vld [vmem:[#allocation2 + $0xb0] sm:$0xff] }
 0x139   : > { %2514 = vrot.lane.b32.xlu1 %v8238_v33, %s7493_s29  ;;  %6856 = vmatprep.mubr.msk.f32.mxu0 %vm656_vm9, %v1121_v9  ;;  %v1106_v33 = vsel %vm225_vm0, %v7429_v12, %v980_v2  ;;  %v2086_v23 = vsel %vm225_vm0, %v10746_v51, %v1960_v13  ;;  %v2398_v2 = vsel %vm443_vm6, %v8261_v8, %v2397_v57  ;;  %v7430_v9 = vld [vmem:[#allocation2 + $0x90] sm:$0xff]  ;;  %v1420_v8 = vrot.slane %v8643_v3, 1 }
 0x13a   : > { %1537 = vrot.lane.b32.xlu0 %v1502_v39, %s7493_s29  ;;  %v1507_v13 = vsel %vm532_vm7, %v1504_v49, %v1506_v18  ;;  %v1421_v45 = vrot.slane %v8645_v47, 1  ;;  %v1423_v12 = vrot.slane %v1364_v35, 1  ;;  %v7432_v18 = vld [vmem:[#allocation2 + $0xa8] sm:$0xff] }
 0x13b   : > { %v2046_v40 = vpop.permute.xlu1 %2045 }
 0x13c   : > { %v2101_v56 = vsel %vm637_vm8, %v2085_v60, %v2046_v40  ;;  %v1068_v48 = vpop.permute.xlu0 %1067  ;;  %v1422_v26 = vsel %vm443_vm6, %v1420_v8, %v1421_v45  ;;  %v1367_v8 = vld [vmem:[#allocation2 + $0xd0] sm:$0x3] }
 0x13d   : > { %2516 = vrot.lane.b32.xlu1 %v2481_v42, %s7493_s29  ;;  %6912 = vmatprep.mubr.msk.f32.mxu1 %vm656_vm9, %v2101_v56  ;;  %v1122_v27 = vsel %vm637_vm8, %v1106_v33, %v1068_v48  ;;  %v7431_v33 = vld [vmem:[#allocation2 + $0x98] sm:$0xff] }
 0x13e   : > { %1451 = vrot.lane.b32.xlu0 %v1417_v43, %s7492_s28  ;;  %6857 = vmatmul.mubr.msk.f32.gmra.mrb[8].mxu0 %vm656_vm9, %v1122_v27  ;;  %v1509_v27 = vrot.slane %v8645_v47, 2 }
 0x13f   : > { %v2048_v25 = vpop.permute.xlu1 %2047 }
 0x140   : > { %v2102_v31 = vsel %vm637_vm8, %v2086_v23, %v2048_v25  ;;  %v982_v54 = vpop.permute.xlu0 %981  ;;  %v1424_v23 = vsel %vm443_vm6, %v1421_v45, %v1423_v12 }
 0x141   : > { %2430 = vrot.lane.b32.xlu1 %v8275_v29, %s7492_s28  ;;  %6913 = vmatmul.mubr.msk.f32.gmra.mrb[8].mxu1 %vm656_vm9, %v2102_v31  ;;  %v2485_v29 = vrot.slane %v2340_v15, 2  ;;  %v1107_v39 = vsel %vm225_vm0, %v7430_v9, %v982_v54  ;;  %v1511_v54 = vrot.slane %v1364_v35, 2 }
 0x142   : > { %1453 = vrot.lane.b32.xlu0 %v1419_v1, %s7492_s28 }
 0x143   : > { %v1962_v7 = vpop.permute.xlu1 %1961  ;;  %v2486_v60 = vsel %vm532_vm7, %v8290_v61, %v2485_v29  ;;  %v2343_v61 = vld [vmem:[#allocation2 + $0x160] sm:$0x3] }
 0x144   : > { %v984_v5 = vpop.permute.xlu0 %983  ;;  %v2087_v40 = vsel %vm225_vm0, %v8244_v58, %v1962_v7  ;;  %v1508_v58 = vrot.slane %v8643_v3, 2  ;;  %v2402_v25 = vrot.slane %v2343_v61, 1  ;;  %v8683_v7 = vld [vmem:[#allocation2 + $0xc0] sm:$0xff] }
 0x145   : > { %1539 = vrot.lane.b32.xlu1 %v1505_v32, %s7493_s29  ;;  %v1513_v12 = vrot.slane %v8683_v7, 2 }
 0x146   : > { %2432 = vrot.lane.b32.xlu0 %v2398_v2, %s7492_s28  ;;  %v1510_v1 = vsel %vm532_vm7, %v1508_v58, %v1509_v27  ;;  %v8685_v2 = vld [vmem:[#allocation2 + $0xc8] sm:$0xff] }
 0x147   : > { %v1070_v28 = vpop.permute.xlu1 %1069 }
 0x148   : > { %v1123_v6 = vsel %vm637_vm8, %v1107_v39, %v1070_v28  ;;  %v1964_v42 = vpop.permute.xlu0 %1963  ;;  %v1512_v39 = vsel %vm532_vm7, %v1509_v27, %v1511_v54  ;;  %v1426_v28 = vrot.slane %v8685_v2, 1  ;;  %v8738_v54 = vld [vmem:[#allocation2 + $0x180] sm:$0xff] }
 0x149   : > { %2518 = vrot.lane.b32.xlu1 %v8302_v11, %s7493_s29  ;;  %6859 = vmatprep.mubr.msk.f32.mxu0 %vm656_vm9, %v1123_v6  ;;  %v1108_v11 = vsel %vm225_vm0, %v7431_v33, %v984_v5  ;;  %v2088_v10 = vsel %vm225_vm0, %v8246_v16, %v1964_v42  ;;  %v2403_v16 = vsel %vm443_vm6, %v8322_v41, %v2402_v25  ;;  %v1425_v41 = vrot.slane %v8683_v7, 1  ;;  %v6432_v6 = vld [vmem:[%s10674_s1 + $0x28] sm:$0xf]  ;;  %v8732_v25 = vld [vmem:[#allocation2 + $0xd8] sm:$0xff] }
 0x14a   : > { %1541 = vrot.lane.b32.xlu0 %v1507_v13, %s7493_s29  ;;  %v8700_v45 = vpack.c.bf16 %v6432_v6, %v8435_v38  ;;  %v7433_v38 = vld [vmem:[#allocation2 + $0xb0] sm:$0xff]  ;;  %v1514_v33 = vrot.slane %v8685_v2, 2 }
 0x14b   : > { %v2050_v56 = vpop.permute.xlu1 %2049 }
 0x14c   : > { %v2103_v43 = vsel %vm637_vm8, %v2087_v40, %v2050_v56  ;;  %v1072_v48 = vpop.permute.xlu0 %1071  ;;  %7180 = vmatprep.subr.msk.bf16.mxu1 %vm7719_vm5, %v8700_v45  ;;  %v1427_v40 = vsel %vm443_vm6, %v1425_v41, %v1426_v28  ;;  %v1428_v56 = vrot.slane %v1367_v8, 1  ;;  %v2409_v41 = vrot.slane %v8738_v54, 1 }
 0x14d   : > { %2520 = vrot.lane.b32.xlu1 %v2486_v60, %s7493_s29  ;;  %6915 = vmatprep.mubr.msk.f32.mxu1 %vm656_vm9, %v2103_v43  ;;  %v1124_v15 = vsel %vm637_vm8, %v1108_v11, %v1072_v48 }
 0x14e   : > { %1455 = vrot.lane.b32.xlu0 %v1422_v26, %s7492_s28  ;;  %6860 = vmatmul.mubr.msk.f32.gmra.mrb[10].mxu0 %vm656_vm9, %v1124_v15  ;;  %v1429_v15 = vsel %vm443_vm6, %v1426_v28, %v1428_v56  ;;  %v1518_v56 = vrot.slane %v8732_v25, 2 }
 0x14f   : > { %v2052_v49 = vpop.permute.xlu1 %2051 }
 0x150   : > { %v2104_v51 = vsel %vm637_vm8, %v2088_v10, %v2052_v49  ;;  %v986_v31 = vpop.permute.xlu0 %985  ;;  %v1515_v10 = vsel %vm532_vm7, %v1513_v12, %v1514_v33 }
 0x151   : > { %2434 = vrot.lane.b32.xlu1 %v8331_v55, %s7492_s28  ;;  %6916 = vmatmul.mubr.msk.f32.gmra.mrb[10].mxu1 %vm656_vm9, %v2104_v51  ;;  %v2490_v55 = vrot.slane %v2343_v61, 2  ;;  %v1109_v5 = vsel %vm225_vm0, %v7432_v18, %v986_v31  ;;  %v1516_v51 = vrot.slane %v1367_v8, 2  ;;  %v8734_v31 = vld [vmem:[#allocation2 + $0xe0] sm:$0xff]  ;;  %v1430_v18 = vrot.slane %v8732_v25, 1 }
 0x152   : > { %1457 = vrot.lane.b32.xlu0 %v1424_v23, %s7492_s28 }
 0x153   : > { %v1966_v57 = vpop.permute.xlu1 %1965  ;;  %v2491_v42 = vsel %vm532_vm7, %v8346_v37, %v2490_v55  ;;  %v2346_v37 = vld [vmem:[#allocation2 + $0x178] sm:$0x3]  ;;  %v1517_v55 = vsel %vm532_vm7, %v1514_v33, %v1516_v51 }
 0x154   : > { %v988_v32 = vpop.permute.xlu0 %987  ;;  %v2089_v35 = vsel %vm225_vm0, %v8308_v19, %v1966_v57  ;;  %v2407_v58 = vrot.slane %v2346_v37, 1 }
 0x155   : > { %1543 = vrot.lane.b32.xlu1 %v1510_v1, %s7493_s29  ;;  %v1110_v43 = vsel %vm225_vm0, %v7433_v38, %v988_v32  ;;  %v7434_v1 = vld [vmem:[#allocation2 + $0xc0] sm:$0xff]  ;;  %v8740_v32 = vld [vmem:[#allocation2 + $0x188] sm:$0xff]  ;;  %v1519_v38 = vrot.slane %v8734_v31, 2 }
 0x156   : > { %2436 = vrot.lane.b32.xlu0 %v2403_v16, %s7492_s28  ;;  %v8753_v28 = vrot.slane %v8740_v32, 1 }
 0x157   : > { %v1074_v29 = vpop.permute.xlu1 %1073 }
 0x158   : > { %v1125_v9 = vsel %vm637_vm8, %v1109_v5, %v1074_v29  ;;  %v1968_v13 = vpop.permute.xlu0 %1967  ;;  %v1431_v5 = vrot.slane %v8734_v31, 1 }
 0x159   : > { %2522 = vrot.lane.b32.xlu1 %v8360_v46, %s7493_s29  ;;  %6862 = vmatprep.mubr.msk.f32.mxu0 %vm656_vm9, %v1125_v9  ;;  %v2090_v11 = vsel %vm225_vm0, %v8310_v0, %v1968_v13  ;;  %v2408_v0 = vsel %vm443_vm6, %v8382_v53, %v2407_v58  ;;  %v1370_v9 = vld [vmem:[#allocation2 + $0xe8] sm:$0x3] }
 0x15a   : > { %1545 = vrot.lane.b32.xlu0 %v1512_v39, %s7493_s29  ;;  %v1432_v8 = vsel %vm443_vm6, %v1430_v18, %v1431_v5  ;;  %v1521_v58 = vrot.slane %v1370_v9, 2 }
 0x15b   : > { %v2054_v60 = vpop.permute.xlu1 %2053 }
 0x15c   : > { %v2105_v46 = vsel %vm637_vm8, %v2089_v35, %v2054_v60  ;;  %v1076_v19 = vpop.permute.xlu0 %1075  ;;  %v7435_v35 = vld [vmem:[#allocation2 + $0xc8] sm:$0xff] }
 0x15d   : > { %2524 = vrot.lane.b32.xlu1 %v2491_v42, %s7493_s29  ;;  %6918 = vmatprep.mubr.msk.f32.mxu1 %vm656_vm9, %v2105_v46  ;;  %v1126_v26 = vsel %vm637_vm8, %v1110_v43, %v1076_v19  ;;  %v1433_v42 = vrot.slane %v1370_v9, 1  ;;  %v2349_v46 = vld [vmem:[#allocation2 + $0x190] sm:$0x3] }
 0x15e   : > { %1459 = vrot.lane.b32.xlu0 %v1427_v40, %s7492_s28  ;;  %6863 = vmatmul.mubr.msk.f32.gmra.mrb[12].mxu0 %vm656_vm9, %v1126_v26  ;;  %v2412_v12 = vrot.slane %v2349_v46, 1  ;;  %v2500_v51 = vrot.slane %v2349_v46, 2 }
 0x15f   : > { %v2056_v48 = vpop.permute.xlu1 %2055  ;;  %v1434_v26 = vsel %vm443_vm6, %v1431_v5, %v1433_v42 }
 0x160   : > { %v2106_v61 = vsel %vm637_vm8, %v2090_v11, %v2056_v48  ;;  %v990_v27 = vpop.permute.xlu0 %989  ;;  %v1520_v11 = vsel %vm532_vm7, %v1518_v56, %v1519_v38  ;;  %v8782_v48 = vrot.slane %v8740_v32, 2  ;;  %v7437_v56 = vld [vmem:[#allocation2 + $0xe0] sm:$0xff] }
 0x161   : > { %2438 = vrot.lane.b32.xlu1 %v8391_v36, %s7492_s28  ;;  %6919 = vmatmul.mubr.msk.f32.gmra.mrb[12].mxu1 %vm656_vm9, %v2106_v61  ;;  %v2495_v36 = vrot.slane %v2346_v37, 2  ;;  %v1111_v57 = vsel %vm225_vm0, %v7434_v1, %v990_v27  ;;  %v2801_v1 = vld [vmem:[#allocation2 + $0x100] sm:$0x3] }
 0x162   : > { %1461 = vrot.lane.b32.xlu0 %v1429_v15, %s7492_s28  ;;  %v2413_v15 = vsel %vm443_vm6, %v8753_v28, %v2412_v12  ;;  %v2850_v5 = vrot.slane %v2801_v1, 1 }
 0x163   : > { %v1970_v49 = vpop.permute.xlu1 %1969  ;;  %v2496_v39 = vsel %vm532_vm7, %v8406_v17, %v2495_v36 }
 0x164   : > { %v992_v23 = vpop.permute.xlu0 %991  ;;  %v2091_v6 = vsel %vm225_vm0, %v8368_v62, %v1970_v49  ;;  %v8766_v62 = vsel %vm443_vm6, %v2409_v41, %v8753_v28  ;;  %v8790_v49 = vld [vmem:[#allocation2 + $0xf8] sm:$0xff] }
 0x165   : > { %1547 = vrot.lane.b32.xlu1 %v1515_v10, %s7493_s29  ;;  %v1112_v60 = vsel %vm225_vm0, %v7435_v35, %v992_v23  ;;  %v8788_v10 = vld [vmem:[#allocation2 + $0xf0] sm:$0xff]  ;;  %v8818_v35 = vld [vmem:[#allocation2 + $0x108] sm:$0xff] }
 0x166   : > { %2440 = vrot.lane.b32.xlu0 %v2408_v0, %s7492_s28 }
 0x167   : > { %v1078_v16 = vpop.permute.xlu1 %1077 }
 0x168   : > { %v1127_v53 = vsel %vm637_vm8, %v1111_v57, %v1078_v16  ;;  %v1972_v29 = vpop.permute.xlu0 %1971  ;;  %v1522_v16 = vsel %vm532_vm7, %v1519_v38, %v1521_v58  ;;  %v2940_v58 = vrot.slane %v8818_v35, 2 }
 0x169   : > { %2526 = vrot.lane.b32.xlu1 %v8419_v59, %s7493_s29  ;;  %6865 = vmatprep.mubr.msk.f32.mxu0 %vm656_vm9, %v1127_v53  ;;  %v2092_v43 = vsel %vm225_vm0, %v8370_v52, %v1972_v29  ;;  %v2497_v52 = vrot.slane %v8738_v54, 2  ;;  %v2847_v53 = vrot.slane %v8788_v10, 1  ;;  %v7436_v29 = vld [vmem:[#allocation2 + $0xd8] sm:$0xff] }
 0x16a   : > { %1549 = vrot.lane.b32.xlu0 %v1517_v55, %s7493_s29  ;;  %v2848_v55 = vrot.slane %v8790_v49, 1 }
 0x16b   : > { %v2058_v13 = vpop.permute.xlu1 %2057  ;;  %v8794_v0 = vsel %vm532_vm7, %v2497_v52, %v8782_v48 }
 0x16c   : > { %v2107_v59 = vsel %vm637_vm8, %v2091_v6, %v2058_v13  ;;  %v1080_v17 = vpop.permute.xlu0 %1079  ;;  %v2849_v6 = vsel %vm443_vm6, %v2847_v53, %v2848_v55  ;;  %v2935_v13 = vrot.slane %v8788_v10, 2  ;;  %v2851_v46 = vsel %vm443_vm6, %v2848_v55, %v2850_v5  ;;  %v2807_v53 = vld [vmem:[#allocation2 + $0x130] sm:$0x3] }
 0x16d   : > { %2528 = vrot.lane.b32.xlu1 %v2496_v39, %s7493_s29  ;;  %6921 = vmatprep.mubr.msk.f32.mxu1 %vm656_vm9, %v2107_v59  ;;  %v1128_v40 = vsel %vm637_vm8, %v1112_v60, %v1080_v17  ;;  %v2936_v59 = vrot.slane %v8790_v49, 2  ;;  %v8820_v60 = vld [vmem:[#allocation2 + $0x110] sm:$0xff] }
 0x16e   : > { %1463 = vrot.lane.b32.xlu0 %v1432_v8, %s7492_s28  ;;  %6866 = vmatmul.mubr.msk.f32.gmra.mrb[14].mxu0 %vm656_vm9, %v1128_v40  ;;  %v2938_v40 = vrot.slane %v2801_v1, 2  ;;  %v2853_v12 = vrot.slane %v8820_v60, 1 }
 0x16f   : > { %v2060_v19 = vpop.permute.xlu1 %2059 }
 0x170   : > { %v2108_v37 = vsel %vm637_vm8, %v2092_v43, %v2060_v19  ;;  %v1436_v33 = vpop.permute.xlu0 %1435 }
 0x171   : > { %2442 = vrot.lane.b32.xlu1 %v8766_v62, %s7492_s28  ;;  %6922 = vmatmul.mubr.msk.f32.gmra.mrb[14].mxu1 %vm656_vm9, %v2108_v37  ;;  %v1571_v23 = vsel %vm225_vm0, %v8413_v24, %v1436_v33  ;;  %v2501_v24 = vsel %vm532_vm7, %v8782_v48, %v2500_v51  ;;  %v2937_v37 = vsel %vm532_vm7, %v2935_v13, %v2936_v59 }
 0x172   : > { %1465 = vrot.lane.b32.xlu0 %v1434_v26, %s7492_s28  ;;  %v2852_v26 = vrot.slane %v8818_v35, 1 }
 0x173   : > { %v2415_v61 = vpop.permute.xlu1 %2414 }
 0x174   : > { %v1438_v27 = vpop.permute.xlu0 %1437  ;;  %v2550_v9 = vsel %vm225_vm0, %v7436_v29, %v2415_v61 }
 0x175   : > { %1551 = vrot.lane.b32.xlu1 %v1520_v11, %s7493_s29  ;;  %v1572_v8 = vsel %vm225_vm0, %v8415_v14, %v1438_v27  ;;  %v2804_v14 = vld [vmem:[#allocation2 + $0x118] sm:$0x3]  ;;  %v2939_v11 = vsel %vm532_vm7, %v2936_v59, %v2938_v40  ;;  %v2941_v27 = vrot.slane %v8820_v60, 2 }
 0x176   : > { %2444 = vrot.lane.b32.xlu0 %v2413_v15, %s7492_s28  ;;  %v2855_v52 = vrot.slane %v2804_v14, 1  ;;  %v2854_v15 = vsel %vm443_vm6, %v2852_v26, %v2853_v12  ;;  %v8867_v40 = vld [vmem:[#allocation2 + $0x138] sm:$0xff] }
 0x177   : > { %v1524_v36 = vpop.permute.xlu1 %1523 }
 0x178   : > { %v1587_v57 = vsel %vm637_vm8, %v1571_v23, %v1524_v36  ;;  %v2417_v18 = vpop.permute.xlu0 %2416  ;;  %v8842_v23 = vld [vmem:[#allocation2 + $0x120] sm:$0xff]  ;;  %v8844_v36 = vld [vmem:[#allocation2 + $0x128] sm:$0xff]  ;;  %v2856_v1 = vsel %vm443_vm6, %v2853_v12, %v2855_v52 }
 0x179   : > { %2530 = vrot.lane.b32.xlu1 %v8794_v0, %s7493_s29  ;;  %6872 = vmatprep.mubr.msk.f32.mxu0 %vm656_vm9, %v1587_v57  ;;  %v2551_v38 = vsel %vm225_vm0, %v7437_v56, %v2417_v18  ;;  %v2943_v57 = vrot.slane %v2804_v14, 2  ;;  %v2942_v18 = vsel %vm532_vm7, %v2940_v58, %v2941_v27  ;;  %v2858_v5 = vrot.slane %v8844_v36, 1  ;;  %v8869_v56 = vld [vmem:[#allocation2 + $0x140] sm:$0xff] }
 0x17a   : > { %1553 = vrot.lane.b32.xlu0 %v1522_v16, %s7493_s29  ;;  %v2948_v14 = vrot.slane %v2807_v53, 2  ;;  %v2863_v52 = vrot.slane %v8869_v56, 1 }
 0x17b   : > { %v2503_v39 = vpop.permute.xlu1 %2502 }
 0x17c   : > { %v2566_v41 = vsel %vm637_vm8, %v2550_v9, %v2503_v39  ;;  %v1526_v42 = vpop.permute.xlu0 %1525  ;;  %v2944_v9 = vsel %vm532_vm7, %v2941_v27, %v2943_v57  ;;  %v7438_v39 = vld [vmem:[#allocation2 + $0xf0] sm:$0xff]  ;;  %v2951_v57 = vrot.slane %v8869_v56, 2 }
 0x17d   : > { %2532 = vrot.lane.b32.xlu1 %v2501_v24, %s7493_s29  ;;  %6928 = vmatprep.mubr.msk.f32.mxu1 %vm656_vm9, %v2566_v41  ;;  %v1588_v17 = vsel %vm637_vm8, %v1572_v8, %v1526_v42  ;;  %v2857_v24 = vrot.slane %v8842_v23, 1  ;;  %v2945_v8 = vrot.slane %v8842_v23, 2  ;;  %v2946_v42 = vrot.slane %v8844_v36, 2 }
 0x17e   : > { %2887 = vrot.lane.b32.xlu0 %v2849_v6, %s7492_s28  ;;  %6873 = vmatmul.mubr.msk.f32.vlgmr.msra.gmra.mrb[0].mxu0 %vm656_vm9, %v1588_v17 }
 0x17f   : > { %v2505_v43 = vpop.permute.xlu1 %2504  ;;  %v2859_v59 = vsel %vm443_vm6, %v2857_v24, %v2858_v5 }
 0x180   : > { %v2567_v19 = vsel %vm637_vm8, %v2551_v38, %v2505_v43  ;;  %v1440_v33 = vpop.permute.xlu0 %1439 }
 0x181   : > { %2889 = vrot.lane.b32.xlu1 %v2851_v46, %s7492_s28  ;;  %6929 = vmatmul.mubr.msk.f32.vlgmr.msra.gmra.mrb[0].mxu1 %vm656_vm9, %v2567_v19  ;;  %v7439_v19 = vld [vmem:[#allocation2 + $0xf8] sm:$0xff] }
 0x182   : > { %7183 = vmatpush3.bf16.msk.msra.mxu1 %vm7719_vm5, %v8700_v45  ;;  %2975 = vrot.lane.b32.xlu0 %v2937_v37, %s7493_s29  ;;  %v1573_v45 = vsel %vm225_vm0, %v8481_v30, %v1440_v33  ;;  %v2860_v30 = vrot.slane %v2807_v53, 1  ;;  %v2947_v33 = vsel %vm532_vm7, %v2945_v8, %v2946_v42  ;;  %v8890_v53 = vld [vmem:[#allocation2 + $0x158] sm:$0xff] }
 0x183   : > { %v2419_v61 = vpop.permute.xlu1 %2418 }
 0x184   : > { %v1442_v51 = vpop.permute.xlu0 %1441  ;;  %v2552_v41 = vsel %vm225_vm0, %v7438_v39, %v2419_v61  ;;  %v2861_v43 = vsel %vm443_vm6, %v2858_v5, %v2860_v30 }
 0x185   : > { %2977 = vrot.lane.b32.xlu1 %v2939_v11, %s7493_s29  ;;  %v1574_v17 = vsel %vm225_vm0, %v8483_v63, %v1442_v51  ;;  %v2810_v63 = vld [vmem:[#allocation2 + $0x148] sm:$0x3]  ;;  %v2862_v11 = vrot.slane %v8867_v40, 1 }
 0x186   : > { %2891 = vrot.lane.b32.xlu0 %v2854_v15, %s7492_s28  ;;  %v2949_v15 = vsel %vm532_vm7, %v2946_v42, %v2948_v14  ;;  %v2865_v58 = vrot.slane %v2810_v63, 1 }
 0x187   : > { %v1528_v16 = vpop.permute.xlu1 %1527  ;;  %v2864_v51 = vsel %vm443_vm6, %v2862_v11, %v2863_v52  ;;  %v7441_v11 = vld [vmem:[#allocation2 + $0x110] sm:$0xff] }
 0x188   : > { %v1589_v55 = vsel %vm637_vm8, %v1573_v45, %v1528_v16  ;;  %v2421_v29 = vpop.permute.xlu0 %2420  ;;  %v8888_v16 = vld [vmem:[#allocation2 + $0x150] sm:$0xff] }
 0x189   : > { %2893 = vrot.lane.b32.xlu1 %v2856_v1, %s7492_s28  ;;  %6875 = vmatprep.mubr.msk.f32.mxu0 %vm656_vm9, %v1589_v55  ;;  %v2553_v37 = vsel %vm225_vm0, %v7439_v19, %v2421_v29  ;;  %v2950_v1 = vrot.slane %v8867_v40, 2  ;;  %v2866_v55 = vsel %vm443_vm6, %v2863_v52, %v2865_v58  ;;  %v2813_v29 = vld [vmem:[#allocation2 + $0x160] sm:$0x3]  ;;  %v2867_v39 = vrot.slane %v8888_v16, 1 }
 0x18a   : > { %2979 = vrot.lane.b32.xlu0 %v2942_v18, %s7493_s29  ;;  %v2953_v18 = vrot.slane %v2810_v63, 2 }
 0x18b   : > { %v2507_v6 = vpop.permute.xlu1 %2506  ;;  %v2952_v30 = vsel %vm532_vm7, %v2950_v1, %v2951_v57 }
 0x18c   : > { %v2568_v13 = vsel %vm637_vm8, %v2552_v41, %v2507_v6  ;;  %v1530_v46 = vpop.permute.xlu0 %1529  ;;  %v2868_v41 = vrot.slane %v8890_v53, 1 }
 0x18d   : > { %2981 = vrot.lane.b32.xlu1 %v2944_v9, %s7493_s29  ;;  %6931 = vmatprep.mubr.msk.f32.mxu1 %vm656_vm9, %v2568_v13  ;;  %v1590_v38 = vsel %vm637_vm8, %v1574_v17, %v1530_v46  ;;  %v2954_v13 = vsel %vm532_vm7, %v2951_v57, %v2953_v18 }
 0x18e   : > { %2895 = vrot.lane.b32.xlu0 %v2859_v59, %s7492_s28  ;;  %6876 = vmatmul.mubr.msk.f32.gmra.mrb[2].mxu0 %vm656_vm9, %v1590_v38  ;;  %v7440_v59 = vld [vmem:[#allocation2 + $0x108] sm:$0xff]  ;;  %v2869_v46 = vsel %vm443_vm6, %v2867_v39, %v2868_v41  ;;  %v2955_v38 = vrot.slane %v8888_v16, 2 }
 0x18f   : > { %v2509_v26 = vpop.permute.xlu1 %2508 }
 0x190   : > { %v2569_v12 = vsel %vm637_vm8, %v2553_v37, %v2509_v26  ;;  %v1444_v61 = vpop.permute.xlu0 %1443  ;;  %v8913_v37 = vld [vmem:[#allocation2 + $0x168] sm:$0xff]  ;;  %v8915_v26 = vld [vmem:[#allocation2 + $0x170] sm:$0xff] }
 0x191   : > { %2897 = vrot.lane.b32.xlu1 %v2861_v43, %s7492_s28  ;;  %6932 = vmatmul.mubr.msk.f32.gmra.mrb[2].mxu1 %vm656_vm9, %v2569_v12  ;;  %v1575_v24 = vsel %vm225_vm0, %v8523_v20, %v1444_v61  ;;  %v2870_v20 = vrot.slane %v2813_v29, 1  ;;  %v2956_v43 = vrot.slane %v8890_v53, 2 }
 0x192   : > { %2983 = vrot.lane.b32.xlu0 %v2947_v33, %s7493_s29  ;;  %v2958_v33 = vrot.slane %v2813_v29, 2 }
 0x193   : > { %v2423_v27 = vpop.permute.xlu1 %2422  ;;  %v2871_v12 = vsel %vm443_vm6, %v2868_v41, %v2870_v20  ;;  %v2957_v58 = vsel %vm532_vm7, %v2955_v38, %v2956_v43 }
 0x194   : > { %v1446_v45 = vpop.permute.xlu0 %1445  ;;  %v2554_v8 = vsel %vm225_vm0, %v7440_v59, %v2423_v27  ;;  %v2872_v27 = vrot.slane %v8913_v37, 1  ;;  %v2959_v57 = vsel %vm532_vm7, %v2956_v43, %v2958_v33 }
 0x195   : > { %2985 = vrot.lane.b32.xlu1 %v2949_v15, %s7493_s29  ;;  %v1576_v14 = vsel %vm225_vm0, %v8525_v21, %v1446_v45  ;;  %v2816_v21 = vld [vmem:[#allocation2 + $0x178] sm:$0x3] }
 0x196   : > { %2899 = vrot.lane.b32.xlu0 %v2864_v51, %s7492_s28  ;;  %v2873_v51 = vrot.slane %v8915_v26, 1  ;;  %v2875_v45 = vrot.slane %v2816_v21, 1 }
 0x197   : > { %v1532_v5 = vpop.permute.xlu1 %1531 }
 0x198   : > { %v1591_v9 = vsel %vm637_vm8, %v1575_v24, %v1532_v5  ;;  %v2425_v6 = vpop.permute.xlu0 %2424  ;;  %v2874_v18 = vsel %vm443_vm6, %v2872_v27, %v2873_v51  ;;  %v2960_v24 = vrot.slane %v8913_v37, 2  ;;  %v2961_v5 = vrot.slane %v8915_v26, 2 }
 0x199   : > { %2901 = vrot.lane.b32.xlu1 %v2866_v55, %s7492_s28  ;;  %6878 = vmatprep.mubr.msk.f32.mxu0 %vm656_vm9, %v1591_v9  ;;  %v2555_v52 = vsel %vm225_vm0, %v7441_v11, %v2425_v6  ;;  %v2876_v9 = vsel %vm443_vm6, %v2873_v51, %v2875_v45  ;;  %v2819_v6 = vld [vmem:[#allocation2 + $0x190] sm:$0x3] }
 0x19a   : > { %2987 = vrot.lane.b32.xlu0 %v2952_v30, %s7493_s29  ;;  %v2963_v30 = vrot.slane %v2816_v21, 2  ;;  %v2962_v20 = vsel %vm532_vm7, %v2960_v24, %v2961_v5  ;;  %v2968_v11 = vrot.slane %v2819_v6, 2 }
 0x19b   : > { %v2511_v42 = vpop.permute.xlu1 %2510 }
 0x19c   : > { %v2570_v17 = vsel %vm637_vm8, %v2554_v8, %v2511_v42  ;;  %v1534_v19 = vpop.permute.xlu0 %1533  ;;  %v2964_v8 = vsel %vm532_vm7, %v2961_v5, %v2963_v30  ;;  %v2880_v42 = vrot.slane %v2819_v6, 1  ;;  %v2969_v51 = vsel %vm532_vm7, %v8782_v48, %v2968_v11 }
 0x19d   : > { %2989 = vrot.lane.b32.xlu1 %v2954_v13, %s7493_s29  ;;  %6934 = vmatprep.mubr.msk.f32.mxu1 %vm656_vm9, %v2570_v17  ;;  %v1592_v63 = vsel %vm637_vm8, %v1576_v14, %v1534_v19  ;;  %v7442_v17 = vld [vmem:[#allocation2 + $0x120] sm:$0xff]  ;;  %v8950_v19 = vld [vmem:[#allocation2 + $0x198] sm:$0xff] }
 0x19e   : > { %2903 = vrot.lane.b32.xlu0 %v2869_v46, %s7492_s28  ;;  %6879 = vmatmul.mubr.msk.f32.gmra.mrb[4].mxu0 %vm656_vm9, %v1592_v63  ;;  %v8952_v63 = vld [vmem:[#allocation2 + $0x1a0] sm:$0xff]  ;;  %v2881_v33 = vsel %vm443_vm6, %v8753_v28, %v2880_v42  ;;  %v2970_v45 = vrot.slane %v8950_v19, 2 }
 0x19f   : > { %v2513_v61 = vpop.permute.xlu1 %2512  ;;  %v2883_v27 = vrot.slane %v8952_v63, 1  ;;  %v7445_v42 = vld [vmem:[#allocation2 + $0x140] sm:$0xff] }
 0x1a0   : > { %v2571_v15 = vsel %vm637_vm8, %v2555_v52, %v2513_v61  ;;  %v1448_v1 = vpop.permute.xlu0 %1447  ;;  %v7443_v52 = vld [vmem:[#allocation2 + $0x128] sm:$0xff] }
 0x1a1   : > { %2905 = vrot.lane.b32.xlu1 %v2871_v12, %s7492_s28  ;;  %6935 = vmatmul.mubr.msk.f32.gmra.mrb[4].mxu1 %vm656_vm9, %v2571_v15  ;;  %v1577_v39 = vsel %vm225_vm0, %v8563_v22, %v1448_v1 }
 0x1a2   : > { %2991 = vrot.lane.b32.xlu0 %v2957_v58, %s7493_s29  ;;  %v2882_v58 = vrot.slane %v8950_v19, 1 }
 0x1a3   : > { %v2427_v55 = vpop.permute.xlu1 %2426 }
 0x1a4   : > { %v1450_v29 = vpop.permute.xlu0 %1449  ;;  %v2556_v46 = vsel %vm225_vm0, %v7442_v17, %v2427_v55  ;;  %v2971_v55 = vrot.slane %v8952_v63, 2 }
 0x1a5   : > { %2993 = vrot.lane.b32.xlu1 %v2959_v57, %s7493_s29  ;;  %v1578_v43 = vsel %vm225_vm0, %v8565_v44, %v1450_v29  ;;  %v2822_v44 = vld [vmem:[#allocation2 + $0x1a8] sm:$0x3] }
 0x1a6   : > { %2907 = vrot.lane.b32.xlu0 %v2874_v18, %s7492_s28  ;;  %v2885_v1 = vrot.slane %v2822_v44, 1  ;;  %v2973_v5 = vrot.slane %v2822_v44, 2 }
 0x1a7   : > { %v1536_v41 = vpop.permute.xlu1 %1535 }
 0x1a8   : > { %v1593_v13 = vsel %vm637_vm8, %v1577_v39, %v1536_v41  ;;  %v2429_v59 = vpop.permute.xlu0 %2428  ;;  %v2886_v24 = vsel %vm443_vm6, %v2883_v27, %v2885_v1  ;;  %v2974_v39 = vsel %vm532_vm7, %v2971_v55, %v2973_v5  ;;  %v7444_v41 = vld [vmem:[#allocation2 + $0x138] sm:$0xff] }
 0x1a9   : > { %2909 = vrot.lane.b32.xlu1 %v2876_v9, %s7492_s28  ;;  %6881 = vmatprep.mubr.msk.f32.mxu0 %vm656_vm9, %v1593_v13  ;;  %v2557_v61 = vsel %vm225_vm0, %v7443_v52, %v2429_v59  ;;  %v2972_v9 = vsel %vm532_vm7, %v2970_v45, %v2971_v55  ;;  %v7446_v52 = vld [vmem:[#allocation2 + $0x150] sm:$0xff]  ;;  %v9014_v5 = vld [vmem:[#allocation3 + $0x8] sm:$0xff] }
 0x1aa   : > { %2995 = vrot.lane.b32.xlu0 %v2962_v20, %s7493_s29 }
 0x1ab   : > { %v2515_v22 = vpop.permute.xlu1 %2514 }
 0x1ac   : > { %v2572_v38 = vsel %vm637_vm8, %v2556_v46, %v2515_v22  ;;  %v1538_v14 = vpop.permute.xlu0 %1537 }
 0x1ad   : > { %2997 = vrot.lane.b32.xlu1 %v2964_v8, %s7493_s29  ;;  %6937 = vmatprep.mubr.msk.f32.mxu1 %vm656_vm9, %v2572_v38  ;;  %v1594_v12 = vsel %vm637_vm8, %v1578_v43, %v1538_v14 }
 0x1ae   : > { %2911 = vrot.lane.b32.xlu0 %v8766_v62, %s7492_s28  ;;  %6882 = vmatmul.mubr.msk.f32.gmra.mrb[6].mxu0 %vm656_vm9, %v1594_v12  ;;  %v2884_v62 = vsel %vm443_vm6, %v2882_v58, %v2883_v27  ;;  %v7447_v27 = vld [vmem:[#allocation2 + $0x158] sm:$0xff] }
 0x1af   : > { %v2517_v21 = vpop.permute.xlu1 %2516 }
 0x1b0   : > { %v2573_v15 = vsel %vm637_vm8, %v2557_v61, %v2517_v21  ;;  %v1452_v28 = vpop.permute.xlu0 %1451 }
 0x1b1   : > { %2913 = vrot.lane.b32.xlu1 %v2881_v33, %s7492_s28  ;;  %6938 = vmatmul.mubr.msk.f32.gmra.mrb[6].mxu1 %vm656_vm9, %v2573_v15  ;;  %v1579_v48 = vsel %vm225_vm0, %v8603_v50, %v1452_v28 }
 0x1b2   : > { %2999 = vrot.lane.b32.xlu0 %v8794_v0, %s7493_s29 }
 0x1b3   : > { %v2431_v57 = vpop.permute.xlu1 %2430 }
 0x1b4   : > { %v1454_v18 = vpop.permute.xlu0 %1453  ;;  %v2558_v6 = vsel %vm225_vm0, %v7444_v41, %v2431_v57 }
 0x1b5   : > { %3001 = vrot.lane.b32.xlu1 %v2969_v51, %s7493_s29  ;;  %v1580_v20 = vsel %vm225_vm0, %v8605_v34, %v1454_v18 }
 0x1b6   : > { %2915 = vrot.lane.b32.xlu0 %v2884_v62, %s7492_s28 }
 0x1b7   : > { %v1540_v29 = vpop.permute.xlu1 %1539 }
 0x1b8   : > { %v1595_v0 = vsel %vm637_vm8, %v1579_v48, %v1540_v29  ;;  %v2433_v30 = vpop.permute.xlu0 %2432  ;;  %v3305_v48 = vld [vmem:[#allocation3 + $0x10] sm:$0x3] }
 0x1b9   : > { %2917 = vrot.lane.b32.xlu1 %v2886_v24, %s7492_s28  ;;  %6884 = vmatprep.mubr.msk.f32.mxu0 %vm656_vm9, %v1595_v0  ;;  %v2559_v17 = vsel %vm225_vm0, %v7445_v42, %v2433_v30  ;;  %v9012_v24 = vld [vmem:[#allocation3] sm:$0xff]  ;;  %v3354_v30 = vrot.slane %v3305_v48, 1  ;;  %v3442_v41 = vrot.slane %v3305_v48, 2 }
 0x1ba   : > { %3003 = vrot.lane.b32.xlu0 %v2972_v9, %s7493_s29  ;;  %v3351_v0 = vrot.slane %v9012_v24, 1  ;;  %v3352_v9 = vrot.slane %v9014_v5, 1 }
 0x1bb   : > { %v2519_v13 = vpop.permute.xlu1 %2518 }
 0x1bc   : > { %v2574_v50 = vsel %vm637_vm8, %v2558_v6, %v2519_v13  ;;  %v1542_v59 = vpop.permute.xlu0 %1541  ;;  %v7448_v6 = vld [vmem:[#allocation2 + $0x168] sm:$0xff] }
 0x1bd   : > { %3005 = vrot.lane.b32.xlu1 %v2974_v39, %s7493_s29  ;;  %6940 = vmatprep.mubr.msk.f32.mxu1 %vm656_vm9, %v2574_v50  ;;  %v1596_v8 = vsel %vm637_vm8, %v1580_v20, %v1542_v59  ;;  %v3440_v39 = vrot.slane %v9014_v5, 2  ;;  %v3353_v20 = vsel %vm443_vm6, %v3351_v0, %v3352_v9  ;;  %v3355_v59 = vsel %vm443_vm6, %v3352_v9, %v3354_v30 }
 0x1be   : > { %6885 = vmatmul.mubr.msk.f32.gmra.mrb[8].mxu0 %vm656_vm9, %v1596_v8  ;;  %3391 = vrot.lane.b32.xlu0 %v3353_v20, %s7492_s28 }
 0x1bf   : > { %v2521_v46 = vpop.permute.xlu1 %2520 }
 0x1c0   : > { %v2575_v22 = vsel %vm637_vm8, %v2559_v17, %v2521_v46  ;;  %v1456_v38 = vpop.permute.xlu0 %1455  ;;  %v3443_v46 = vsel %vm532_vm7, %v3440_v39, %v3442_v41 }
 0x1c1   : > { %6941 = vmatmul.mubr.msk.f32.gmra.mrb[8].mxu1 %vm656_vm9, %v2575_v22  ;;  %v1581_v14 = vsel %vm225_vm0, %v8643_v3, %v1456_v38  ;;  %3393 = vrot.lane.b32.xlu1 %v3355_v59, %s7492_s28 }
 0x1c2   : > { %3481 = vrot.lane.b32.xlu0 %v3443_v46, %s7493_s29 }
 0x1c3   : > { %v2435_v43 = vpop.permute.xlu1 %2434 }
 0x1c4   : > { %v1458_v34 = vpop.permute.xlu0 %1457  ;;  %v2560_v61 = vsel %vm225_vm0, %v7446_v52, %v2435_v43  ;;  %v7449_v43 = vld [vmem:[#allocation2 + $0x170] sm:$0xff] }
 0x1c5   : > { %v1582_v15 = vsel %vm225_vm0, %v8645_v47, %v1458_v34 }
 0x1c7   : > { %v1544_v12 = vpop.permute.xlu1 %1543 }
 0x1c8   : > { %v1597_v33 = vsel %vm637_vm8, %v1581_v14, %v1544_v12  ;;  %v2437_v11 = vpop.permute.xlu0 %2436 }
 0x1c9   : > { %6887 = vmatprep.mubr.msk.f32.mxu0 %vm656_vm9, %v1597_v33  ;;  %v2561_v28 = vsel %vm225_vm0, %v7447_v27, %v2437_v11 }
 0x1cb   : > { %v2523_v21 = vpop.permute.xlu1 %2522 }
 0x1cc   : > { %v2576_v44 = vsel %vm637_vm8, %v2560_v61, %v2523_v21  ;;  %v1546_v58 = vpop.permute.xlu0 %1545 }
 0x1cd   : > { %6943 = vmatprep.mubr.msk.f32.mxu1 %vm656_vm9, %v2576_v44  ;;  %v1598_v3 = vsel %vm637_vm8, %v1582_v15, %v1546_v58 }
 0x1ce   : > { %6888 = vmatmul.mubr.msk.f32.gmra.mrb[10].mxu0 %vm656_vm9, %v1598_v3 }
 0x1cf   : > { %v2525_v51 = vpop.permute.xlu1 %2524 }
 0x1d0   : > { %v2577_v1 = vsel %vm637_vm8, %v2561_v28, %v2525_v51  ;;  %v1460_v57 = vpop.permute.xlu0 %1459 }
 0x1d1   : > { %6944 = vmatmul.mubr.msk.f32.gmra.mrb[10].mxu1 %vm656_vm9, %v2577_v1  ;;  %v1583_v47 = vsel %vm225_vm0, %v8683_v7, %v1460_v57  ;;  %v3439_v7 = vrot.slane %v9012_v24, 2 }
 0x1d3   : > { %v2439_v62 = vpop.permute.xlu1 %2438  ;;  %v3441_v22 = vsel %vm532_vm7, %v3439_v7, %v3440_v39 }
 0x1d4   : > { %v1462_v45 = vpop.permute.xlu0 %1461  ;;  %v2562_v13 = vsel %vm225_vm0, %v7448_v6, %v2439_v62  ;;  %3479 = vrot.lane.b32.xlu1 %v3441_v22, %s7493_s29 }
 0x1d5   : > { %v1584_v42 = vsel %vm225_vm0, %v8685_v2, %v1462_v45 }
 0x1d7   : > { %v1548_v55 = vpop.permute.xlu1 %1547 }
 0x1d8   : > { %v1599_v18 = vsel %vm637_vm8, %v1583_v47, %v1548_v55  ;;  %v2441_v29 = vpop.permute.xlu0 %2440 }
 0x1d9   : > { %6890 = vmatprep.mubr.msk.f32.mxu0 %vm656_vm9, %v1599_v18  ;;  %v2563_v34 = vsel %vm225_vm0, %v7449_v43, %v2441_v29 }
 0x1db   : > { %v2527_v50 = vpop.permute.xlu1 %2526 }
 0x1dc   : > { %v2578_v8 = vsel %vm637_vm8, %v2562_v13, %v2527_v50  ;;  %v1550_v17 = vpop.permute.xlu0 %1549 }
 0x1dd   : > { %6946 = vmatprep.mubr.msk.f32.mxu1 %vm656_vm9, %v2578_v8  ;;  %v1600_v38 = vsel %vm637_vm8, %v1584_v42, %v1550_v17 }
 0x1de   : > { %6891 = vmatmul.mubr.msk.f32.gmra.mrb[12].mxu0 %vm656_vm9, %v1600_v38 }
 0x1df   : > { %v2529_v14 = vpop.permute.xlu1 %2528 }
 0x1e0   : > { %v2579_v12 = vsel %vm637_vm8, %v2563_v34, %v2529_v14  ;;  %v1464_v2 = vpop.permute.xlu0 %1463 }
 0x1e1   : > { %6947 = vmatmul.mubr.msk.f32.gmra.mrb[12].mxu1 %vm656_vm9, %v2579_v12  ;;  %v1585_v52 = vsel %vm225_vm0, %v8732_v25, %v1464_v2 }
 0x1e3   : > { %v2443_v33 = vpop.permute.xlu1 %2442 }
 0x1e4   : > { %v1466_v11 = vpop.permute.xlu0 %1465  ;;  %v2564_v15 = vsel %vm225_vm0, %v8738_v54, %v2443_v33 }
 0x1e5   : > { %v1586_v27 = vsel %vm225_vm0, %v8734_v31, %v1466_v11 }
 0x1e7   : > { %v1552_v61 = vpop.permute.xlu1 %1551 }
 0x1e8   : > { %v1601_v21 = vsel %vm637_vm8, %v1585_v52, %v1552_v61  ;;  %v2445_v44 = vpop.permute.xlu0 %2444 }
 0x1e9   : > { %6893 = vmatprep.mubr.msk.f32.mxu0 %vm656_vm9, %v1601_v21  ;;  %v2565_v51 = vsel %vm225_vm0, %v8740_v32, %v2445_v44 }
 0x1eb   : > { %v2531_v58 = vpop.permute.xlu1 %2530 }
 0x1ec   : > { %v2580_v3 = vsel %vm637_vm8, %v2564_v15, %v2531_v58  ;;  %v1554_v28 = vpop.permute.xlu0 %1553 }
 0x1ed   : > { %6949 = vmatprep.mubr.msk.f32.mxu1 %vm656_vm9, %v2580_v3  ;;  %v1602_v25 = vsel %vm637_vm8, %v1586_v27, %v1554_v28 }
 0x1ee   : > { %6894 = vmatmul.mubr.msk.f32.gmra.mrb[14].mxu0 %vm656_vm9, %v1602_v25 }
 0x1ef   : > { %v2533_v1 = vpop.permute.xlu1 %2532 }
 0x1f0   : > { %v2581_v57 = vsel %vm637_vm8, %v2565_v51, %v2533_v1  ;;  %v2888_v62 = vpop.permute.xlu0 %2887 }
 0x1f1   : > { %6950 = vmatmul.mubr.msk.f32.gmra.mrb[14].mxu1 %vm656_vm9, %v2581_v57  ;;  %v3023_v31 = vsel %vm225_vm0, %v8788_v10, %v2888_v62 }
 0x1f3   : > { %v2890_v45 = vpop.permute.xlu1 %2889 }
 0x1f4   : > { %v2976_v47 = vpop.permute.xlu0 %2975  ;;  %v3024_v18 = vsel %vm225_vm0, %v8790_v49, %v2890_v45 }
 0x1f5   : > { %v3039_v55 = vsel %vm637_vm8, %v3023_v31, %v2976_v47 }
 0x1f6   : > { %6956 = vmatprep.mubr.msk.f32.mxu1 %vm656_vm9, %v3039_v55 }
 0x1f7   : > { %v2978_v48 = vpop.permute.xlu1 %2977 }
 0x1f8   : > { %v3040_v29 = vsel %vm637_vm8, %v3024_v18, %v2978_v48  ;;  %v2892_v0 = vpop.permute.xlu0 %2891 }
 0x1f9   : > { %6957 = vmatmul.mubr.msk.f32.vlgmr.msra.gmra.mrb[0].mxu1 %vm656_vm9, %v3040_v29  ;;  %v3025_v9 = vsel %vm225_vm0, %v8818_v35, %v2892_v0  ;;  %v9129_v0 = vld [vmem:[%s10676_s3] sm:$0xff] }
 0x1fb   : > { %v2894_v30 = vpop.permute.xlu1 %2893 }
 0x1fc   : > { %v3026_v10 = vsel %vm225_vm0, %v8820_v60, %v2894_v30  ;;  %v2980_v39 = vpop.permute.xlu0 %2979 }
 0x1fd   : > { %v3041_v41 = vsel %vm637_vm8, %v3025_v9, %v2980_v39  ;;  %v3560_v9 = vld [vmem:[%s10676_s3 + $0x8] sm:$0xf] }
 0x1fe   : > { %6959 = vmatprep.mubr.msk.f32.mxu1 %vm656_vm9, %v3041_v41 }
 0x1ff   : > { %v2982_v7 = vpop.permute.xlu1 %2981 }
 0x200   : > { %v3042_v49 = vsel %vm637_vm8, %v3026_v10, %v2982_v7  ;;  %v2896_v6 = vpop.permute.xlu0 %2895  ;;  %v7184_v7 = vpack.c.bf16 %v3560_v9, %v9129_v0 }
 0x201   : > { %6960 = vmatmul.mubr.msk.f32.gmra.mrb[2].mxu1 %vm656_vm9, %v3042_v49  ;;  %v3027_v13 = vsel %vm225_vm0, %v8842_v23, %v2896_v6 }
 0x202   : > { %7186 = vmatprep.subr.msk.bf16.mxu0 %vm7719_vm5, %v7184_v7 }
 0x203   : > { %v2898_v50 = vpop.permute.xlu1 %2897  ;;  %7189 = vmatpush3.bf16.msk.msra.mxu0 %vm7719_vm5, %v7184_v7 }
 0x204   : > { %v3028_v35 = vsel %vm225_vm0, %v8844_v36, %v2898_v50  ;;  %v2984_v20 = vpop.permute.xlu0 %2983 }
 0x205   : > { %v3043_v60 = vsel %vm637_vm8, %v3027_v13, %v2984_v20 }
 0x206   : > { %6962 = vmatprep.mubr.msk.f32.mxu1 %vm656_vm9, %v3043_v60 }
 0x207   : > { %v2986_v59 = vpop.permute.xlu1 %2985 }
 0x208   : > { %v3044_v8 = vsel %vm637_vm8, %v3028_v35, %v2986_v59  ;;  %v2900_v42 = vpop.permute.xlu0 %2899 }
 0x209   : > { %6963 = vmatmul.mubr.msk.f32.gmra.mrb[4].mxu1 %vm656_vm9, %v3044_v8  ;;  %v3029_v17 = vsel %vm225_vm0, %v8867_v40, %v2900_v42 }
 0x20b   : > { %v2902_v46 = vpop.permute.xlu1 %2901 }
 0x20c   : > { %v3030_v23 = vsel %vm225_vm0, %v8869_v56, %v2902_v46  ;;  %v2988_v22 = vpop.permute.xlu0 %2987 }
 0x20d   : > { %v3045_v36 = vsel %vm637_vm8, %v3029_v17, %v2988_v22 }
 0x20e   : > { %6965 = vmatprep.mubr.msk.f32.mxu1 %vm656_vm9, %v3045_v36 }
 0x20f   : > { %v2990_v38 = vpop.permute.xlu1 %2989 }
 0x210   : > { %v3046_v43 = vsel %vm637_vm8, %v3030_v23, %v2990_v38  ;;  %v2904_v34 = vpop.permute.xlu0 %2903 }
 0x211   : > { %6966 = vmatmul.mubr.msk.f32.gmra.mrb[6].mxu1 %vm656_vm9, %v3046_v43  ;;  %v3031_v14 = vsel %vm225_vm0, %v8888_v16, %v2904_v34 }
 0x213   : > { %v2906_v12 = vpop.permute.xlu1 %2905 }
 0x214   : > { %v3032_v40 = vsel %vm225_vm0, %v8890_v53, %v2906_v12  ;;  %v2992_v2 = vpop.permute.xlu0 %2991 }
 0x215   : > { %v3047_v56 = vsel %vm637_vm8, %v3031_v14, %v2992_v2 }
 0x216   : > { %6968 = vmatprep.mubr.msk.f32.mxu1 %vm656_vm9, %v3047_v56 }
 0x217   : > { %v2994_v33 = vpop.permute.xlu1 %2993 }
 0x218   : > { %v3048_v11 = vsel %vm637_vm8, %v3032_v40, %v2994_v33  ;;  %v2908_v52 = vpop.permute.xlu0 %2907 }
 0x219   : > { %6969 = vmatmul.mubr.msk.f32.gmra.mrb[8].mxu1 %vm656_vm9, %v3048_v11  ;;  %v3033_v61 = vsel %vm225_vm0, %v8913_v37, %v2908_v52 }
 0x21b   : > { %v2910_v21 = vpop.permute.xlu1 %2909 }
 0x21c   : > { %v3034_v16 = vsel %vm225_vm0, %v8915_v26, %v2910_v21  ;;  %v2996_v44 = vpop.permute.xlu0 %2995 }
 0x21d   : > { %v3049_v53 = vsel %vm637_vm8, %v3033_v61, %v2996_v44 }
 0x21e   : > { %6971 = vmatprep.mubr.msk.f32.mxu1 %vm656_vm9, %v3049_v53 }
 0x21f   : > { %v2998_v15 = vpop.permute.xlu1 %2997 }
 0x220   : > { %v3050_v58 = vsel %vm637_vm8, %v3034_v16, %v2998_v15  ;;  %v2912_v3 = vpop.permute.xlu0 %2911 }
 0x221   : > { %6972 = vmatmul.mubr.msk.f32.gmra.mrb[10].mxu1 %vm656_vm9, %v3050_v58  ;;  %v3035_v27 = vsel %vm225_vm0, %v8738_v54, %v2912_v3 }
 0x223   : > { %v2914_v28 = vpop.permute.xlu1 %2913 }
 0x224   : > { %v3036_v37 = vsel %vm225_vm0, %v8740_v32, %v2914_v28  ;;  %v3000_v25 = vpop.permute.xlu0 %2999 }
 0x225   : > { %v3051_v26 = vsel %vm637_vm8, %v3035_v27, %v3000_v25 }
 0x226   : > { %6974 = vmatprep.mubr.msk.f32.mxu1 %vm656_vm9, %v3051_v26 }
 0x227   : > { %v3002_v51 = vpop.permute.xlu1 %3001 }
 0x228   : > { %v3052_v1 = vsel %vm637_vm8, %v3036_v37, %v3002_v51  ;;  %v2916_v57 = vpop.permute.xlu0 %2915 }
 0x229   : > { %6975 = vmatmul.mubr.msk.f32.gmra.mrb[12].mxu1 %vm656_vm9, %v3052_v1  ;;  %v3037_v62 = vsel %vm225_vm0, %v8950_v19, %v2916_v57  ;;  %v9122_v19 = vld [vmem:[%s10675_s2] ss:$0 sm:$0xff] }
 0x22b   : > { %v2918_v45 = vpop.permute.xlu1 %2917 }
 0x22c   : > { %v3038_v54 = vsel %vm225_vm0, %v8952_v63, %v2918_v45  ;;  %v3004_v31 = vpop.permute.xlu0 %3003 }
 0x22d   : > { %v3053_v32 = vsel %vm637_vm8, %v3037_v62, %v3004_v31 }
 0x22e   : > { %6977 = vmatprep.mubr.msk.f32.mxu1 %vm656_vm9, %v3053_v32 }
 0x22f   : > { %v3006_v47 = vpop.permute.xlu1 %3005 }
 0x230   : > { %v3054_v55 = vsel %vm637_vm8, %v3038_v54, %v3006_v47  ;;  %v3392_v48 = vpop.permute.xlu0 %3391 }
 0x231   : > { %6978 = vmatmul.mubr.msk.f32.gmra.mrb[14].mxu1 %vm656_vm9, %v3054_v55  ;;  %v3527_v63 = vsel %vm225_vm0, %v9012_v24, %v3392_v48 }
 0x233   : > { %v3394_v18 = vpop.permute.xlu1 %3393 }
 0x234   : > { %v3528_v39 = vsel %vm225_vm0, %v9014_v5, %v3394_v18  ;;  %v3482_v13 = vpop.permute.xlu0 %3481 }
 0x235   : > { %v3544_v35 = vsel %vm637_vm8, %v3528_v39, %v3482_v13 }
 0x246   : > { %v3480_v41 = vpop.permute.xlu1 %3479 }
 0x247   : > { %v3543_v49 = vsel %vm637_vm8, %v3527_v63, %v3480_v41 }
 0x248   : > { %6984 = vmatprep.mubr.msk.f32.mxu0 %vm656_vm9, %v3543_v49 }
 0x249   : > { %6985 = vmatmul.mubr.msk.f32.vlgmr.msra.gmra.mrb[16].mxu0 %vm656_vm9, %v3544_v35 }
 0x251   : > { %v6874_v29 = vpop.f32.mrb[0].mxu0 }
 0x252   : > { %v7220_v30 = vadd.f32 %v6874_v29, %v9122_v19  ;;  %v1723_v10 = vpop.f32.mrb[1].mxu0 }
 0x253   : > { %v7221_v24 = vadd.f32 %v9122_v19, %v1723_v10 }
 0x254   : > { %v1819_v6 = vmax.f32 %v7220_v30, 0.0 }
 0x255   : > { %v1818_v50 = vmax.f32 %v7221_v24, 0.0 }
 0x256   : > { %1836 = vst.msk [vmem:[#allocation3 + $0x21] sm:$0xff] %vm225_vm0, %v1819_v6 }
 0x257   : > { %1835 = vst.msk [vmem:[#allocation3 + $0x19] sm:$0xff] %vm225_vm0, %v1818_v50 }
 0x25d   : > { %v3308_v5 = vld [vmem:[#allocation3 + $0x28] sm:$0x3] }
 0x25e   : > { %v9149_v20 = vld [vmem:[#allocation3 + $0x20] sm:$0xff]  ;;  %v3359_v60 = vrot.slane %v3308_v5, 1  ;;  %v9151_v59 = vld [vmem:[#allocation3 + $0x18] sm:$0xff]  ;;  %v3447_v17 = vrot.slane %v3308_v5, 2 }
 0x25f   : > { %v9154_v8 = vrot.slane %v9149_v20, 1  ;;  %v3356_v42 = vrot.slane %v9151_v59, 1  ;;  %v9164_v36 = vrot.slane %v9149_v20, 2  ;;  %v3444_v38 = vrot.slane %v9151_v59, 2 }
 0x261   : > { %v6877_v46 = vpop.f32.mrb[2].mxu0  ;;  %v3360_v23 = vsel %vm443_vm6, %v9154_v8, %v3359_v60  ;;  %v9161_v22 = vsel %vm443_vm6, %v3356_v42, %v9154_v8  ;;  %v3448_v2 = vsel %vm532_vm7, %v9164_v36, %v3447_v17  ;;  %v9176_v56 = vsel %vm532_vm7, %v3444_v38, %v9164_v36 }
 0x262   : > { %v7222_v43 = vadd.f32 %v6877_v46, %v9122_v19  ;;  %3397 = vrot.lane.b32.xlu1 %v3360_v23, %s7492_s28  ;;  %3395 = vrot.lane.b32.xlu0 %v9161_v22, %s7492_s28  ;;  %v1733_v34 = vpop.f32.mrb[3].mxu0 }
 0x263   : > { %v7223_v14 = vadd.f32 %v9122_v19, %v1733_v34 }
 0x264   : > { %v1821_v12 = vmax.f32 %v7222_v43, 0.0 }
 0x265   : > { %v1820_v40 = vmax.f32 %v7223_v14, 0.0 }
 0x266   : > { %1838 = vst.msk [vmem:[#allocation3 + $0x39] sm:$0xff] %vm225_vm0, %v1821_v12  ;;  %3485 = vrot.lane.b32.xlu0 %v3448_v2, %s7493_s29  ;;  %3483 = vrot.lane.b32.xlu1 %v9176_v56, %s7493_s29 }
 0x267   : > { %1837 = vst.msk [vmem:[#allocation3 + $0x31] sm:$0xff] %vm225_vm0, %v1820_v40 }
 0x26d   : > { %v9183_v33 = vld [vmem:[#allocation3 + $0x40] sm:$0x3] }
 0x26e   : > { %v9185_v11 = vld [vmem:[#allocation3 + $0x38] sm:$0xff]  ;;  %v3364_v52 = vrot.slane %v9183_v33, 1  ;;  %v9188_v61 = vld [vmem:[#allocation3 + $0x30] sm:$0xff] }
 0x26f   : > { %v9191_v21 = vrot.slane %v9185_v11, 1  ;;  %v3361_v16 = vrot.slane %v9188_v61, 1 }
 0x271   : > { %v6880_v44 = vpop.f32.mrb[4].mxu0  ;;  %v3365_v53 = vsel %vm443_vm6, %v9191_v21, %v3364_v52  ;;  %v9198_v15 = vsel %vm443_vm6, %v3361_v16, %v9191_v21 }
 0x272   : > { %v7224_v58 = vadd.f32 %v6880_v44, %v9122_v19  ;;  %3401 = vrot.lane.b32.xlu1 %v3365_v53, %s7492_s28  ;;  %3399 = vrot.lane.b32.xlu0 %v9198_v15, %s7492_s28  ;;  %v1743_v3 = vpop.f32.mrb[5].mxu0 }
 0x273   : > { %v7225_v27 = vadd.f32 %v9122_v19, %v1743_v3 }
 0x274   : > { %v1823_v28 = vmax.f32 %v7224_v58, 0.0 }
 0x275   : > { %v1822_v37 = vmax.f32 %v7225_v27, 0.0 }
 0x276   : > { %1840 = vst.msk [vmem:[#allocation3 + $0x51] sm:$0xff] %vm225_vm0, %v1823_v28 }
 0x277   : > { %1839 = vst.msk [vmem:[#allocation3 + $0x49] sm:$0xff] %vm225_vm0, %v1822_v37 }
 0x281   : > { %v6883_v25 = vpop.f32.mrb[6].mxu0 }
 0x282   : > { %v7226_v26 = vadd.f32 %v6883_v25, %v9122_v19  ;;  %v1753_v51 = vpop.f32.mrb[7].mxu0 }
 0x283   : > { %v7227_v1 = vadd.f32 %v9122_v19, %v1753_v51 }
 0x284   : > { %v1825_v57 = vmax.f32 %v7226_v26, 0.0 }
 0x285   : > { %v1824_v62 = vmax.f32 %v7227_v1, 0.0 }
 0x286   : > { %1842 = vst.msk [vmem:[#allocation3 + $0x69] sm:$0xff] %vm225_vm0, %v1825_v57 }
 0x287   : > { %1841 = vst.msk [vmem:[#allocation3 + $0x61] sm:$0xff] %vm225_vm0, %v1824_v62 }
 0x291   : > { %v6886_v45 = vpop.f32.mrb[8].mxu0 }
 0x292   : > { %v7228_v54 = vadd.f32 %v6886_v45, %v9122_v19  ;;  %v1763_v31 = vpop.f32.mrb[9].mxu0 }
 0x293   : > { %v7229_v32 = vadd.f32 %v9122_v19, %v1763_v31 }
 0x294   : > { %v1827_v47 = vmax.f32 %v7228_v54, 0.0 }
 0x295   : > { %v1826_v55 = vmax.f32 %v7229_v32, 0.0 }
 0x296   : > { %1844 = vst.msk [vmem:[#allocation3 + $0x81] sm:$0xff] %vm225_vm0, %v1827_v47 }
 0x297   : > { %1843 = vst.msk [vmem:[#allocation3 + $0x79] sm:$0xff] %vm225_vm0, %v1826_v55 }
 0x2a1   : > { %v6889_v18 = vpop.f32.mrb[10].mxu0 }
 0x2a2   : > { %v7230_v48 = vadd.f32 %v6889_v18, %v9122_v19  ;;  %v1773_v29 = vpop.f32.mrb[11].mxu0 }
 0x2a3   : > { %v7231_v63 = vadd.f32 %v9122_v19, %v1773_v29 }
 0x2a4   : > { %v1829_v9 = vmax.f32 %v7230_v48, 0.0 }
 0x2a5   : > { %v1828_v30 = vmax.f32 %v7231_v63, 0.0 }
 0x2a6   : > { %1846 = vst.msk [vmem:[#allocation3 + $0x99] sm:$0xff] %vm225_vm0, %v1829_v9  ;;  %v3449_v9 = vrot.slane %v9188_v61, 2 }
 0x2a7   : > { %1845 = vst.msk [vmem:[#allocation3 + $0x91] sm:$0xff] %vm225_vm0, %v1828_v30  ;;  %v9273_v30 = vrot.slane %v9185_v11, 2 }
 0x2b1   : > { %v6892_v10 = vpop.f32.mrb[12].mxu0 }
 0x2b2   : > { %v7232_v39 = vadd.f32 %v6892_v10, %v9122_v19  ;;  %v1783_v41 = vpop.f32.mrb[13].mxu0 }
 0x2b3   : > { %v7233_v7 = vadd.f32 %v9122_v19, %v1783_v41 }
 0x2b4   : > { %v1831_v24 = vmax.f32 %v7232_v39, 0.0  ;;  %v3452_v39 = vrot.slane %v9183_v33, 2 }
 0x2b5   : > { %v1830_v49 = vmax.f32 %v7233_v7, 0.0 }
 0x2b6   : > { %1848 = vst.msk [vmem:[#allocation3 + $0xb1] sm:$0xff] %vm225_vm0, %v1831_v24 }
 0x2b7   : > { %1847 = vst.msk [vmem:[#allocation3 + $0xa9] sm:$0xff] %vm225_vm0, %v1830_v49  ;;  %v9288_v49 = vsel %vm532_vm7, %v3449_v9, %v9273_v30 }
 0x2c1   : > { %v6895_v6 = vpop.f32.mrb[14].mxu0 }
 0x2c2   : > { %v7234_v13 = vadd.f32 %v6895_v6, %v9122_v19  ;;  %v1793_v50 = vpop.f32.mrb[15].mxu0 }
 0x2c3   : > { %v7235_v35 = vadd.f32 %v9122_v19, %v1793_v50  ;;  %v3453_v50 = vsel %vm532_vm7, %v9273_v30, %v3452_v39 }
 0x2c4   : > { %v1833_v5 = vmax.f32 %v7234_v13, 0.0 }
 0x2c5   : > { %v1832_v60 = vmax.f32 %v7235_v35, 0.0 }
 0x2c6   : > { %1850 = vst.msk [vmem:[#allocation3 + $0xc9] sm:$0xff] %vm225_vm0, %v1833_v5 }
 0x2c7   : > { %1849 = vst.msk [vmem:[#allocation3 + $0xc1] sm:$0xff] %vm225_vm0, %v1832_v60 }
 0x2cc   : > { %v6958_v42 = vpop.f32.mrb[0].mxu1 }
 0x2cd   : > { %v7236_v17 = vadd.f32 %v6958_v42, %v9122_v19  ;;  %v3174_v46 = vpop.f32.mrb[1].mxu1 }
 0x2ce   : > { %v7237_v23 = vadd.f32 %v9122_v19, %v3174_v46 }
 0x2cf   : > { %v3270_v38 = vmax.f32 %v7236_v17, 0.0 }
 0x2d0   : > { %v3269_v43 = vmax.f32 %v7237_v23, 0.0 }
 0x2d1   : > { %3287 = vst.msk [vmem:[#allocation3 + $0xe1] sm:$0xff] %vm225_vm0, %v3270_v38 }
 0x2d2   : > { %3286 = vst.msk [vmem:[#allocation3 + $0xd9] sm:$0xff] %vm225_vm0, %v3269_v43 }
 0x2d4   : > { %v6961_v34 = vpop.f32.mrb[2].mxu1  ;;  %v3396_v40 = vpop.permute.xlu0 %3395 }
 0x2d5   : > { %v7238_v14 = vadd.f32 %v6961_v34, %v9122_v19  ;;  %v3184_v12 = vpop.f32.mrb[3].mxu1  ;;  %v3398_v52 = vpop.permute.xlu1 %3397  ;;  %v3529_v53 = vsel %vm225_vm0, %v9151_v59, %v3396_v40  ;;  %v9318_v40 = vld [vmem:[#allocation3 + $0x50] sm:$0xff] }
 0x2d6   : > { %v7239_v2 = vadd.f32 %v9122_v19, %v3184_v12  ;;  %v3530_v58 = vsel %vm225_vm0, %v9149_v20, %v3398_v52  ;;  %v9316_v12 = vld [vmem:[#allocation3 + $0x48] sm:$0xff] }
 0x2d7   : > { %v3272_v16 = vmax.f32 %v7238_v14, 0.0 }
 0x2d8   : > { %v3271_v44 = vmax.f32 %v7239_v2, 0.0  ;;  %v3486_v3 = vpop.permute.xlu0 %3485  ;;  %v4789_v37 = vld [vmem:[#allocation3 + $0xe8] sm:$0x3] }
 0x2d9   : > { %3289 = vst.msk [vmem:[#allocation3 + $0xf9] sm:$0xff] %vm225_vm0, %v3272_v16  ;;  %v9238_v27 = vld [vmem:[#allocation3 + $0xd8] sm:$0xff]  ;;  %v9240_v28 = vld [vmem:[#allocation3 + $0xe0] sm:$0xff]  ;;  %v3546_v25 = vsel %vm637_vm8, %v3530_v58, %v3486_v3  ;;  %v3484_v26 = vpop.permute.xlu1 %3483  ;;  %v4928_v54 = vrot.slane %v4789_v37, 2  ;;  %v4840_v55 = vrot.slane %v4789_v37, 1  ;;  %v3454_v16 = vrot.slane %v9316_v12, 2 }
 0x2da   : > { %3288 = vst.msk [vmem:[#allocation3 + $0xf1] sm:$0xff] %vm225_vm0, %v3271_v44  ;;  %v4925_v51 = vrot.slane %v9238_v27, 2  ;;  %v9246_v1 = vrot.slane %v9240_v28, 2  ;;  %v4837_v59 = vrot.slane %v9238_v27, 1  ;;  %v3545_v20 = vsel %vm637_vm8, %v3529_v53, %v3484_v26 }
 0x2db   : > { %v9251_v57 = vrot.slane %v9240_v28, 1  ;;  %6987 = vmatprep.mubr.msk.f32.mxu0 %vm656_vm9, %v3545_v20  ;;  %v9327_v44 = vrot.slane %v9318_v40, 2  ;;  %v3366_v37 = vrot.slane %v9316_v12, 1  ;;  %v3314_v20 = vld [vmem:[#allocation3 + $0x58] sm:$0x3] }
 0x2dc   : > { %v6964_v62 = vpop.f32.mrb[4].mxu1  ;;  %v9256_v45 = vsel %vm532_vm7, %v4925_v51, %v9246_v1  ;;  %6988 = vmatmul.mubr.msk.f32.gmra.mrb[18].mxu0 %vm656_vm9, %v3546_v25  ;;  %v4929_v63 = vsel %vm532_vm7, %v9246_v1, %v4928_v54  ;;  %v9335_v25 = vrot.slane %v9318_v40, 1 }
 0x2dd   : > { %v7240_v31 = vadd.f32 %v6964_v62, %v9122_v19  ;;  %4964 = vrot.lane.b32.xlu1 %v9256_v45, %s7493_s29  ;;  %v9263_v32 = vsel %vm443_vm6, %v4837_v59, %v9251_v57  ;;  %v3194_v47 = vpop.f32.mrb[5].mxu1  ;;  %v4841_v10 = vsel %vm443_vm6, %v9251_v57, %v4840_v55 }
 0x2de   : > { %4876 = vrot.lane.b32.xlu0 %v9263_v32, %s7492_s28  ;;  %v7241_v18 = vadd.f32 %v9122_v19, %v3194_v47 }
 0x2df   : > { %v3274_v48 = vmax.f32 %v7240_v31, 0.0  ;;  %v9345_v31 = vsel %vm532_vm7, %v3454_v16, %v9327_v44  ;;  %v9393_v16 = vld [vmem:[#allocation3 + $0x68] sm:$0xff] }
 0x2e0   : > { %v3273_v29 = vmax.f32 %v7241_v18, 0.0  ;;  %v4792_v42 = vld [vmem:[#allocation3 + $0x100] sm:$0x3]  ;;  %v9356_v18 = vsel %vm443_vm6, %v3366_v37, %v9335_v25 }
 0x2e1   : > { %3291 = vst.msk [vmem:[#allocation3 + $0x111] sm:$0xff] %vm225_vm0, %v3274_v48  ;;  %4966 = vrot.lane.b32.xlu1 %v4929_v63, %s7493_s29  ;;  %v9280_v41 = vld [vmem:[#allocation3 + $0xf0] sm:$0xff]  ;;  %v9282_v7 = vld [vmem:[#allocation3 + $0xf8] sm:$0xff]  ;;  %v4933_v43 = vrot.slane %v4792_v42, 2  ;;  %v4845_v14 = vrot.slane %v4792_v42, 1  ;;  %v3369_v48 = vrot.slane %v3314_v20, 1 }
 0x2e2   : > { %3290 = vst.msk [vmem:[#allocation3 + $0x109] sm:$0xff] %vm225_vm0, %v3273_v29  ;;  %4878 = vrot.lane.b32.xlu0 %v4841_v10, %s7492_s28  ;;  %v4930_v6 = vrot.slane %v9280_v41, 2  ;;  %v9292_v13 = vrot.slane %v9282_v7, 2  ;;  %v4842_v5 = vrot.slane %v9280_v41, 1  ;;  %v9301_v60 = vrot.slane %v9282_v7, 1 }
 0x2e4   : > { %v6967_v24 = vpop.f32.mrb[6].mxu1  ;;  %v9307_v38 = vsel %vm532_vm7, %v4930_v6, %v9292_v13  ;;  %v9314_v34 = vsel %vm443_vm6, %v4842_v5, %v9301_v60  ;;  %v4934_v52 = vsel %vm532_vm7, %v9292_v13, %v4933_v43  ;;  %v4846_v58 = vsel %vm443_vm6, %v9301_v60, %v4845_v14 }
 0x2e5   : > { %v7242_v33 = vadd.f32 %v6967_v24, %v9122_v19  ;;  %3487 = vrot.lane.b32.xlu1 %v9288_v49, %s7493_s29  ;;  %v3204_v35 = vpop.f32.mrb[7].mxu1  ;;  %v3370_v24 = vsel %vm443_vm6, %v9335_v25, %v3369_v48  ;;  %v5041_v48 = vld [vmem:[%s10676_s3 + $0x8] sm:$0xf] }
 0x2e6   : > { %3489 = vrot.lane.b32.xlu0 %v3453_v50, %s7493_s29  ;;  %v7243_v17 = vadd.f32 %v9122_v19, %v3204_v35 }
 0x2e7   : > { %v3276_v46 = vmax.f32 %v7242_v33, 0.0  ;;  %v3457_v33 = vrot.slane %v3314_v20, 2 }
 0x2e8   : > { %v3275_v23 = vmax.f32 %v7243_v17, 0.0  ;;  %v4795_v50 = vld [vmem:[#allocation3 + $0x118] sm:$0x3] }
 0x2e9   : > { %3293 = vst.msk [vmem:[#allocation3 + $0x129] sm:$0xff] %vm225_vm0, %v3276_v46  ;;  %4968 = vrot.lane.b32.xlu1 %v9307_v38, %s7493_s29  ;;  %v9337_v26 = vld [vmem:[#allocation3 + $0x108] sm:$0xff]  ;;  %v9339_v51 = vld [vmem:[#allocation3 + $0x110] sm:$0xff]  ;;  %v4938_v46 = vrot.slane %v4795_v50, 2  ;;  %v4850_v43 = vrot.slane %v4795_v50, 1 }
 0x2ea   : > { %3292 = vst.msk [vmem:[#allocation3 + $0x121] sm:$0xff] %vm225_vm0, %v3275_v23  ;;  %4880 = vrot.lane.b32.xlu0 %v9314_v34, %s7492_s28  ;;  %10747 = vst [vmem:[#allocation7_spill] sm:$0xff] %v9339_v51  ;;  %v4847_v47 = vrot.slane %v9337_v26, 1  ;;  %v9349_v55 = vrot.slane %v9339_v51, 1  ;;  %v4935_v9 = vrot.slane %v9337_v26, 2  ;;  %v9367_v10 = vrot.slane %v9339_v51, 2 }
 0x2eb   : > { %v3458_v23 = vsel %vm532_vm7, %v9327_v44, %v3457_v33 }
 0x2ec   : > { %v6970_v2 = vpop.f32.mrb[8].mxu1  ;;  %v9363_v63 = vsel %vm443_vm6, %v4847_v47, %v9349_v55  ;;  %v9378_v17 = vsel %vm532_vm7, %v4935_v9, %v9367_v10  ;;  %v4851_v20 = vsel %vm443_vm6, %v9349_v55, %v4850_v43  ;;  %v9407_v47 = vrot.slane %v9393_v16, 1  ;;  %v9414_v9 = vld [vmem:[#allocation3 + $0x70] sm:$0x3] }
 0x2ed   : > { %v7244_v53 = vadd.f32 %v6970_v2, %v9122_v19  ;;  %4970 = vrot.lane.b32.xlu1 %v4934_v52, %s7493_s29  ;;  %v3214_v3 = vpop.f32.mrb[9].mxu1  ;;  %v9391_v52 = vld [vmem:[#allocation3 + $0x60] sm:$0xff] }
 0x2ee   : > { %4882 = vrot.lane.b32.xlu0 %v4846_v58, %s7492_s28  ;;  %v7245_v59 = vadd.f32 %v9122_v19, %v3214_v3  ;;  %v4939_v58 = vsel %vm532_vm7, %v9367_v10, %v4938_v46  ;;  %v3459_v50 = vrot.slane %v9391_v52, 2  ;;  %v9437_v46 = vld [vmem:[#allocation3 + $0xc8] sm:$0xff] }
 0x2ef   : > { %v3278_v62 = vmax.f32 %v7244_v53, 0.0 }
 0x2f0   : > { %v3277_v54 = vmax.f32 %v7245_v59, 0.0 }
 0x2f1   : > { %3295 = vst.msk [vmem:[#allocation3 + $0x141] sm:$0xff] %vm225_vm0, %v3278_v62  ;;  %3491 = vrot.lane.b32.xlu1 %v9345_v31, %s7493_s29  ;;  %v9385_v14 = vld [vmem:[#allocation3 + $0x120] sm:$0xff]  ;;  %v9387_v2 = vld [vmem:[#allocation3 + $0x128] sm:$0xff] }
 0x2f2   : > { %3294 = vst.msk [vmem:[#allocation3 + $0x139] sm:$0xff] %vm225_vm0, %v3277_v54  ;;  %3403 = vrot.lane.b32.xlu0 %v9356_v18, %s7492_s28  ;;  %10748 = vst [vmem:[#allocation6_spill] sm:$0xff] %v9385_v14  ;;  %v4852_v3 = vrot.slane %v9385_v14, 1  ;;  %v9399_v37 = vrot.slane %v9387_v2, 1  ;;  %v3371_v54 = vrot.slane %v9391_v52, 1 }
 0x2f3   : > { %10749 = vst [vmem:[#allocation4_spill] sm:$0xff] %v9387_v2 }
 0x2f4   : > { %v6973_v29 = vpop.f32.mrb[10].mxu1  ;;  %v9419_v33 = vsel %vm443_vm6, %v4852_v3, %v9399_v37 }
 0x2f5   : > { %v7246_v39 = vadd.f32 %v6973_v29, %v9122_v19  ;;  %4884 = vrot.lane.b32.xlu1 %v9363_v63, %s7492_s28  ;;  %v3224_v6 = vpop.f32.mrb[11].mxu1 }
 0x2f6   : > { %3405 = vrot.lane.b32.xlu0 %v3370_v24, %s7492_s28  ;;  %v7247_v35 = vadd.f32 %v9122_v19, %v3224_v6 }
 0x2f7   : > { %v3280_v5 = vmax.f32 %v7246_v39, 0.0  ;;  %v7202_v39 = vpack.c.bf16 %v5041_v48, %v9129_v0  ;;  %v3374_v0 = vrot.slane %v9414_v9, 1  ;;  %v4786_v48 = vld [vmem:[#allocation3 + $0xd0] sm:$0x3] }
 0x2f8   : > { %v3279_v42 = vmax.f32 %v7247_v35, 0.0  ;;  %v9423_v35 = vrot.slane %v9393_v16, 2 }
 0x2f9   : > { %3297 = vst.msk [vmem:[#allocation3 + $0x159] sm:$0xff] %vm225_vm0, %v3280_v5  ;;  %4972 = vrot.lane.b32.xlu1 %v9378_v17, %s7493_s29  ;;  %7204 = vmatprep.subr.msk.bf16.mxu1 %vm7719_vm5, %v7202_v39  ;;  %v9430_v5 = vsel %vm443_vm6, %v3371_v54, %v9407_v47  ;;  %v9459_v54 = vrot.slane %v9437_v46, 1 }
 0x2fa   : > { %3296 = vst.msk [vmem:[#allocation3 + $0x151] sm:$0xff] %vm225_vm0, %v3279_v42  ;;  %3493 = vrot.lane.b32.xlu0 %v3458_v23, %s7493_s29  ;;  %v9435_v42 = vld [vmem:[#allocation3 + $0xc0] sm:$0xff]  ;;  %7207 = vmatpush3.bf16.msk.msra.mxu1 %vm7719_vm5, %v7202_v39  ;;  %v9446_v43 = vsel %vm532_vm7, %v3459_v50, %v9423_v35  ;;  %v4923_v50 = vrot.slane %v4786_v48, 2 }
 0x2fb   : > { %10751 = vst [vmem:[#allocation11_spill] sm:$0xff] %v9459_v54 }
 0x2fc   : > { %v6976_v53 = vpop.f32.mrb[12].mxu1 }
 0x2fd   : > { %v7248_v59 = vadd.f32 %v6976_v53, %v9122_v19  ;;  %4974 = vrot.lane.b32.xlu1 %v4939_v58, %s7493_s29  ;;  %v3234_v62 = vpop.f32.mrb[13].mxu1  ;;  %v4920_v53 = vrot.slane %v9435_v42, 2  ;;  %v9450_v58 = vrot.slane %v9437_v46, 2 }
 0x2fe   : > { %4886 = vrot.lane.b32.xlu0 %v4851_v20, %s7492_s28  ;;  %v7249_v29 = vadd.f32 %v9122_v19, %v3234_v62  ;;  %v4832_v62 = vrot.slane %v9435_v42, 1 }
 0x2ff   : > { %v3282_v24 = vmax.f32 %v7248_v59, 0.0  ;;  %10750 = vst [vmem:[#allocation5_spill] sm:$0xff] %v9450_v58  ;;  %v3375_v59 = vsel %vm443_vm6, %v9407_v47, %v3374_v0 }
 0x300   : > { %v3281_v6 = vmax.f32 %v7249_v29, 0.0  ;;  %v9470_v0 = vsel %vm443_vm6, %v4832_v62, %v9459_v54 }
 0x301   : > { %3299 = vst.msk [vmem:[#allocation3 + $0x171] sm:$0xff] %vm225_vm0, %v3282_v24  ;;  %4888 = vrot.lane.b32.xlu1 %v9419_v33, %s7492_s28  ;;  %10753 = vst [vmem:[#allocation8_spill] sm:$0xff] %v9470_v0  ;;  %v9556_v51 = vld [vmem:[#allocation3 + $0x150] sm:$0xff] }
 0x302   : > { %3298 = vst.msk [vmem:[#allocation3 + $0x169] sm:$0xff] %vm225_vm0, %v3281_v6  ;;  %3407 = vrot.lane.b32.xlu0 %v9430_v5, %s7492_s28  ;;  %v9465_v6 = vsel %vm532_vm7, %v4920_v53, %v9450_v58  ;;  %v4924_v53 = vsel %vm532_vm7, %v9450_v58, %v4923_v50  ;;  %v9496_v50 = vld [vmem:[#allocation3 + $0x138] sm:$0xff]  ;;  %10764 = vst [vmem:[#allocation21_spill] sm:$0xff] %v9556_v51 }
 0x303   : > { %10752 = vst [vmem:[#allocation10_spill] sm:$0xff] %v9465_v6  ;;  %10754 = vst [vmem:[#allocation9_spill] sm:$0xff] %v9496_v50 }
 0x304   : > { %v6979_v23 = vpop.f32.mrb[14].mxu1 }
 0x305   : > { %v7250_v3 = vadd.f32 %v6979_v23, %v9122_v19  ;;  %3495 = vrot.lane.b32.xlu1 %v9446_v43, %s7493_s29  ;;  %v3244_v20 = vpop.f32.mrb[15].mxu1  ;;  %v4835_v23 = vrot.slane %v4786_v48, 1 }
 0x306   : > { %3409 = vrot.lane.b32.xlu0 %v3375_v59, %s7492_s28  ;;  %v7251_v29 = vadd.f32 %v9122_v19, %v3244_v20  ;;  %v4798_v19 = vld [vmem:[#allocation3 + $0x130] sm:$0x3]  ;;  %v9481_v59 = vrot.slane %v9387_v2, 2  ;;  %v4945_v2 = vrot.slane %v9496_v50, 2 }
 0x307   : > { %v3284_v39 = vmax.f32 %v7250_v3, 0.0  ;;  %v4940_v3 = vrot.slane %v9385_v14, 2  ;;  %v4836_v20 = vsel %vm443_vm6, %v9459_v54, %v4835_v23  ;;  %v4855_v62 = vrot.slane %v4798_v19, 1  ;;  %v9498_v23 = vld [vmem:[#allocation3 + $0x140] sm:$0xff] }
 0x308   : > { %v3283_v24 = vmax.f32 %v7251_v29, 0.0  ;;  %v4943_v29 = vrot.slane %v4798_v19, 2  ;;  %10755 = vst [vmem:[#allocation12_spill] sm:$0xff] %v9498_v23 }
 0x309   : > { %3301 = vst.msk [vmem:[#allocation3 + $0x189] sm:$0xff] %vm225_vm0, %v3284_v39  ;;  %4960 = vrot.lane.b32.xlu1 %v9465_v6, %s7493_s29  ;;  %v9489_v48 = vsel %vm532_vm7, %v4940_v3, %v9481_v59  ;;  %v4856_v39 = vsel %vm443_vm6, %v9399_v37, %v4855_v62  ;;  %v4857_v3 = vrot.slane %v9496_v50, 1  ;;  %v9509_v62 = vrot.slane %v9498_v23, 1  ;;  %v3320_v6 = vld [vmem:[#allocation3 + $0x88] sm:$0x3] }
 0x30a   : > { %3300 = vst.msk [vmem:[#allocation3 + $0x181] sm:$0xff] %vm225_vm0, %v3283_v24  ;;  %4872 = vrot.lane.b32.xlu0 %v9470_v0, %s7492_s28  ;;  %v3462_v24 = vrot.slane %v9414_v9, 2  ;;  %v4944_v19 = vsel %vm532_vm7, %v9481_v59, %v4943_v29 }
 0x30b   : > { %10758 = vst [vmem:[#allocation15_spill] sm:$0xff] %v9509_v62  ;;  %v9521_v29 = vsel %vm443_vm6, %v4857_v3, %v9509_v62 }
 0x30c   : > { %v3463_v9 = vsel %vm532_vm7, %v9423_v35, %v3462_v24 }
 0x30d   : > { %4962 = vrot.lane.b32.xlu1 %v4924_v53, %s7493_s29  ;;  %v9501_v53 = vld [vmem:[#allocation3 + $0x78] sm:$0xff] }
 0x30e   : > { %4874 = vrot.lane.b32.xlu0 %v4836_v20, %s7492_s28  ;;  %10756 = vst [vmem:[#allocation13_spill] sm:$0xff] %v9501_v53  ;;  %v9503_v20 = vld [vmem:[#allocation3 + $0x80] sm:$0xff]  ;;  %v3376_v58 = vrot.slane %v9501_v53, 1  ;;  %v3464_v54 = vrot.slane %v9501_v53, 2 }
 0x30f   : > { %10757 = vst [vmem:[#allocation14_spill] sm:$0xff] %v9503_v20  ;;  %v9525_v0 = vrot.slane %v9503_v20, 2 }
 0x311   : > { %4976 = vrot.lane.b32.xlu1 %v9489_v48, %s7493_s29  ;;  %10760 = vst [vmem:[#allocation17_spill] sm:$0xff] %v9525_v0  ;;  %v9537_v3 = vsel %vm532_vm7, %v3464_v54, %v9525_v0 }
 0x312   : > { %4890 = vrot.lane.b32.xlu0 %v4856_v39, %s7492_s28  ;;  %v9516_v39 = vrot.slane %v9503_v20, 1  ;;  %10761 = vst [vmem:[#allocation18_spill] sm:$0xff] %v9537_v3  ;;  %v9541_v20 = vrot.slane %v9498_v23, 2  ;;  %v3467_v23 = vrot.slane %v3320_v6, 2 }
 0x314   : > { %10759 = vst [vmem:[#allocation16_spill] sm:$0xff] %v9516_v39  ;;  %v9529_v24 = vsel %vm443_vm6, %v3376_v58, %v9516_v39  ;;  %10762 = vst [vmem:[#allocation19_spill] sm:$0xff] %v9541_v20  ;;  %v9550_v14 = vsel %vm532_vm7, %v4945_v2, %v9541_v20 }
 0x315   : > { %4978 = vrot.lane.b32.xlu1 %v4944_v19, %s7493_s29  ;;  %v3379_v19 = vrot.slane %v3320_v6, 1  ;;  %10763 = vst [vmem:[#allocation20_spill] sm:$0xff] %v9550_v14  ;;  %v3468_v6 = vsel %vm532_vm7, %v9525_v0, %v3467_v23  ;;  %v9616_v0 = vld [vmem:[#allocation3 + $0x168] sm:$0xff] }
 0x316   : > { %3497 = vrot.lane.b32.xlu0 %v3463_v9, %s7493_s29  ;;  %v4801_v9 = vld [vmem:[#allocation3 + $0x148] sm:$0x3]  ;;  %10775 = vst [vmem:[#allocation32_spill] sm:$0xff] %v9616_v0 }
 0x317   : > { %v3380_v58 = vsel %vm443_vm6, %v9516_v39, %v3379_v19  ;;  %v4860_v53 = vrot.slane %v4801_v9, 1  ;;  %v4948_v54 = vrot.slane %v4801_v9, 2  ;;  %v9558_v19 = vld [vmem:[#allocation3 + $0x158] sm:$0xff]  ;;  %v4862_v9 = vrot.slane %v9556_v51, 1 }
 0x318   : > { %10765 = vst [vmem:[#allocation22_spill] sm:$0xff] %v9558_v19 }
 0x319   : > { %4892 = vrot.lane.b32.xlu1 %v9521_v29, %s7492_s28  ;;  %v4861_v50 = vsel %vm443_vm6, %v9509_v62, %v4860_v53  ;;  %v4949_v2 = vsel %vm532_vm7, %v9541_v20, %v4948_v54  ;;  %v9569_v53 = vrot.slane %v9558_v19, 1  ;;  %v3323_v62 = vld [vmem:[#allocation3 + $0xa0] sm:$0x3] }
 0x31a   : > { %3411 = vrot.lane.b32.xlu0 %v9529_v24, %s7492_s28 }
 0x31b   : > { %10768 = vst [vmem:[#allocation25_spill] sm:$0xff] %v9569_v53  ;;  %v9581_v54 = vsel %vm443_vm6, %v4862_v9, %v9569_v53 }
 0x31c   : > { %10770 = vst [vmem:[#allocation27_spill] sm:$0xff] %v9581_v54 }
 0x31d   : > { %3499 = vrot.lane.b32.xlu1 %v9537_v3, %s7493_s29  ;;  %v9561_v3 = vld [vmem:[#allocation3 + $0x90] sm:$0xff] }
 0x31e   : > { %3413 = vrot.lane.b32.xlu0 %v3380_v58, %s7492_s28  ;;  %10766 = vst [vmem:[#allocation23_spill] sm:$0xff] %v9561_v3  ;;  %v9563_v58 = vld [vmem:[#allocation3 + $0x98] sm:$0xff]  ;;  %v3469_v20 = vrot.slane %v9561_v3, 2 }
 0x31f   : > { %10767 = vst [vmem:[#allocation24_spill] sm:$0xff] %v9563_v58  ;;  %v9585_v39 = vrot.slane %v9563_v58, 2 }
 0x321   : > { %4980 = vrot.lane.b32.xlu1 %v9550_v14, %s7493_s29  ;;  %v3381_v14 = vrot.slane %v9561_v3, 1  ;;  %v9597_v9 = vsel %vm532_vm7, %v3469_v20, %v9585_v39  ;;  %v4950_v3 = vrot.slane %v9556_v51, 2 }
 0x322   : > { %4894 = vrot.lane.b32.xlu0 %v4861_v50, %s7492_s28  ;;  %v9576_v50 = vrot.slane %v9563_v58, 1  ;;  %10772 = vst [vmem:[#allocation29_spill] sm:$0xff] %v9597_v9  ;;  %v9601_v58 = vrot.slane %v9558_v19, 2  ;;  %v3472_v19 = vrot.slane %v3323_v62, 2 }
 0x324   : > { %10769 = vst [vmem:[#allocation26_spill] sm:$0xff] %v9576_v50  ;;  %v9589_v23 = vsel %vm443_vm6, %v3381_v14, %v9576_v50  ;;  %10773 = vst [vmem:[#allocation30_spill] sm:$0xff] %v9601_v58 }
 0x325   : > { %4982 = vrot.lane.b32.xlu1 %v4949_v2, %s7493_s29  ;;  %10771 = vst [vmem:[#allocation28_spill] sm:$0xff] %v9589_v23  ;;  %v3384_v2 = vrot.slane %v3323_v62, 1  ;;  %v3473_v62 = vsel %vm532_vm7, %v9585_v39, %v3472_v19 }
 0x326   : > { %3501 = vrot.lane.b32.xlu0 %v3468_v6, %s7493_s29  ;;  %v4804_v6 = vld [vmem:[#allocation3 + $0x160] sm:$0x3] }
 0x327   : > { %v3385_v14 = vsel %vm443_vm6, %v9576_v50, %v3384_v2  ;;  %v4953_v20 = vrot.slane %v4804_v6, 2  ;;  %v9618_v2 = vld [vmem:[#allocation3 + $0x170] sm:$0xff] }
 0x328   : > { %10776 = vst [vmem:[#allocation33_spill] sm:$0xff] %v9618_v2 }
 0x329   : > { %4896 = vrot.lane.b32.xlu1 %v9581_v54, %s7492_s28  ;;  %v4865_v54 = vrot.slane %v4804_v6, 1  ;;  %v4867_v6 = vrot.slane %v9616_v0, 1 }
 0x32a   : > { %3415 = vrot.lane.b32.xlu0 %v9589_v23, %s7492_s28  ;;  %v9610_v23 = vsel %vm532_vm7, %v4950_v3, %v9601_v58  ;;  %v4954_v3 = vsel %vm532_vm7, %v9601_v58, %v4953_v20 }
 0x32b   : > { %10774 = vst [vmem:[#allocation31_spill] sm:$0xff] %v9610_v23  ;;  %v4866_v51 = vsel %vm443_vm6, %v9569_v53, %v4865_v54  ;;  %v9629_v54 = vrot.slane %v9618_v2, 1  ;;  %v3326_v53 = vld [vmem:[#allocation3 + $0xb8] sm:$0x3] }
 0x32d   : > { %3503 = vrot.lane.b32.xlu1 %v9597_v9, %s7493_s29  ;;  %v9621_v9 = vld [vmem:[#allocation3 + $0xa8] sm:$0xff]  ;;  %v9641_v20 = vsel %vm443_vm6, %v4867_v6, %v9629_v54 }
 0x32e   : > { %3417 = vrot.lane.b32.xlu0 %v3385_v14, %s7492_s28  ;;  %10777 = vst [vmem:[#allocation34_spill] sm:$0xff] %v9621_v9  ;;  %v9623_v14 = vld [vmem:[#allocation3 + $0xb0] sm:$0xff]  ;;  %10779 = vst [vmem:[#allocation36_spill] sm:$0xff] %v9641_v20  ;;  %v3474_v58 = vrot.slane %v9621_v9, 2 }
 0x32f   : > { %10778 = vst [vmem:[#allocation35_spill] sm:$0xff] %v9623_v14  ;;  %v9645_v50 = vrot.slane %v9623_v14, 2 }
 0x331   : > { %4984 = vrot.lane.b32.xlu1 %v9610_v23, %s7493_s29  ;;  %v3386_v23 = vrot.slane %v9621_v9, 1  ;;  %10780 = vst [vmem:[#allocation37_spill] sm:$0xff] %v9645_v50  ;;  %v9657_v6 = vsel %vm532_vm7, %v3474_v58, %v9645_v50  ;;  %v4955_v9 = vrot.slane %v9616_v0, 2 }
 0x332   : > { %4898 = vrot.lane.b32.xlu0 %v4866_v51, %s7492_s28  ;;  %v9636_v51 = vrot.slane %v9623_v14, 1  ;;  %v9661_v14 = vrot.slane %v9618_v2, 2  ;;  %v3477_v2 = vrot.slane %v3326_v53, 2 }
 0x334   : > { %v9649_v19 = vsel %vm443_vm6, %v3386_v23, %v9636_v51  ;;  %10782 = vst [vmem:[#allocation39_spill] sm:$0xff] %v9661_v14 }
 0x335   : > { %4986 = vrot.lane.b32.xlu1 %v4954_v3, %s7493_s29  ;;  %10781 = vst [vmem:[#allocation38_spill] sm:$0xff] %v9649_v19  ;;  %v3389_v3 = vrot.slane %v3326_v53, 1  ;;  %v3478_v53 = vsel %vm532_vm7, %v9645_v50, %v3477_v2 }
 0x336   : > { %3505 = vrot.lane.b32.xlu0 %v3473_v62, %s7493_s29  ;;  %v4807_v62 = vld [vmem:[#allocation3 + $0x178] sm:$0x3] }
 0x337   : > { %v3390_v23 = vsel %vm443_vm6, %v9636_v51, %v3389_v3  ;;  %v4958_v58 = vrot.slane %v4807_v62, 2 }
 0x339   : > { %4900 = vrot.lane.b32.xlu1 %v9641_v20, %s7492_s28  ;;  %v4870_v20 = vrot.slane %v4807_v62, 1  ;;  %v4959_v3 = vsel %vm532_vm7, %v9661_v14, %v4958_v58  ;;  %v3775_v58 = vld [vmem:[#allocation3 + $0x28] sm:$0x3] }
 0x33a   : > { %3419 = vrot.lane.b32.xlu0 %v9649_v19, %s7492_s28  ;;  %v9670_v19 = vsel %vm532_vm7, %v4955_v9, %v9661_v14  ;;  %v6468_v9 = vld [vmem:[%s10676_s3 + $0x18] sm:$0xf]  ;;  %v3824_v2 = vrot.slane %v3775_v58, 1  ;;  %v3912_v14 = vrot.slane %v3775_v58, 2 }
 0x33b   : > { %v4871_v0 = vsel %vm443_vm6, %v9629_v54, %v4870_v20  ;;  %v6523_v20 = vld [vmem:[%s10676_s3 + $0x18] sm:$0xf] }
 0x33d   : > { %3507 = vrot.lane.b32.xlu1 %v9657_v6, %s7493_s29 }
 0x33e   : > { %3421 = vrot.lane.b32.xlu0 %v3390_v23, %s7492_s28  ;;  %v6467_v23 = vld [vmem:[%s10676_s3 + $0x10] sm:$0xff] }
 0x33f   : > { %v9691_v62 = vpack.c.bf16 %v6523_v20, %v6467_v23  ;;  %v3825_v20 = vsel %vm443_vm6, %v9154_v8, %v3824_v2 }
 0x341   : > { %4988 = vrot.lane.b32.xlu1 %v9670_v19, %s7493_s29  ;;  %7210 = vmatprep.subr.msk.bf16.mxu1 %vm7719_vm5, %v9691_v62 }
 0x342   : > { %4902 = vrot.lane.b32.xlu0 %v4871_v0, %s7492_s28  ;;  %v7190_v0 = vpack.c.bf16 %v6468_v9, %v6467_v23  ;;  %v3402_v23 = vpop.permute.xlu1 %3401  ;;  %v3400_v9 = vpop.permute.xlu0 %3399 }
 0x344   : > { %7192 = vmatprep.subr.msk.bf16.mxu0 %vm7719_vm5, %v7190_v0 }
 0x345   : > { %4990 = vrot.lane.b32.xlu1 %v4959_v3, %s7493_s29  ;;  %7195 = vmatpush3.bf16.msk.msra.mxu0 %vm7719_vm5, %v7190_v0  ;;  %v5256_v3 = vld [vmem:[#allocation3 + $0xe8] sm:$0x3] }
 0x346   : > { %3509 = vrot.lane.b32.xlu0 %v3478_v53, %s7493_s29  ;;  %v5305_v53 = vrot.slane %v5256_v3, 1 }
 0x349   : > { %5342 = vrot.lane.b32.xlu1 %v9263_v32, %s7492_s28  ;;  %v5393_v32 = vrot.slane %v5256_v3, 2  ;;  %v3532_v3 = vsel %vm225_vm0, %v9185_v11, %v3402_v23 }
 0x34a   : > { %3861 = vrot.lane.b32.xlu0 %v9161_v22, %s7492_s28  ;;  %v5306_v22 = vsel %vm443_vm6, %v9251_v57, %v5305_v53  ;;  %v3778_v57 = vld [vmem:[#allocation3 + $0x40] sm:$0x3] }
 0x34b   : > { %v5394_v2 = vsel %vm532_vm7, %v9246_v1, %v5393_v32 }
 0x34d   : > { %3949 = vrot.lane.b32.xlu1 %v9176_v56, %s7493_s29 }
 0x34e   : > { %3863 = vrot.lane.b32.xlu0 %v3825_v20, %s7492_s28  ;;  %v3913_v20 = vsel %vm532_vm7, %v9164_v36, %v3912_v14  ;;  %v3829_v36 = vrot.slane %v3778_v57, 1 }
 0x34f   : > { %v9710_v0 = vpop.permute.xlu1 %4964 }
 0x350   : > { %v9712_v50 = vpop.permute.xlu0 %4876  ;;  %v3830_v23 = vsel %vm443_vm6, %v9191_v21, %v3829_v36 }
 0x351   : > { %5430 = vrot.lane.b32.xlu1 %v9256_v45, %s7493_s29  ;;  %v3531_v45 = vsel %vm225_vm0, %v9188_v61, %v3400_v9  ;;  %v5259_v61 = vld [vmem:[#allocation3 + $0x100] sm:$0x3] }
 0x352   : > { %5344 = vrot.lane.b32.xlu0 %v5306_v22, %s7492_s28 }
 0x353   : > { %v9719_v8 = vpop.permute.xlu1 %4966 }
 0x354   : > { %v9721_v56 = vpop.permute.xlu0 %4878 }
 0x355   : > { %5432 = vrot.lane.b32.xlu1 %v5394_v2, %s7493_s29 }
 0x356   : > { %3951 = vrot.lane.b32.xlu0 %v3913_v20, %s7493_s29  ;;  %v3917_v20 = vrot.slane %v3778_v57, 2 }
 0x357   : > { %v3488_v58 = vpop.permute.xlu1 %3487 }
 0x358   : > { %v3490_v53 = vpop.permute.xlu0 %3489  ;;  %v3547_v22 = vsel %vm637_vm8, %v3531_v45, %v3488_v58 }
 0x359   : > { %v3548_v1 = vsel %vm637_vm8, %v3532_v3, %v3490_v53  ;;  %5346 = vrot.lane.b32.xlu1 %v9314_v34, %s7492_s28  ;;  %6990 = vmatprep.mubr.msk.f32.mxu0 %vm656_vm9, %v3547_v22  ;;  %v5310_v34 = vrot.slane %v5259_v61, 1  ;;  %v3918_v3 = vsel %vm532_vm7, %v9273_v30, %v3917_v20  ;;  %v5262_v30 = vld [vmem:[#allocation3 + $0x118] sm:$0x3] }
 0x35a   : > { %3865 = vrot.lane.b32.xlu0 %v9198_v15, %s7492_s28  ;;  %6991 = vmatmul.mubr.msk.f32.gmra.mrb[20].mxu0 %vm656_vm9, %v3548_v1  ;;  %v5398_v15 = vrot.slane %v5259_v61, 2 }
 0x35b   : > { %v9741_v14 = vpop.permute.xlu1 %4968  ;;  %v5311_v2 = vsel %vm443_vm6, %v9301_v60, %v5310_v34  ;;  %v5403_v34 = vrot.slane %v5262_v30, 2 }
 0x35c   : > { %v9743_v11 = vpop.permute.xlu0 %4880 }
 0x35d   : > { %3953 = vrot.lane.b32.xlu1 %v9288_v49, %s7493_s29  ;;  %v5399_v49 = vsel %vm532_vm7, %v9292_v13, %v5398_v15 }
 0x35e   : > { %3867 = vrot.lane.b32.xlu0 %v3830_v23, %s7492_s28 }
 0x35f   : > { %v9750_v9 = vpop.permute.xlu1 %4970 }
 0x360   : > { %v9752_v32 = vpop.permute.xlu0 %4882 }
 0x361   : > { %5434 = vrot.lane.b32.xlu1 %v9307_v38, %s7493_s29  ;;  %v3781_v38 = vld [vmem:[#allocation3 + $0x58] sm:$0x3] }
 0x362   : > { %5348 = vrot.lane.b32.xlu0 %v5311_v2, %s7492_s28  ;;  %v3834_v13 = vrot.slane %v3781_v38, 1  ;;  %v5404_v2 = vsel %vm532_vm7, %v9367_v10, %v5403_v34 }
 0x363   : > { %v3492_v21 = vpop.permute.xlu1 %3491 }
 0x364   : > { %v3404_v45 = vpop.permute.xlu0 %3403  ;;  %v3835_v61 = vsel %vm443_vm6, %v9335_v25, %v3834_v13  ;;  %v3922_v25 = vrot.slane %v3781_v38, 2 }
 0x365   : > { %v3533_v58 = vsel %vm225_vm0, %v9316_v12, %v3404_v45  ;;  %5436 = vrot.lane.b32.xlu1 %v5399_v49, %s7493_s29 }
 0x366   : > { %v3549_v60 = vsel %vm637_vm8, %v3533_v58, %v3492_v21  ;;  %3955 = vrot.lane.b32.xlu0 %v3918_v3, %s7493_s29  ;;  %v3923_v20 = vsel %vm532_vm7, %v9327_v44, %v3922_v25  ;;  %v5265_v44 = vld [vmem:[#allocation3 + $0x130] sm:$0x3] }
 0x367   : > { %6993 = vmatprep.mubr.msk.f32.mxu0 %vm656_vm9, %v3549_v60  ;;  %v9769_v57 = vpop.permute.xlu1 %4884  ;;  %v5320_v38 = vrot.slane %v5265_v44, 1 }
 0x368   : > { %v3406_v53 = vpop.permute.xlu0 %3405 }
 0x369   : > { %5350 = vrot.lane.b32.xlu1 %v9363_v63, %s7492_s28  ;;  %v3534_v22 = vsel %vm225_vm0, %v9318_v40, %v3406_v53  ;;  %v5315_v63 = vrot.slane %v5262_v30, 1  ;;  %v5010_v53 = vsel %vm225_vm0, %v9238_v27, %v9712_v50  ;;  %v5011_v27 = vsel %vm225_vm0, %v9240_v28, %v9721_v56 }
 0x36a   : > { %3869 = vrot.lane.b32.xlu0 %v9356_v18, %s7492_s28 }
 0x36b   : > { %v9775_v12 = vpop.permute.xlu1 %4972  ;;  %v5316_v40 = vsel %vm443_vm6, %v9349_v55, %v5315_v63  ;;  %v3784_v55 = vld [vmem:[#allocation3 + $0x70] sm:$0x3] }
 0x36c   : > { %v3494_v1 = vpop.permute.xlu0 %3493  ;;  %v3839_v10 = vrot.slane %v3784_v55, 1  ;;  %v3927_v30 = vrot.slane %v3784_v55, 2 }
 0x36d   : > { %v3550_v36 = vsel %vm637_vm8, %v3534_v22, %v3494_v1  ;;  %3957 = vrot.lane.b32.xlu1 %v9345_v31, %s7493_s29  ;;  %v5026_v1 = vsel %vm637_vm8, %v5010_v53, %v9710_v0  ;;  %v5027_v0 = vsel %vm637_vm8, %v5011_v27, %v9719_v8 }
 0x36e   : > { %3871 = vrot.lane.b32.xlu0 %v3835_v61, %s7492_s28  ;;  %6994 = vmatmul.mubr.msk.f32.gmra.mrb[22].mxu0 %vm656_vm9, %v3550_v36  ;;  %v3928_v28 = vsel %vm532_vm7, %v9423_v35, %v3927_v30  ;;  %v10783_v61 = vld [vmem:[#allocation7_spill] sm:$0xff] }
 0x36f   : > { %v9786_v18 = vpop.permute.xlu1 %4974 }
 0x370   : > { %v9788_v23 = vpop.permute.xlu0 %4886 }
 0x371   : > { %5438 = vrot.lane.b32.xlu1 %v9378_v17, %s7493_s29 }
 0x372   : > { %5352 = vrot.lane.b32.xlu0 %v5316_v40, %s7492_s28  ;;  %v10786_v40 = vld [vmem:[#allocation6_spill] sm:$0xff] }
 0x373   : > { %v9795_v31 = vpop.permute.xlu1 %4888 }
 0x374   : > { %v3408_v15 = vpop.permute.xlu0 %3407 }
 0x375   : > { %5440 = vrot.lane.b32.xlu1 %v5404_v2, %s7493_s29  ;;  %v3535_v17 = vsel %vm225_vm0, %v9391_v52, %v3408_v15  ;;  %v3840_v52 = vsel %vm443_vm6, %v9407_v47, %v3839_v10  ;;  %v10787_v15 = vld [vmem:[#allocation13_spill] sm:$0xff]  ;;  %v10790_v10 = vld [vmem:[#allocation20_spill] sm:$0xff] }
 0x376   : > { %3959 = vrot.lane.b32.xlu0 %v3923_v20, %s7493_s29 }
 0x377   : > { %v3496_v21 = vpop.permute.xlu1 %3495 }
 0x378   : > { %v3410_v45 = vpop.permute.xlu0 %3409  ;;  %v3551_v49 = vsel %vm637_vm8, %v3535_v17, %v3496_v21  ;;  %v10788_v21 = vld [vmem:[#allocation4_spill] sm:$0xff] }
 0x379   : > { %5354 = vrot.lane.b32.xlu1 %v9419_v33, %s7492_s28  ;;  %6996 = vmatprep.mubr.msk.f32.mxu0 %vm656_vm9, %v3551_v49  ;;  %v3536_v35 = vsel %vm225_vm0, %v9393_v16, %v3410_v45  ;;  %v5268_v16 = vld [vmem:[#allocation3 + $0x148] sm:$0x3] }
 0x37a   : > { %3873 = vrot.lane.b32.xlu0 %v9430_v5, %s7492_s28  ;;  %v5325_v34 = vrot.slane %v5268_v16, 1 }
 0x37b   : > { %v4961_v58 = vpop.permute.xlu1 %4960 }
 0x37c   : > { %v4873_v3 = vpop.permute.xlu0 %4872 }
 0x37d   : > { %v5008_v60 = vsel %vm225_vm0, %v9435_v42, %v4873_v3  ;;  %3961 = vrot.lane.b32.xlu1 %v9446_v43, %s7493_s29  ;;  %v5408_v42 = vrot.slane %v5265_v44, 2  ;;  %v5321_v43 = vsel %vm443_vm6, %v9399_v37, %v5320_v38  ;;  %v5012_v37 = vsel %vm225_vm0, %v9280_v41, %v9743_v11  ;;  %v3787_v41 = vld [vmem:[#allocation3 + $0x88] sm:$0x3]  ;;  %v10791_v3 = vld [vmem:[#allocation9_spill] sm:$0xff] }
 0x37e   : > { %v5024_v33 = vsel %vm637_vm8, %v5008_v60, %v4961_v58  ;;  %3875 = vrot.lane.b32.xlu0 %v3840_v52, %s7492_s28  ;;  %v5028_v56 = vsel %vm637_vm8, %v5012_v37, %v9741_v14  ;;  %v3844_v36 = vrot.slane %v3787_v41, 1  ;;  %v3932_v44 = vrot.slane %v3787_v41, 2  ;;  %v5271_v41 = vld [vmem:[#allocation3 + $0x160] sm:$0x3] }
 0x37f   : > { %7068 = vmatprep.mubr.msk.f32.mxu1 %vm656_vm9, %v5024_v33  ;;  %v4963_v5 = vpop.permute.xlu1 %4962  ;;  %v5409_v50 = vsel %vm532_vm7, %v9481_v59, %v5408_v42  ;;  %v5013_v59 = vsel %vm225_vm0, %v9282_v7, %v9752_v32  ;;  %v5014_v7 = vsel %vm225_vm0, %v9337_v26, %v9769_v57  ;;  %v10784_v26 = vld [vmem:[#allocation16_spill] sm:$0xff] }
 0x380   : > { %v4875_v13 = vpop.permute.xlu0 %4874  ;;  %v5029_v14 = vsel %vm637_vm8, %v5013_v59, %v9750_v9  ;;  %v5030_v32 = vsel %vm637_vm8, %v5014_v7, %v9775_v12  ;;  %v3845_v57 = vsel %vm443_vm6, %v10784_v26, %v3844_v36  ;;  %v10800_v36 = vld [vmem:[#allocation23_spill] sm:$0xff] }
 0x381   : > { %v5009_v47 = vsel %vm225_vm0, %v9437_v46, %v4875_v13  ;;  %5442 = vrot.lane.b32.xlu1 %v9489_v48, %s7493_s29  ;;  %v10793_v13 = vld [vmem:[#allocation17_spill] sm:$0xff] }
 0x382   : > { %v5025_v22 = vsel %vm637_vm8, %v5009_v47, %v4963_v5  ;;  %5356 = vrot.lane.b32.xlu0 %v5321_v43, %s7492_s28  ;;  %v10792_v5 = vld [vmem:[#allocation19_spill] sm:$0xff]  ;;  %v3933_v42 = vsel %vm532_vm7, %v10793_v13, %v3932_v44  ;;  %v3790_v47 = vld [vmem:[#allocation3 + $0xa0] sm:$0x3]  ;;  %v10794_v43 = vld [vmem:[#allocation12_spill] sm:$0xff] }
 0x383   : > { %7069 = vmatmul.mubr.msk.f32.vlgmr.msra.gmra.mrb[16].mxu1 %vm656_vm9, %v5025_v22  ;;  %v4977_v46 = vpop.permute.xlu1 %4976  ;;  %v3937_v26 = vrot.slane %v3790_v47, 2  ;;  %v10808_v44 = vld [vmem:[#allocation38_spill] sm:$0xff] }
 0x384   : > { %v4891_v48 = vpop.permute.xlu0 %4890  ;;  %7071 = vmatprep.mubr.msk.f32.mxu1 %vm656_vm9, %v5026_v1  ;;  %7213 = vmatpush3.bf16.msk.msra.mxu1 %vm7719_vm5, %v9691_v62  ;;  %v10795_v1 = vld [vmem:[#allocation14_spill] sm:$0xff] }
 0x385   : > { %5444 = vrot.lane.b32.xlu1 %v5409_v50, %s7493_s29  ;;  %v5017_v45 = vsel %vm225_vm0, %v10788_v21, %v4891_v48  ;;  %v10796_v50 = vld [vmem:[#allocation27_spill] sm:$0xff] }
 0x386   : > { %3963 = vrot.lane.b32.xlu0 %v3928_v28, %s7493_s29  ;;  %v3849_v28 = vrot.slane %v3790_v47, 1 }
 0x387   : > { %7072 = vmatmul.mubr.msk.f32.gmra.mrb[18].mxu1 %vm656_vm9, %v5027_v0  ;;  %v4979_v62 = vpop.permute.xlu1 %4978  ;;  %v10797_v0 = vld [vmem:[#allocation28_spill] sm:$0xff] }
 0x388   : > { %v3498_v11 = vpop.permute.xlu0 %3497  ;;  %7074 = vmatprep.mubr.msk.f32.mxu1 %vm656_vm9, %v5028_v56  ;;  %v5033_v58 = vsel %vm637_vm8, %v5017_v45, %v4979_v62  ;;  %v10798_v62 = vld [vmem:[#allocation26_spill] sm:$0xff] }
 0x389   : > { %v3552_v8 = vsel %vm637_vm8, %v3536_v35, %v3498_v11  ;;  %5358 = vrot.lane.b32.xlu1 %v9521_v29, %s7492_s28  ;;  %v5015_v29 = vsel %vm225_vm0, %v10783_v61, %v9788_v23  ;;  %v5016_v23 = vsel %vm225_vm0, %v10786_v40, %v9795_v31  ;;  %v10789_v31 = vld [vmem:[#allocation15_spill] sm:$0xff]  ;;  %v3850_v35 = vsel %vm443_vm6, %v10798_v62, %v3849_v28  ;;  %v10799_v11 = vld [vmem:[#allocation29_spill] sm:$0xff] }
 0x38a   : > { %3877 = vrot.lane.b32.xlu0 %v9529_v24, %s7492_s28  ;;  %6997 = vmatmul.mubr.msk.f32.gmra.mrb[24].mxu0 %vm656_vm9, %v3552_v8  ;;  %v10785_v24 = vld [vmem:[#allocation18_spill] sm:$0xff]  ;;  %v5031_v12 = vsel %vm637_vm8, %v5015_v29, %v9786_v18  ;;  %v5032_v25 = vsel %vm637_vm8, %v5016_v23, %v4977_v46  ;;  %v5413_v18 = vrot.slane %v5268_v16, 2  ;;  %v5326_v49 = vsel %vm443_vm6, %v10789_v31, %v5325_v34  ;;  %v10801_v29 = vld [vmem:[#allocation25_spill] sm:$0xff] }
 0x38b   : > { %7075 = vmatmul.mubr.msk.f32.gmra.mrb[20].mxu1 %vm656_vm9, %v5029_v14  ;;  %v4893_v9 = vpop.permute.xlu1 %4892  ;;  %v5330_v8 = vrot.slane %v5271_v41, 1  ;;  %v5418_v61 = vrot.slane %v5271_v41, 2  ;;  %v10804_v23 = vld [vmem:[#allocation30_spill] sm:$0xff]  ;;  %v10812_v28 = vld [vmem:[#allocation37_spill] sm:$0xff]  ;;  %v3796_v41 = vld [vmem:[#allocation3 + $0xd0] sm:$0x3] }
 0x38c   : > { %v3412_v63 = vpop.permute.xlu0 %3411  ;;  %7077 = vmatprep.mubr.msk.f32.mxu1 %vm656_vm9, %v5030_v32  ;;  %v5018_v60 = vsel %vm225_vm0, %v10791_v3, %v4893_v9  ;;  %v5414_v53 = vsel %vm532_vm7, %v10792_v5, %v5413_v18  ;;  %v10806_v18 = vld [vmem:[#allocation24_spill] sm:$0xff] }
 0x38d   : > { %3965 = vrot.lane.b32.xlu1 %v10785_v24, %s7493_s29  ;;  %v3537_v2 = vsel %vm225_vm0, %v10787_v15, %v3412_v63  ;;  %v5331_v9 = vsel %vm443_vm6, %v10801_v29, %v5330_v8  ;;  %v10802_v63 = vld [vmem:[#allocation31_spill] sm:$0xff]  ;;  %v3938_v15 = vsel %vm532_vm7, %v9585_v39, %v3937_v26  ;;  %v10807_v39 = vld [vmem:[#allocation36_spill] sm:$0xff] }
 0x38e   : > { %3879 = vrot.lane.b32.xlu0 %v3845_v57, %s7492_s28  ;;  %v10803_v57 = vld [vmem:[#allocation21_spill] sm:$0xff] }
 0x38f   : > { %7078 = vmatmul.mubr.msk.f32.gmra.mrb[22].mxu1 %vm656_vm9, %v5031_v12  ;;  %v3500_v20 = vpop.permute.xlu1 %3499 }
 0x390   : > { %v3414_v55 = vpop.permute.xlu0 %3413  ;;  %7080 = vmatprep.mubr.msk.f32.mxu1 %vm656_vm9, %v5032_v25  ;;  %v3553_v17 = vsel %vm637_vm8, %v3537_v2, %v3500_v20  ;;  %v5419_v25 = vsel %vm532_vm7, %v10804_v23, %v5418_v61  ;;  %v3793_v2 = vld [vmem:[#allocation3 + $0xb8] sm:$0x3]  ;;  %v10805_v20 = vld [vmem:[#allocation22_spill] sm:$0xff]  ;;  %v5277_v61 = vld [vmem:[#allocation3 + $0x190] sm:$0x3] }
 0x391   : > { %5446 = vrot.lane.b32.xlu1 %v10790_v10, %s7493_s29  ;;  %6999 = vmatprep.mubr.msk.f32.mxu0 %vm656_vm9, %v3553_v17  ;;  %v3538_v27 = vsel %vm225_vm0, %v10795_v1, %v3414_v55  ;;  %v3854_v10 = vrot.slane %v3793_v2, 1 }
 0x392   : > { %5360 = vrot.lane.b32.xlu0 %v5326_v49, %s7492_s28 }
 0x393   : > { %7081 = vmatmul.mubr.msk.f32.gmra.mrb[24].mxu1 %vm656_vm9, %v5033_v58  ;;  %v4981_v52 = vpop.permute.xlu1 %4980  ;;  %v5274_v58 = vld [vmem:[#allocation3 + $0x178] sm:$0x3] }
 0x394   : > { %v4895_v38 = vpop.permute.xlu0 %4894  ;;  %v5034_v33 = vsel %vm637_vm8, %v5018_v60, %v4981_v52  ;;  %v3855_v52 = vsel %vm443_vm6, %v9636_v51, %v3854_v10  ;;  %v5423_v47 = vrot.slane %v5274_v58, 2  ;;  %v3942_v51 = vrot.slane %v3793_v2, 2 }
 0x395   : > { %5448 = vrot.lane.b32.xlu1 %v5414_v53, %s7493_s29  ;;  %7083 = vmatprep.mubr.msk.f32.mxu1 %vm656_vm9, %v5034_v33  ;;  %v5019_v30 = vsel %vm225_vm0, %v10794_v43, %v4895_v38  ;;  %v5335_v38 = vrot.slane %v5274_v58, 1  ;;  %v10809_v33 = vld [vmem:[#allocation34_spill] sm:$0xff] }
 0x396   : > { %3967 = vrot.lane.b32.xlu0 %v3933_v42, %s7493_s29 }
 0x397   : > { %v4983_v22 = vpop.permute.xlu1 %4982  ;;  %v5336_v43 = vsel %vm443_vm6, %v9629_v54, %v5335_v38  ;;  %v10811_v54 = vld [vmem:[#allocation39_spill] sm:$0xff] }
 0x398   : > { %v3502_v46 = vpop.permute.xlu0 %3501  ;;  %v5035_v37 = vsel %vm637_vm8, %v5019_v30, %v4983_v22  ;;  %v9978_v30 = vld [vmem:[#allocation3 + $0x188] sm:$0xff]  ;;  %v10810_v22 = vld [vmem:[#allocation32_spill] sm:$0xff] }
 0x399   : > { %v3554_v48 = vsel %vm637_vm8, %v3538_v27, %v3502_v46  ;;  %5362 = vrot.lane.b32.xlu1 %v10796_v50, %s7492_s28  ;;  %7084 = vmatmul.mubr.msk.f32.gmra.mrb[26].mxu1 %vm656_vm9, %v5035_v37  ;;  %v9988_v50 = vrot.slane %v9978_v30, 1  ;;  %v10013_v26 = vrot.slane %v9978_v30, 2 }
 0x39a   : > { %3881 = vrot.lane.b32.xlu0 %v10797_v0, %s7492_s28  ;;  %7000 = vmatmul.mubr.msk.f32.gmra.mrb[26].mxu0 %vm656_vm9, %v3554_v48  ;;  %v5424_v48 = vsel %vm532_vm7, %v10811_v54, %v5423_v47  ;;  %v3943_v0 = vsel %vm532_vm7, %v10812_v28, %v3942_v51  ;;  %v6486_v47 = vld [vmem:[%s10676_s3 + $0x20] sm:$0xff]  ;;  %v6542_v51 = vld [vmem:[%s10676_s3 + $0x28] sm:$0xf] }
 0x39b   : > { %v4897_v56 = vpop.permute.xlu1 %4896  ;;  %v7214_v54 = vpack.c.bf16 %v6542_v51, %v6486_v47 }
 0x39c   : > { %v3416_v59 = vpop.permute.xlu0 %3415  ;;  %v5020_v24 = vsel %vm225_vm0, %v10803_v57, %v4897_v56  ;;  %v10813_v56 = vld [vmem:[#allocation33_spill] sm:$0xff]  ;;  %v10816_v57 = vld [vmem:[#allocation11_spill] sm:$0xff] }
 0x39d   : > { %3969 = vrot.lane.b32.xlu1 %v10799_v11, %s7493_s29  ;;  %v3539_v14 = vsel %vm225_vm0, %v10800_v36, %v3416_v59  ;;  %7216 = vmatprep.subr.msk.bf16.mxu1 %vm7719_vm5, %v7214_v54 }
 0x39e   : > { %3883 = vrot.lane.b32.xlu0 %v3850_v35, %s7492_s28  ;;  %v10814_v35 = vld [vmem:[#allocation35_spill] sm:$0xff] }
 0x39f   : > { %v3504_v7 = vpop.permute.xlu1 %3503 }
 0x3a0   : > { %v3418_v16 = vpop.permute.xlu0 %3417  ;;  %v3555_v32 = vsel %vm637_vm8, %v3539_v14, %v3504_v7 }
 0x3a1   : > { %5450 = vrot.lane.b32.xlu1 %v10802_v63, %s7493_s29  ;;  %7002 = vmatprep.mubr.msk.f32.mxu0 %vm656_vm9, %v3555_v32  ;;  %v3540_v21 = vsel %vm225_vm0, %v10806_v18, %v3418_v16  ;;  %v3859_v16 = vrot.slane %v3796_v41, 1  ;;  %v10815_v32 = vld [vmem:[#allocation8_spill] sm:$0xff]  ;;  %v3947_v18 = vrot.slane %v3796_v41, 2 }
 0x3a2   : > { %5364 = vrot.lane.b32.xlu0 %v5331_v9, %s7492_s28 }
 0x3a3   : > { %v4985_v34 = vpop.permute.xlu1 %4984 }
 0x3a4   : > { %v4899_v12 = vpop.permute.xlu0 %4898  ;;  %v5036_v40 = vsel %vm637_vm8, %v5020_v24, %v4985_v34  ;;  %v3860_v24 = vsel %vm443_vm6, %v10816_v57, %v3859_v16  ;;  %v10817_v34 = vld [vmem:[#allocation10_spill] sm:$0xff] }
 0x3a5   : > { %5452 = vrot.lane.b32.xlu1 %v5419_v25, %s7493_s29  ;;  %7086 = vmatprep.mubr.msk.f32.mxu1 %vm656_vm9, %v5036_v40  ;;  %v5021_v55 = vsel %vm225_vm0, %v10805_v20, %v4899_v12  ;;  %v5340_v12 = vrot.slane %v5277_v61, 1  ;;  %v7450_v40 = vld [vmem:[#allocation3 + $0x18] sm:$0xff] }
 0x3a6   : > { %3971 = vrot.lane.b32.xlu0 %v3938_v15, %s7493_s29 }
 0x3a7   : > { %v4987_v17 = vpop.permute.xlu1 %4986 }
 0x3a8   : > { %v3506_v45 = vpop.permute.xlu0 %3505  ;;  %v5037_v31 = vsel %vm637_vm8, %v5021_v55, %v4987_v17  ;;  %v5428_v55 = vrot.slane %v5277_v61, 2  ;;  %v5341_v17 = vsel %vm443_vm6, %v9988_v50, %v5340_v12 }
 0x3a9   : > { %v3556_v49 = vsel %vm637_vm8, %v3540_v21, %v3506_v45  ;;  %5366 = vrot.lane.b32.xlu1 %v10807_v39, %s7492_s28  ;;  %7087 = vmatmul.mubr.msk.f32.gmra.mrb[28].mxu1 %vm656_vm9, %v5037_v31  ;;  %v10031_v21 = vld [vmem:[#allocation3 + $0xf0] sm:$0xff]  ;;  %v10033_v45 = vld [vmem:[#allocation3 + $0xf8] sm:$0xff] }
 0x3aa   : > { %3885 = vrot.lane.b32.xlu0 %v10808_v44, %s7492_s28  ;;  %7003 = vmatmul.mubr.msk.f32.gmra.mrb[28].mxu0 %vm656_vm9, %v3556_v49  ;;  %v10036_v31 = vld [vmem:[#allocation3 + $0x30] sm:$0xff]  ;;  %v10038_v49 = vld [vmem:[#allocation3 + $0x38] sm:$0xff]  ;;  %v5774_v38 = vrot.slane %v10033_v45, 1  ;;  %v5861_v16 = vrot.slane %v10031_v21, 2 }
 0x3ab   : > { %v4901_v3 = vpop.permute.xlu1 %4900  ;;  %v7451_v39 = vld [vmem:[#allocation3 + $0xd8] sm:$0xff] }
 0x3ac   : > { %v3420_v60 = vpop.permute.xlu0 %3419  ;;  %v5022_v1 = vsel %vm225_vm0, %v10810_v22, %v4901_v3  ;;  %v7452_v22 = vld [vmem:[#allocation3 + $0xe0] sm:$0xff] }
 0x3ad   : > { %3973 = vrot.lane.b32.xlu1 %v9657_v6, %s7493_s29  ;;  %v3541_v5 = vsel %vm225_vm0, %v10809_v33, %v3420_v60  ;;  %v9976_v6 = vld [vmem:[#allocation3 + $0x180] sm:$0xff]  ;;  %v5429_v60 = vsel %vm532_vm7, %v10013_v26, %v5428_v55  ;;  %v10818_v33 = vld [vmem:[#allocation5_spill] sm:$0xff]  ;;  %v10105_v55 = vld [vmem:[#allocation3 + $0x50] sm:$0xff] }
 0x3ae   : > { %3887 = vrot.lane.b32.xlu0 %v3855_v52, %s7492_s28  ;;  %v5425_v63 = vrot.slane %v9976_v6, 2  ;;  %v5773_v52 = vrot.slane %v10031_v21, 1 }
 0x3af   : > { %v3508_v53 = vpop.permute.xlu1 %3507 }
 0x3b0   : > { %v3422_v13 = vpop.permute.xlu0 %3421  ;;  %v3557_v42 = vsel %vm637_vm8, %v3541_v5, %v3508_v53  ;;  %v10024_v20 = vsel %vm532_vm7, %v5425_v63, %v10013_v26  ;;  %v3948_v5 = vsel %vm532_vm7, %v10818_v33, %v3947_v18  ;;  %v4293_v53 = vrot.slane %v10036_v31, 1 }
 0x3b1   : > { %5454 = vrot.lane.b32.xlu1 %v9670_v19, %s7493_s29  ;;  %7005 = vmatprep.mubr.msk.f32.mxu0 %vm656_vm9, %v3557_v42  ;;  %v5337_v19 = vrot.slane %v9976_v6, 1  ;;  %v3542_v11 = vsel %vm225_vm0, %v10814_v35, %v3422_v13  ;;  %v4294_v13 = vrot.slane %v10038_v49, 1  ;;  %v10052_v42 = vld [vmem:[#allocation3 + $0x40] sm:$0x3]  ;;  %v5775_v41 = vsel %vm443_vm6, %v5773_v52, %v5774_v38 }
 0x3b2   : > { %5368 = vrot.lane.b32.xlu0 %v5336_v43, %s7492_s28  ;;  %v6487_v43 = vld [vmem:[%s10676_s3 + $0x28] sm:$0xf]  ;;  %v4296_v35 = vrot.slane %v10052_v42, 1  ;;  %v4299_v33 = vrot.slane %v10105_v55, 1 }
 0x3b3   : > { %v4989_v27 = vpop.permute.xlu1 %4988  ;;  %v10002_v14 = vsel %vm443_vm6, %v5337_v19, %v9988_v50 }
 0x3b4   : > { %v4903_v46 = vpop.permute.xlu0 %4902  ;;  %v5038_v37 = vsel %vm637_vm8, %v5022_v1, %v4989_v27  ;;  %v4297_v61 = vsel %vm443_vm6, %v4294_v13, %v4296_v35 }
 0x3b5   : > { %5456 = vrot.lane.b32.xlu1 %v5424_v48, %s7493_s29  ;;  %7089 = vmatprep.mubr.msk.f32.mxu1 %vm656_vm9, %v5038_v37  ;;  %v5023_v59 = vsel %vm225_vm0, %v10813_v56, %v4903_v46  ;;  %v4381_v46 = vrot.slane %v10036_v31, 2  ;;  %v7196_v37 = vpack.c.bf16 %v6487_v43, %v6486_v47  ;;  %v7453_v48 = vld [vmem:[#allocation3 + $0x20] sm:$0xff]  ;;  %v4382_v56 = vrot.slane %v10038_v49, 2  ;;  %v7457_v43 = vld [vmem:[#allocation3 + $0x38] sm:$0xff] }
 0x3b6   : > { %3975 = vrot.lane.b32.xlu0 %v3943_v0, %s7493_s29 }
 0x3b7   : > { %v4991_v62 = vpop.permute.xlu1 %4990  ;;  %7198 = vmatprep.subr.msk.bf16.mxu0 %vm7719_vm5, %v7196_v37 }
 0x3b8   : > { %v3510_v8 = vpop.permute.xlu0 %3509  ;;  %v5039_v36 = vsel %vm637_vm8, %v5023_v59, %v4991_v62  ;;  %v4295_v62 = vsel %vm443_vm6, %v4293_v53, %v4294_v13  ;;  %v7456_v53 = vld [vmem:[#allocation3 + $0xf8] sm:$0xff] }
 0x3b9   : > { %v3558_v7 = vsel %vm637_vm8, %v3542_v11, %v3510_v8  ;;  %5370 = vrot.lane.b32.xlu1 %v10002_v14, %s7492_s28  ;;  %7090 = vmatmul.mubr.msk.f32.gmra.mrb[30].mxu1 %vm656_vm9, %v5039_v36  ;;  %v5727_v11 = vld [vmem:[#allocation3 + $0x100] sm:$0x3] }
 0x3ba   : > { %3889 = vrot.lane.b32.xlu0 %v10815_v32, %s7492_s28  ;;  %7006 = vmatmul.mubr.msk.f32.gmra.mrb[30].mxu0 %vm656_vm9, %v3558_v7  ;;  %v4383_v7 = vsel %vm532_vm7, %v4381_v46, %v4382_v56  ;;  %v5862_v32 = vrot.slane %v10033_v45, 2  ;;  %v4387_v46 = vrot.slane %v10105_v55, 2 }
 0x3bb   : > { %v5343_v29 = vpop.permute.xlu1 %5342 }
 0x3bc   : > { %v3862_v9 = vpop.permute.xlu0 %3861  ;;  %v5478_v10 = vsel %vm225_vm0, %v7451_v39, %v5343_v29  ;;  %v5776_v29 = vrot.slane %v5727_v11, 1  ;;  %v5863_v12 = vsel %vm532_vm7, %v5861_v16, %v5862_v32 }
 0x3bd   : > { %3977 = vrot.lane.b32.xlu1 %v10817_v34, %s7493_s29  ;;  %v3997_v23 = vsel %vm225_vm0, %v7450_v40, %v3862_v9  ;;  %v7454_v9 = vld [vmem:[#allocation3 + $0x30] sm:$0xff]  ;;  %v5864_v40 = vrot.slane %v5727_v11, 2  ;;  %v7458_v11 = vld [vmem:[#allocation3 + $0x48] sm:$0xff] }
 0x3be   : > { %3891 = vrot.lane.b32.xlu0 %v3860_v24, %s7492_s28  ;;  %v5777_v4 = vsel %vm443_vm6, %v5774_v38, %v5776_v29 }
 0x3bf   : > { %v3950_v25 = vpop.permute.xlu1 %3949 }
 0x3c0   : > { %v3864_v15 = vpop.permute.xlu0 %3863  ;;  %v4013_v2 = vsel %vm637_vm8, %v3997_v23, %v3950_v25  ;;  %v4384_v23 = vrot.slane %v10052_v42, 2  ;;  %v10098_v25 = vld [vmem:[#allocation3 + $0x108] sm:$0xff] }
 0x3c1   : > { %5458 = vrot.lane.b32.xlu1 %v10024_v20, %s7493_s29  ;;  %7012 = vmatprep.mubr.msk.f32.mxu0 %vm656_vm9, %v4013_v2  ;;  %v3998_v19 = vsel %vm225_vm0, %v7453_v48, %v3864_v15  ;;  %v10100_v15 = vld [vmem:[#allocation3 + $0x110] sm:$0xff]  ;;  %v10103_v2 = vld [vmem:[#allocation3 + $0x48] sm:$0xff] }
 0x3c2   : > { %5372 = vrot.lane.b32.xlu0 %v5341_v17, %s7492_s28  ;;  %v7455_v17 = vld [vmem:[#allocation3 + $0xf0] sm:$0xff]  ;;  %v4385_v52 = vsel %vm532_vm7, %v4382_v56, %v4384_v23  ;;  %v4298_v38 = vrot.slane %v10103_v2, 1  ;;  %v4386_v47 = vrot.slane %v10103_v2, 2  ;;  %v5866_v56 = vrot.slane %v10098_v25, 2 }
 0x3c3   : > { %v5431_v44 = vpop.permute.xlu1 %5430 }
 0x3c4   : > { %v5345_v58 = vpop.permute.xlu0 %5344  ;;  %v5494_v3 = vsel %vm637_vm8, %v5478_v10, %v5431_v44 }
 0x3c5   : > { %5460 = vrot.lane.b32.xlu1 %v5429_v60, %s7493_s29  ;;  %7096 = vmatprep.mubr.msk.f32.mxu1 %vm656_vm9, %v5494_v3  ;;  %v5479_v1 = vsel %vm225_vm0, %v7452_v22, %v5345_v58  ;;  %v5865_v58 = vsel %vm532_vm7, %v5862_v32, %v5864_v40  ;;  %v5778_v3 = vrot.slane %v10098_v25, 1  ;;  %v5779_v60 = vrot.slane %v10100_v15, 1 }
 0x3c6   : > { %3979 = vrot.lane.b32.xlu0 %v3948_v5, %s7493_s29  ;;  %v4250_v5 = vld [vmem:[#allocation3 + $0x58] sm:$0x3] }
 0x3c7   : > { %v5433_v27 = vpop.permute.xlu1 %5432  ;;  %v4301_v48 = vrot.slane %v4250_v5, 1 }
 0x3c8   : > { %v3952_v28 = vpop.permute.xlu0 %3951  ;;  %v5495_v0 = vsel %vm637_vm8, %v5479_v1, %v5433_v27  ;;  %v5780_v27 = vsel %vm443_vm6, %v5778_v3, %v5779_v60 }
 0x3c9   : > { %v4014_v59 = vsel %vm637_vm8, %v3998_v19, %v3952_v28  ;;  %5813 = vrot.lane.b32.xlu1 %v5775_v41, %s7492_s28  ;;  %7097 = vmatmul.mubr.msk.f32.vlgmr.msra.gmra.mrb[16].mxu1 %vm656_vm9, %v5495_v0  ;;  %v5730_v19 = vld [vmem:[#allocation3 + $0x118] sm:$0x3]  ;;  %v4388_v41 = vsel %vm532_vm7, %v4386_v47, %v4387_v46 }
 0x3ca   : > { %4333 = vrot.lane.b32.xlu0 %v4295_v62, %s7492_s28  ;;  %7013 = vmatmul.mubr.msk.f32.vlgmr.msra.gmra.mrb[16].mxu0 %vm656_vm9, %v4014_v59  ;;  %v5867_v59 = vrot.slane %v10100_v15, 2  ;;  %v4302_v62 = vsel %vm443_vm6, %v4299_v33, %v4301_v48  ;;  %v5781_v35 = vrot.slane %v5730_v19, 1 }
 0x3cb   : > { %v5347_v8 = vpop.permute.xlu1 %5346  ;;  %7201 = vmatpush3.bf16.msk.msra.mxu0 %vm7719_vm5, %v7196_v37  ;;  %7219 = vmatpush3.bf16.msk.msra.mxu1 %vm7719_vm5, %v7214_v54  ;;  %v4300_v54 = vsel %vm443_vm6, %v4298_v38, %v4299_v33 }
 0x3cc   : > { %v3866_v36 = vpop.permute.xlu0 %3865  ;;  %v5480_v18 = vsel %vm225_vm0, %v7455_v17, %v5347_v8  ;;  %v5868_v32 = vsel %vm532_vm7, %v5866_v56, %v5867_v59  ;;  %v5782_v29 = vsel %vm443_vm6, %v5779_v60, %v5781_v35  ;;  %v4253_v60 = vld [vmem:[#allocation3 + $0x70] sm:$0x3]  ;;  %v7462_v56 = vld [vmem:[#allocation3 + $0x60] sm:$0xff] }
 0x3cd   : > { %4421 = vrot.lane.b32.xlu1 %v4383_v7, %s7493_s29  ;;  %v3999_v63 = vsel %vm225_vm0, %v7454_v9, %v3866_v36  ;;  %v4389_v9 = vrot.slane %v4250_v5, 2 }
 0x3ce   : > { %4335 = vrot.lane.b32.xlu0 %v4297_v61, %s7492_s28  ;;  %v5869_v61 = vrot.slane %v5730_v19, 2 }
 0x3cf   : > { %v3954_v57 = vpop.permute.xlu1 %3953 }
 0x3d0   : > { %v3868_v24 = vpop.permute.xlu0 %3867  ;;  %v4015_v34 = vsel %vm637_vm8, %v3999_v63, %v3954_v57  ;;  %v10142_v63 = vld [vmem:[#allocation3 + $0x120] sm:$0xff]  ;;  %v10144_v57 = vld [vmem:[#allocation3 + $0x128] sm:$0xff] }
 0x3d1   : > { %5901 = vrot.lane.b32.xlu1 %v5863_v12, %s7493_s29  ;;  %7015 = vmatprep.mubr.msk.f32.mxu0 %vm656_vm9, %v4015_v34  ;;  %v4000_v51 = vsel %vm225_vm0, %v7457_v43, %v3868_v24  ;;  %v10147_v24 = vld [vmem:[#allocation3 + $0x60] sm:$0xff]  ;;  %v10149_v34 = vld [vmem:[#allocation3 + $0x68] sm:$0xff]  ;;  %v5871_v19 = vrot.slane %v10142_v63, 2 }
 0x3d2   : > { %5815 = vrot.lane.b32.xlu0 %v5777_v4, %s7492_s28  ;;  %v7459_v12 = vld [vmem:[#allocation3 + $0x108] sm:$0xff]  ;;  %v4304_v3 = vrot.slane %v10149_v34, 1  ;;  %v4391_v5 = vrot.slane %v10147_v24, 2 }
 0x3d3   : > { %v5435_v39 = vpop.permute.xlu1 %5434 }
 0x3d4   : > { %v5349_v10 = vpop.permute.xlu0 %5348  ;;  %v5496_v44 = vsel %vm637_vm8, %v5480_v18, %v5435_v39  ;;  %v5870_v18 = vsel %vm532_vm7, %v5867_v59, %v5869_v61  ;;  %v5783_v39 = vrot.slane %v10142_v63, 1  ;;  %v10188_v61 = vld [vmem:[#allocation3 + $0x140] sm:$0xff] }
 0x3d5   : > { %5903 = vrot.lane.b32.xlu1 %v5865_v58, %s7493_s29  ;;  %7099 = vmatprep.mubr.msk.f32.mxu1 %vm656_vm9, %v5496_v44  ;;  %v5481_v13 = vsel %vm225_vm0, %v7456_v53, %v5349_v10  ;;  %v5784_v10 = vrot.slane %v10144_v57, 1  ;;  %v4390_v44 = vsel %vm532_vm7, %v4387_v46, %v4389_v9  ;;  %v4303_v58 = vrot.slane %v10147_v24, 1  ;;  %v7461_v53 = vld [vmem:[#allocation3 + $0x50] sm:$0xff]  ;;  %v10193_v9 = vld [vmem:[#allocation3 + $0x80] sm:$0xff] }
 0x3d6   : > { %4423 = vrot.lane.b32.xlu0 %v4385_v52, %s7493_s29  ;;  %v7460_v52 = vld [vmem:[#allocation3 + $0x110] sm:$0xff] }
 0x3d7   : > { %v5437_v42 = vpop.permute.xlu1 %5436  ;;  %v5785_v43 = vsel %vm443_vm6, %v5783_v39, %v5784_v10  ;;  %v5733_v46 = vld [vmem:[#allocation3 + $0x130] sm:$0x3] }
 0x3d8   : > { %v3956_v22 = vpop.permute.xlu0 %3955  ;;  %v5497_v1 = vsel %vm637_vm8, %v5481_v13, %v5437_v42 }
 0x3d9   : > { %v4016_v37 = vsel %vm637_vm8, %v4000_v51, %v3956_v22  ;;  %5817 = vrot.lane.b32.xlu1 %v5780_v27, %s7492_s28  ;;  %7100 = vmatmul.mubr.msk.f32.gmra.mrb[18].mxu1 %vm656_vm9, %v5497_v1  ;;  %v4392_v51 = vrot.slane %v10149_v34, 2  ;;  %v4305_v1 = vsel %vm443_vm6, %v4303_v58, %v4304_v3  ;;  %v4306_v27 = vrot.slane %v4253_v60, 1 }
 0x3da   : > { %4337 = vrot.lane.b32.xlu0 %v4300_v54, %s7492_s28  ;;  %7016 = vmatmul.mubr.msk.f32.gmra.mrb[18].mxu0 %vm656_vm9, %v4016_v37 }
 0x3db   : > { %v5351_v28 = vpop.permute.xlu1 %5350  ;;  %v4393_v48 = vsel %vm532_vm7, %v4391_v5, %v4392_v51 }
 0x3dc   : > { %v3870_v0 = vpop.permute.xlu0 %3869  ;;  %v5482_v40 = vsel %vm225_vm0, %v7459_v12, %v5351_v28  ;;  %v5872_v28 = vrot.slane %v10144_v57, 2  ;;  %v7463_v12 = vld [vmem:[#allocation3 + $0x120] sm:$0xff] }
 0x3dd   : > { %4425 = vrot.lane.b32.xlu1 %v4388_v41, %s7493_s29  ;;  %v4001_v8 = vsel %vm225_vm0, %v7458_v11, %v3870_v0  ;;  %v4307_v0 = vsel %vm443_vm6, %v4304_v3, %v4306_v27  ;;  %v5786_v41 = vrot.slane %v5733_v46, 1  ;;  %v4309_v3 = vrot.slane %v10193_v9, 1 }
 0x3de   : > { %4339 = vrot.lane.b32.xlu0 %v4302_v62, %s7492_s28 }
 0x3df   : > { %v3958_v36 = vpop.permute.xlu1 %3957 }
 0x3e0   : > { %v3872_v7 = vpop.permute.xlu0 %3871  ;;  %v4017_v16 = vsel %vm637_vm8, %v4001_v8, %v3958_v36  ;;  %v5873_v8 = vsel %vm532_vm7, %v5871_v19, %v5872_v28  ;;  %v5874_v36 = vrot.slane %v5733_v46, 2  ;;  %v5736_v46 = vld [vmem:[#allocation3 + $0x148] sm:$0x3] }
 0x3e1   : > { %5905 = vrot.lane.b32.xlu1 %v5868_v32, %s7493_s29  ;;  %7018 = vmatprep.mubr.msk.f32.mxu0 %vm656_vm9, %v4017_v16  ;;  %v4002_v13 = vsel %vm225_vm0, %v7461_v53, %v3872_v7  ;;  %v5787_v7 = vsel %vm443_vm6, %v5784_v10, %v5786_v41  ;;  %v4394_v16 = vrot.slane %v4253_v60, 2  ;;  %v10186_v32 = vld [vmem:[#allocation3 + $0x138] sm:$0xff]  ;;  %v5789_v10 = vrot.slane %v10188_v61, 1  ;;  %v4256_v60 = vld [vmem:[#allocation3 + $0x88] sm:$0x3] }
 0x3e2   : > { %5819 = vrot.lane.b32.xlu0 %v5782_v29, %s7492_s28  ;;  %v10191_v29 = vld [vmem:[#allocation3 + $0x78] sm:$0xff]  ;;  %v5788_v39 = vrot.slane %v10186_v32, 1  ;;  %v7465_v53 = vld [vmem:[#allocation3 + $0x68] sm:$0xff]  ;;  %v4311_v27 = vrot.slane %v4256_v60, 1  ;;  %v5876_v19 = vrot.slane %v10186_v32, 2  ;;  %v5791_v41 = vrot.slane %v5736_v46, 1 }
 0x3e3   : > { %v5439_v4 = vpop.permute.xlu1 %5438  ;;  %v4308_v58 = vrot.slane %v10191_v29, 1  ;;  %v4396_v5 = vrot.slane %v10191_v29, 2 }
 0x3e4   : > { %v5353_v23 = vpop.permute.xlu0 %5352  ;;  %v5498_v17 = vsel %vm637_vm8, %v5482_v40, %v5439_v4 }
 0x3e5   : > { %5907 = vrot.lane.b32.xlu1 %v5870_v18, %s7493_s29  ;;  %7102 = vmatprep.mubr.msk.f32.mxu1 %vm656_vm9, %v5498_v17  ;;  %v5483_v38 = vsel %vm225_vm0, %v7460_v52, %v5353_v23  ;;  %v5875_v18 = vsel %vm532_vm7, %v5872_v28, %v5874_v36  ;;  %v7464_v52 = vld [vmem:[#allocation3 + $0x128] sm:$0xff]  ;;  %v5877_v28 = vrot.slane %v10188_v61, 2  ;;  %v5879_v36 = vrot.slane %v5736_v46, 2 }
 0x3e6   : > { %4427 = vrot.lane.b32.xlu0 %v4390_v44, %s7493_s29  ;;  %v4395_v44 = vsel %vm532_vm7, %v4392_v51, %v4394_v16  ;;  %v4397_v51 = vrot.slane %v10193_v9, 2  ;;  %v4399_v16 = vrot.slane %v4256_v60, 2 }
 0x3e7   : > { %v5441_v33 = vpop.permute.xlu1 %5440 }
 0x3e8   : > { %v3960_v42 = vpop.permute.xlu0 %3959  ;;  %v5499_v47 = vsel %vm637_vm8, %v5483_v38, %v5441_v33 }
 0x3e9   : > { %v4018_v22 = vsel %vm637_vm8, %v4002_v13, %v3960_v42  ;;  %5821 = vrot.lane.b32.xlu1 %v5785_v43, %s7492_s28  ;;  %7103 = vmatmul.mubr.msk.f32.gmra.mrb[20].mxu1 %vm656_vm9, %v5499_v47  ;;  %v5790_v43 = vsel %vm443_vm6, %v5788_v39, %v5789_v10 }
 0x3ea   : > { %4341 = vrot.lane.b32.xlu0 %v4305_v1, %s7492_s28  ;;  %7019 = vmatmul.mubr.msk.f32.gmra.mrb[20].mxu0 %vm656_vm9, %v4018_v22  ;;  %v4310_v1 = vsel %vm443_vm6, %v4308_v58, %v4309_v3  ;;  %v5880_v58 = vsel %vm532_vm7, %v5877_v28, %v5879_v36 }
 0x3eb   : > { %v5355_v37 = vpop.permute.xlu1 %5354 }
 0x3ec   : > { %v3874_v54 = vpop.permute.xlu0 %3873  ;;  %v5484_v40 = vsel %vm225_vm0, %v7463_v12, %v5355_v37  ;;  %v10230_v12 = vld [vmem:[#allocation3 + $0x150] sm:$0xff] }
 0x3ed   : > { %4429 = vrot.lane.b32.xlu1 %v4393_v48, %s7493_s29  ;;  %v4003_v59 = vsel %vm225_vm0, %v7462_v56, %v3874_v54  ;;  %v4398_v48 = vsel %vm532_vm7, %v4396_v5, %v4397_v51  ;;  %v7466_v56 = vld [vmem:[#allocation3 + $0x78] sm:$0xff]  ;;  %v4259_v5 = vld [vmem:[#allocation3 + $0xa0] sm:$0x3] }
 0x3ee   : > { %4343 = vrot.lane.b32.xlu0 %v4307_v0, %s7492_s28  ;;  %v4312_v0 = vsel %vm443_vm6, %v4309_v3, %v4311_v27  ;;  %v5793_v3 = vrot.slane %v10230_v12, 1 }
 0x3ef   : > { %v3962_v62 = vpop.permute.xlu1 %3961 }
 0x3f0   : > { %v3876_v35 = vpop.permute.xlu0 %3875  ;;  %v4019_v11 = vsel %vm637_vm8, %v4003_v59, %v3962_v62 }
 0x3f1   : > { %5909 = vrot.lane.b32.xlu1 %v5873_v8, %s7493_s29  ;;  %7021 = vmatprep.mubr.msk.f32.mxu0 %vm656_vm9, %v4019_v11  ;;  %v4004_v13 = vsel %vm225_vm0, %v7465_v53, %v3876_v35  ;;  %v5878_v8 = vsel %vm532_vm7, %v5876_v19, %v5877_v28  ;;  %v7468_v53 = vld [vmem:[#allocation3 + $0x140] sm:$0xff] }
 0x3f2   : > { %5823 = vrot.lane.b32.xlu0 %v5787_v7, %s7492_s28  ;;  %v5792_v7 = vsel %vm443_vm6, %v5789_v10, %v5791_v41  ;;  %v5739_v19 = vld [vmem:[#allocation3 + $0x160] sm:$0x3] }
 0x3f3   : > { %v5443_v4 = vpop.permute.xlu1 %5442 }
 0x3f4   : > { %v5357_v23 = vpop.permute.xlu0 %5356  ;;  %v5500_v17 = vsel %vm637_vm8, %v5484_v40, %v5443_v4  ;;  %v10232_v40 = vld [vmem:[#allocation3 + $0x158] sm:$0xff]  ;;  %v10235_v4 = vld [vmem:[#allocation3 + $0x90] sm:$0xff] }
 0x3f5   : > { %5911 = vrot.lane.b32.xlu1 %v5875_v18, %s7493_s29  ;;  %7105 = vmatprep.mubr.msk.f32.mxu1 %vm656_vm9, %v5500_v17  ;;  %v5485_v38 = vsel %vm225_vm0, %v7464_v52, %v5357_v23  ;;  %v10237_v23 = vld [vmem:[#allocation3 + $0x98] sm:$0xff]  ;;  %v5794_v60 = vrot.slane %v10232_v40, 1  ;;  %v4400_v52 = vsel %vm532_vm7, %v4397_v51, %v4399_v16 }
 0x3f6   : > { %4431 = vrot.lane.b32.xlu0 %v4395_v44, %s7493_s29  ;;  %v7467_v17 = vld [vmem:[#allocation3 + $0x138] sm:$0xff]  ;;  %v4402_v46 = vrot.slane %v10237_v23, 2 }
 0x3f7   : > { %v5445_v33 = vpop.permute.xlu1 %5444  ;;  %v5795_v27 = vsel %vm443_vm6, %v5793_v3, %v5794_v60  ;;  %v10279_v3 = vld [vmem:[#allocation3 + $0xa8] sm:$0xff] }
 0x3f8   : > { %v3964_v42 = vpop.permute.xlu0 %3963  ;;  %v5501_v47 = vsel %vm637_vm8, %v5485_v38, %v5445_v33  ;;  %v4313_v38 = vrot.slane %v10235_v4, 1  ;;  %v4314_v33 = vrot.slane %v10237_v23, 1 }
 0x3f9   : > { %v4020_v22 = vsel %vm637_vm8, %v4004_v13, %v3964_v42  ;;  %5825 = vrot.lane.b32.xlu1 %v5790_v43, %s7492_s28  ;;  %7106 = vmatmul.mubr.msk.f32.gmra.mrb[22].mxu1 %vm656_vm9, %v5501_v47  ;;  %v4401_v47 = vrot.slane %v10235_v4, 2  ;;  %v7469_v43 = vld [vmem:[#allocation3 + $0x80] sm:$0xff] }
 0x3fa   : > { %4345 = vrot.lane.b32.xlu0 %v4310_v1, %s7492_s28  ;;  %7022 = vmatmul.mubr.msk.f32.gmra.mrb[22].mxu0 %vm656_vm9, %v4020_v22 }
 0x3fb   : > { %v5359_v37 = vpop.permute.xlu1 %5358  ;;  %v4403_v41 = vsel %vm532_vm7, %v4401_v47, %v4402_v46 }
 0x3fc   : > { %v3878_v54 = vpop.permute.xlu0 %3877  ;;  %v5486_v18 = vsel %vm225_vm0, %v7467_v17, %v5359_v37 }
 0x3fd   : > { %4433 = vrot.lane.b32.xlu1 %v4398_v48, %s7493_s29  ;;  %v4005_v59 = vsel %vm225_vm0, %v7466_v56, %v3878_v54  ;;  %v4315_v54 = vsel %vm443_vm6, %v4313_v38, %v4314_v33  ;;  %v4316_v48 = vrot.slane %v4259_v5, 1  ;;  %v5881_v56 = vrot.slane %v10230_v12, 2  ;;  %v7471_v38 = vld [vmem:[#allocation3 + $0x150] sm:$0xff] }
 0x3fe   : > { %4347 = vrot.lane.b32.xlu0 %v4312_v0, %s7492_s28 }
 0x3ff   : > { %v3966_v62 = vpop.permute.xlu1 %3965 }
 0x400   : > { %v3880_v35 = vpop.permute.xlu0 %3879  ;;  %v4021_v11 = vsel %vm637_vm8, %v4005_v59, %v3966_v62  ;;  %v5882_v59 = vrot.slane %v10232_v40, 2  ;;  %v4317_v62 = vsel %vm443_vm6, %v4314_v33, %v4316_v48  ;;  %v4406_v48 = vrot.slane %v10279_v3, 2 }
 0x401   : > { %5913 = vrot.lane.b32.xlu1 %v5878_v8, %s7493_s29  ;;  %7024 = vmatprep.mubr.msk.f32.mxu0 %vm656_vm9, %v4021_v11  ;;  %v4006_v51 = vsel %vm225_vm0, %v7469_v43, %v3880_v35  ;;  %v5796_v35 = vrot.slane %v5739_v19, 1  ;;  %v7470_v11 = vld [vmem:[#allocation3 + $0x90] sm:$0xff] }
 0x402   : > { %5827 = vrot.lane.b32.xlu0 %v5792_v7, %s7492_s28  ;;  %v5883_v17 = vsel %vm532_vm7, %v5881_v56, %v5882_v59 }
 0x403   : > { %v5447_v39 = vpop.permute.xlu1 %5446 }
 0x404   : > { %v5361_v10 = vpop.permute.xlu0 %5360  ;;  %v5502_v44 = vsel %vm637_vm8, %v5486_v18, %v5447_v39  ;;  %v5884_v18 = vrot.slane %v5739_v19, 2  ;;  %v5797_v39 = vsel %vm443_vm6, %v5794_v60, %v5796_v35  ;;  %v7473_v19 = vld [vmem:[#allocation3 + $0x98] sm:$0xff] }
 0x405   : > { %5915 = vrot.lane.b32.xlu1 %v5880_v58, %s7493_s29  ;;  %7108 = vmatprep.mubr.msk.f32.mxu1 %vm656_vm9, %v5502_v44  ;;  %v5487_v13 = vsel %vm225_vm0, %v7468_v53, %v5361_v10  ;;  %v4404_v10 = vrot.slane %v4259_v5, 2  ;;  %v10274_v44 = vld [vmem:[#allocation3 + $0x168] sm:$0xff]  ;;  %v10276_v58 = vld [vmem:[#allocation3 + $0x170] sm:$0xff] }
 0x406   : > { %4435 = vrot.lane.b32.xlu0 %v4400_v52, %s7493_s29  ;;  %v10281_v52 = vld [vmem:[#allocation3 + $0xb0] sm:$0xff]  ;;  %v5798_v5 = vrot.slane %v10274_v44, 1  ;;  %v5799_v47 = vrot.slane %v10276_v58, 1 }
 0x407   : > { %v5449_v42 = vpop.permute.xlu1 %5448  ;;  %v4405_v43 = vsel %vm532_vm7, %v4402_v46, %v4404_v10  ;;  %v4407_v56 = vrot.slane %v10281_v52, 2  ;;  %v7474_v10 = vld [vmem:[#allocation3 + $0xa8] sm:$0xff] }
 0x408   : > { %v3968_v22 = vpop.permute.xlu0 %3967  ;;  %v5503_v1 = vsel %vm637_vm8, %v5487_v13, %v5449_v42  ;;  %v5885_v42 = vsel %vm532_vm7, %v5882_v59, %v5884_v18 }
 0x409   : > { %v4022_v37 = vsel %vm637_vm8, %v4006_v51, %v3968_v22  ;;  %5829 = vrot.lane.b32.xlu1 %v5795_v27, %s7492_s28  ;;  %7109 = vmatmul.mubr.msk.f32.gmra.mrb[24].mxu1 %vm656_vm9, %v5503_v1  ;;  %v4318_v51 = vrot.slane %v10279_v3, 1  ;;  %v4319_v22 = vrot.slane %v10281_v52, 1  ;;  %v4262_v1 = vld [vmem:[#allocation3 + $0xb8] sm:$0x3] }
 0x40a   : > { %4349 = vrot.lane.b32.xlu0 %v4315_v54, %s7492_s28  ;;  %7025 = vmatmul.mubr.msk.f32.gmra.mrb[24].mxu0 %vm656_vm9, %v4022_v37  ;;  %v7472_v27 = vld [vmem:[#allocation3 + $0x158] sm:$0xff]  ;;  %v4321_v35 = vrot.slane %v4262_v1, 1 }
 0x40b   : > { %v5363_v28 = vpop.permute.xlu1 %5362 }
 0x40c   : > { %v3882_v0 = vpop.permute.xlu0 %3881  ;;  %v5488_v33 = vsel %vm225_vm0, %v7471_v38, %v5363_v28  ;;  %v4322_v18 = vsel %vm443_vm6, %v4319_v22, %v4321_v35  ;;  %v7477_v35 = vld [vmem:[#allocation3 + $0xb0] sm:$0xff] }
 0x40d   : > { %4437 = vrot.lane.b32.xlu1 %v4403_v41, %s7493_s29  ;;  %v4007_v8 = vsel %vm225_vm0, %v7470_v11, %v3882_v0  ;;  %v5800_v41 = vsel %vm443_vm6, %v5798_v5, %v5799_v47  ;;  %v5742_v11 = vld [vmem:[#allocation3 + $0x178] sm:$0x3] }
 0x40e   : > { %4351 = vrot.lane.b32.xlu0 %v4317_v62, %s7492_s28  ;;  %v4320_v62 = vsel %vm443_vm6, %v4318_v51, %v4319_v22  ;;  %v10319_v51 = vld [vmem:[#allocation3 + $0xc0] sm:$0xff]  ;;  %v10321_v22 = vld [vmem:[#allocation3 + $0xc8] sm:$0xff] }
 0x40f   : > { %v3970_v36 = vpop.permute.xlu1 %3969 }
 0x410   : > { %v3884_v7 = vpop.permute.xlu0 %3883  ;;  %v4023_v16 = vsel %vm637_vm8, %v4007_v8, %v3970_v36 }
 0x411   : > { %5917 = vrot.lane.b32.xlu1 %v5883_v17, %s7493_s29  ;;  %7027 = vmatprep.mubr.msk.f32.mxu0 %vm656_vm9, %v4023_v16  ;;  %v4008_v46 = vsel %vm225_vm0, %v7473_v19, %v3884_v7  ;;  %v4408_v7 = vsel %vm532_vm7, %v4406_v48, %v4407_v56  ;;  %v5886_v16 = vrot.slane %v10274_v44, 2  ;;  %v5887_v17 = vrot.slane %v10276_v58, 2 }
 0x412   : > { %5831 = vrot.lane.b32.xlu0 %v5797_v39, %s7492_s28  ;;  %v5801_v39 = vrot.slane %v5742_v11, 1 }
 0x413   : > { %v5451_v53 = vpop.permute.xlu1 %5450 }
 0x414   : > { %v5365_v60 = vpop.permute.xlu0 %5364  ;;  %v5504_v13 = vsel %vm637_vm8, %v5488_v33, %v5451_v53  ;;  %v5802_v5 = vsel %vm443_vm6, %v5799_v47, %v5801_v39  ;;  %v5745_v39 = vld [vmem:[#allocation3 + $0x190] sm:$0x3] }
 0x415   : > { %5919 = vrot.lane.b32.xlu1 %v5885_v42, %s7493_s29  ;;  %7111 = vmatprep.mubr.msk.f32.mxu1 %vm656_vm9, %v5504_v13  ;;  %v5489_v37 = vsel %vm225_vm0, %v7472_v27, %v5365_v60  ;;  %v5888_v13 = vsel %vm532_vm7, %v5886_v16, %v5887_v17  ;;  %v5889_v42 = vrot.slane %v5742_v11, 2  ;;  %v7475_v27 = vld [vmem:[#allocation3 + $0x168] sm:$0xff] }
 0x416   : > { %4439 = vrot.lane.b32.xlu0 %v4405_v43, %s7493_s29  ;;  %v4409_v43 = vrot.slane %v4262_v1, 2  ;;  %v4323_v1 = vrot.slane %v10319_v51, 1 }
 0x417   : > { %v5453_v54 = vpop.permute.xlu1 %5452  ;;  %v5890_v47 = vsel %vm532_vm7, %v5887_v17, %v5889_v42 }
 0x418   : > { %v3972_v28 = vpop.permute.xlu0 %3971  ;;  %v5505_v0 = vsel %vm637_vm8, %v5489_v37, %v5453_v54 }
 0x419   : > { %v4024_v59 = vsel %vm637_vm8, %v4008_v46, %v3972_v28  ;;  %5833 = vrot.lane.b32.xlu1 %v5800_v41, %s7492_s28  ;;  %7112 = vmatmul.mubr.msk.f32.gmra.mrb[26].mxu1 %vm656_vm9, %v5505_v0  ;;  %v4410_v46 = vsel %vm532_vm7, %v4407_v56, %v4409_v43  ;;  %v4324_v28 = vrot.slane %v10321_v22, 1  ;;  %v4265_v0 = vld [vmem:[#allocation3 + $0xd0] sm:$0x3]  ;;  %v10351_v43 = vld [vmem:[#allocation3 + $0x1a0] sm:$0xff] }
 0x41a   : > { %4353 = vrot.lane.b32.xlu0 %v4320_v62, %s7492_s28  ;;  %7028 = vmatmul.mubr.msk.f32.gmra.mrb[26].mxu0 %vm656_vm9, %v4024_v59  ;;  %v7476_v41 = vld [vmem:[#allocation3 + $0x170] sm:$0xff] }
 0x41b   : > { %v5367_v8 = vpop.permute.xlu1 %5366  ;;  %v4325_v17 = vsel %vm443_vm6, %v4323_v1, %v4324_v28 }
 0x41c   : > { %v3886_v36 = vpop.permute.xlu0 %3885  ;;  %v5490_v37 = vsel %vm225_vm0, %v7475_v27, %v5367_v8 }
 0x41d   : > { %4441 = vrot.lane.b32.xlu1 %v4408_v7, %s7493_s29  ;;  %v4009_v38 = vsel %vm225_vm0, %v7474_v10, %v3886_v36  ;;  %v4411_v36 = vrot.slane %v10319_v51, 2  ;;  %v4412_v7 = vrot.slane %v10321_v22, 2 }
 0x41e   : > { %4355 = vrot.lane.b32.xlu0 %v4322_v18, %s7492_s28  ;;  %v4326_v18 = vrot.slane %v4265_v0, 1 }
 0x41f   : > { %v3974_v33 = vpop.permute.xlu1 %3973 }
 0x420   : > { %v3888_v53 = vpop.permute.xlu0 %3887  ;;  %v4025_v60 = vsel %vm637_vm8, %v4009_v38, %v3974_v33  ;;  %v4413_v33 = vsel %vm532_vm7, %v4411_v36, %v4412_v7 }
 0x421   : > { %5921 = vrot.lane.b32.xlu1 %v5888_v13, %s7493_s29  ;;  %7030 = vmatprep.mubr.msk.f32.mxu0 %vm656_vm9, %v4025_v60  ;;  %v4010_v11 = vsel %vm225_vm0, %v7477_v35, %v3888_v53  ;;  %v4327_v53 = vsel %vm443_vm6, %v4324_v28, %v4326_v18  ;;  %v5806_v60 = vrot.slane %v5745_v39, 1  ;;  %v5809_v28 = vrot.slane %v10351_v43, 1 }
 0x422   : > { %5835 = vrot.lane.b32.xlu0 %v5802_v5, %s7492_s28  ;;  %v10349_v5 = vld [vmem:[#allocation3 + $0x198] sm:$0xff] }
 0x423   : > { %v5455_v54 = vpop.permute.xlu1 %5454  ;;  %v5808_v1 = vrot.slane %v10349_v5, 1 }
 0x424   : > { %v5369_v48 = vpop.permute.xlu0 %5368  ;;  %v5506_v19 = vsel %vm637_vm8, %v5490_v37, %v5455_v54  ;;  %v5894_v54 = vrot.slane %v5745_v39, 2 }
 0x425   : > { %5923 = vrot.lane.b32.xlu1 %v5890_v47, %s7493_s29  ;;  %7114 = vmatprep.mubr.msk.f32.mxu1 %vm656_vm9, %v5506_v19  ;;  %v5491_v59 = vsel %vm225_vm0, %v7476_v41, %v5369_v48  ;;  %v5807_v48 = vsel %vm443_vm6, %v9988_v50, %v5806_v60  ;;  %v4414_v19 = vrot.slane %v4265_v0, 2  ;;  %v10360_v47 = vld [vmem:[#allocation3 + $0xd8] sm:$0xff]  ;;  %v5897_v60 = vrot.slane %v10351_v43, 2 }
 0x426   : > { %4443 = vrot.lane.b32.xlu0 %v4410_v46, %s7493_s29  ;;  %v10362_v46 = vld [vmem:[#allocation3 + $0xe0] sm:$0xff]  ;;  %v5895_v0 = vsel %vm532_vm7, %v10013_v26, %v5894_v54  ;;  %v4328_v35 = vrot.slane %v10360_v47, 1  ;;  %v7479_v26 = vld [vmem:[#allocation3 + $0xc8] sm:$0xff]  ;;  %v4416_v18 = vrot.slane %v10360_v47, 2 }
 0x427   : > { %v5457_v62 = vpop.permute.xlu1 %5456  ;;  %v4417_v39 = vrot.slane %v10362_v46, 2 }
 0x428   : > { %v3976_v8 = vpop.permute.xlu0 %3975  ;;  %v5507_v56 = vsel %vm637_vm8, %v5491_v59, %v5457_v62  ;;  %v4415_v62 = vsel %vm532_vm7, %v4412_v7, %v4414_v19 }
 0x429   : > { %v4026_v16 = vsel %vm637_vm8, %v4010_v11, %v3976_v8  ;;  %5837 = vrot.lane.b32.xlu1 %v10002_v14, %s7492_s28  ;;  %7115 = vmatmul.mubr.msk.f32.gmra.mrb[28].mxu1 %vm656_vm9, %v5507_v56  ;;  %v7478_v14 = vld [vmem:[#allocation3 + $0xc0] sm:$0xff]  ;;  %v4329_v11 = vrot.slane %v10362_v46, 1  ;;  %v4268_v8 = vld [vmem:[#allocation3 + $0xe8] sm:$0x3] }
 0x42a   : > { %4357 = vrot.lane.b32.xlu0 %v4325_v17, %s7492_s28  ;;  %7031 = vmatmul.mubr.msk.f32.gmra.mrb[28].mxu0 %vm656_vm9, %v4026_v16 }
 0x42b   : > { %v5371_v10 = vpop.permute.xlu1 %5370 }
 0x42c   : > { %v3890_v38 = vpop.permute.xlu0 %3889  ;;  %v5492_v41 = vsel %vm225_vm0, %v9976_v6, %v5371_v10  ;;  %v5810_v6 = vsel %vm443_vm6, %v5808_v1, %v5809_v28  ;;  %v5748_v10 = vld [vmem:[#allocation3 + $0x1a8] sm:$0x3] }
 0x42d   : > { %4445 = vrot.lane.b32.xlu1 %v4413_v33, %s7493_s29  ;;  %v4011_v13 = vsel %vm225_vm0, %v7478_v14, %v3890_v38  ;;  %v4330_v33 = vsel %vm443_vm6, %v4328_v35, %v4329_v11 }
 0x42e   : > { %4359 = vrot.lane.b32.xlu0 %v4327_v53, %s7492_s28  ;;  %v5896_v53 = vrot.slane %v10349_v5, 2 }
 0x42f   : > { %v3978_v42 = vpop.permute.xlu1 %3977 }
 0x430   : > { %v3892_v27 = vpop.permute.xlu0 %3891  ;;  %v4027_v37 = vsel %vm637_vm8, %v4011_v13, %v3978_v42  ;;  %v5811_v13 = vrot.slane %v5748_v10, 1  ;;  %v5898_v54 = vsel %vm532_vm7, %v5896_v53, %v5897_v60 }
 0x431   : > { %5925 = vrot.lane.b32.xlu1 %v10024_v20, %s7493_s29  ;;  %7033 = vmatprep.mubr.msk.f32.mxu0 %vm656_vm9, %v4027_v37  ;;  %v4012_v7 = vsel %vm225_vm0, %v7479_v26, %v3892_v27  ;;  %v4418_v27 = vsel %vm532_vm7, %v4416_v18, %v4417_v39 }
 0x432   : > { %5839 = vrot.lane.b32.xlu0 %v5807_v48, %s7492_s28  ;;  %v5899_v48 = vrot.slane %v5748_v10, 2 }
 0x433   : > { %v5459_v50 = vpop.permute.xlu1 %5458 }
 0x434   : > { %v5373_v59 = vpop.permute.xlu0 %5372  ;;  %v5508_v20 = vsel %vm637_vm8, %v5492_v41, %v5459_v50  ;;  %v5812_v41 = vsel %vm443_vm6, %v5809_v28, %v5811_v13 }
 0x435   : > { %5927 = vrot.lane.b32.xlu1 %v5895_v0, %s7493_s29  ;;  %7117 = vmatprep.mubr.msk.f32.mxu1 %vm656_vm9, %v5508_v20  ;;  %v5493_v56 = vsel %vm225_vm0, %v9978_v30, %v5373_v59  ;;  %v4331_v30 = vrot.slane %v4268_v8, 1  ;;  %v4419_v20 = vrot.slane %v4268_v8, 2  ;;  %v5900_v0 = vsel %vm532_vm7, %v5897_v60, %v5899_v48 }
 0x436   : > { %4447 = vrot.lane.b32.xlu0 %v4415_v62, %s7493_s29 }
 0x437   : > { %v5461_v36 = vpop.permute.xlu1 %5460  ;;  %v4332_v37 = vsel %vm443_vm6, %v4329_v11, %v4331_v30  ;;  %v4420_v28 = vsel %vm532_vm7, %v4417_v39, %v4419_v20 }
 0x438   : > { %v3980_v16 = vpop.permute.xlu0 %3979  ;;  %v5509_v17 = vsel %vm637_vm8, %v5493_v56, %v5461_v36 }
 0x439   : > { %v4028_v38 = vsel %vm637_vm8, %v4012_v7, %v3980_v16  ;;  %5841 = vrot.lane.b32.xlu1 %v5810_v6, %s7492_s28  ;;  %7118 = vmatmul.mubr.msk.f32.gmra.mrb[30].mxu1 %vm656_vm9, %v5509_v17 }
 0x43a   : > { %4361 = vrot.lane.b32.xlu0 %v4330_v33, %s7492_s28  ;;  %7034 = vmatmul.mubr.msk.f32.gmra.mrb[30].mxu0 %vm656_vm9, %v4028_v38 }
 0x43b   : > { %v5814_v14 = vpop.permute.xlu1 %5813 }
 0x43c   : > { %v4334_v42 = vpop.permute.xlu0 %4333  ;;  %v5949_v62 = vsel %vm225_vm0, %v10031_v21, %v5814_v14 }
 0x43d   : > { %4449 = vrot.lane.b32.xlu1 %v4418_v27, %s7493_s29  ;;  %v4469_v19 = vsel %vm225_vm0, %v10036_v31, %v4334_v42 }
 0x43e   : > { %4363 = vrot.lane.b32.xlu0 %v4332_v37, %s7492_s28 }
 0x43f   : > { %v4422_v1 = vpop.permute.xlu1 %4421 }
 0x440   : > { %v4336_v50 = vpop.permute.xlu0 %4335  ;;  %v4485_v59 = vsel %vm637_vm8, %v4469_v19, %v4422_v1 }
 0x441   : > { %5929 = vrot.lane.b32.xlu1 %v5898_v54, %s7493_s29  ;;  %7040 = vmatprep.mubr.msk.f32.mxu0 %vm656_vm9, %v4485_v59  ;;  %v4470_v56 = vsel %vm225_vm0, %v10038_v49, %v4336_v50 }
 0x442   : > { %5843 = vrot.lane.b32.xlu0 %v5812_v41, %s7492_s28 }
 0x443   : > { %v5902_v35 = vpop.permute.xlu1 %5901 }
 0x444   : > { %v5816_v31 = vpop.permute.xlu0 %5815  ;;  %v5965_v11 = vsel %vm637_vm8, %v5949_v62, %v5902_v35 }
 0x445   : > { %5931 = vrot.lane.b32.xlu1 %v5900_v0, %s7493_s29  ;;  %7124 = vmatprep.mubr.msk.f32.mxu1 %vm656_vm9, %v5965_v11  ;;  %v5950_v6 = vsel %vm225_vm0, %v10033_v45, %v5816_v31 }
 0x446   : > { %4451 = vrot.lane.b32.xlu0 %v4420_v28, %s7493_s29 }
 0x447   : > { %v5904_v8 = vpop.permute.xlu1 %5903 }
 0x448   : > { %v4424_v21 = vpop.permute.xlu0 %4423  ;;  %v5966_v36 = vsel %vm637_vm8, %v5950_v6, %v5904_v8 }
 0x449   : > { %v4486_v26 = vsel %vm637_vm8, %v4470_v56, %v4424_v21  ;;  %7125 = vmatmul.mubr.msk.f32.vlgmr.msra.gmra.mrb[16].mxu1 %vm656_vm9, %v5966_v36 }
 0x44a   : > { %7041 = vmatmul.mubr.msk.f32.vlgmr.msra.gmra.mrb[16].mxu0 %vm656_vm9, %v4486_v26 }
 0x44b   : > { %v5818_v7 = vpop.permute.xlu1 %5817 }
 0x44c   : > { %v4338_v16 = vpop.permute.xlu0 %4337  ;;  %v5951_v49 = vsel %vm225_vm0, %v10098_v25, %v5818_v7 }
 0x44d   : > { %v4471_v17 = vsel %vm225_vm0, %v10103_v2, %v4338_v16 }
 0x44f   : > { %v4426_v18 = vpop.permute.xlu1 %4425 }
 0x450   : > { %v4340_v45 = vpop.permute.xlu0 %4339  ;;  %v4487_v39 = vsel %vm637_vm8, %v4471_v17, %v4426_v18 }
 0x451   : > { %7043 = vmatprep.mubr.msk.f32.mxu0 %vm656_vm9, %v4487_v39  ;;  %v4472_v2 = vsel %vm225_vm0, %v10105_v55, %v4340_v45 }
 0x453   : > { %v5906_v10 = vpop.permute.xlu1 %5905 }
 0x454   : > { %v5820_v38 = vpop.permute.xlu0 %5819  ;;  %v5967_v33 = vsel %vm637_vm8, %v5951_v49, %v5906_v10 }
 0x455   : > { %7127 = vmatprep.mubr.msk.f32.mxu1 %vm656_vm9, %v5967_v33  ;;  %v5952_v30 = vsel %vm225_vm0, %v10100_v15, %v5820_v38 }
 0x457   : > { %v5908_v53 = vpop.permute.xlu1 %5907 }
 0x458   : > { %v4428_v60 = vpop.permute.xlu0 %4427  ;;  %v5968_v14 = vsel %vm637_vm8, %v5952_v30, %v5908_v53 }
 0x459   : > { %v4488_v13 = vsel %vm637_vm8, %v4472_v2, %v4428_v60  ;;  %7128 = vmatmul.mubr.msk.f32.gmra.mrb[18].mxu1 %vm656_vm9, %v5968_v14 }
 0x45a   : > { %7044 = vmatmul.mubr.msk.f32.gmra.mrb[18].mxu0 %vm656_vm9, %v4488_v13 }
 0x45b   : > { %v5822_v25 = vpop.permute.xlu1 %5821 }
 0x45c   : > { %v4342_v42 = vpop.permute.xlu0 %4341  ;;  %v5953_v55 = vsel %vm225_vm0, %v10142_v63, %v5822_v25 }
 0x45d   : > { %v4473_v27 = vsel %vm225_vm0, %v10147_v24, %v4342_v42 }
 0x45f   : > { %v4430_v37 = vpop.permute.xlu1 %4429 }
 0x460   : > { %v4344_v15 = vpop.permute.xlu0 %4343  ;;  %v4489_v54 = vsel %vm637_vm8, %v4473_v27, %v4430_v37 }
 0x461   : > { %7046 = vmatprep.mubr.msk.f32.mxu0 %vm656_vm9, %v4489_v54  ;;  %v4474_v24 = vsel %vm225_vm0, %v10149_v34, %v4344_v15 }
 0x463   : > { %v5910_v48 = vpop.permute.xlu1 %5909 }
 0x464   : > { %v5824_v19 = vpop.permute.xlu0 %5823  ;;  %v5969_v1 = vsel %vm637_vm8, %v5953_v55, %v5910_v48 }
 0x465   : > { %7130 = vmatprep.mubr.msk.f32.mxu1 %vm656_vm9, %v5969_v1  ;;  %v5954_v41 = vsel %vm225_vm0, %v10144_v57, %v5824_v19 }
 0x467   : > { %v5912_v50 = vpop.permute.xlu1 %5911 }
 0x468   : > { %v4432_v59 = vpop.permute.xlu0 %4431  ;;  %v5970_v20 = vsel %vm637_vm8, %v5954_v41, %v5912_v50 }
 0x469   : > { %v4490_v0 = vsel %vm637_vm8, %v4474_v24, %v4432_v59  ;;  %7131 = vmatmul.mubr.msk.f32.gmra.mrb[20].mxu1 %vm656_vm9, %v5970_v20 }
 0x46a   : > { %7047 = vmatmul.mubr.msk.f32.gmra.mrb[20].mxu0 %vm656_vm9, %v4490_v0 }
 0x46b   : > { %v5826_v63 = vpop.permute.xlu1 %5825 }
 0x46c   : > { %v4346_v62 = vpop.permute.xlu0 %4345  ;;  %v5955_v34 = vsel %vm225_vm0, %v10186_v32, %v5826_v63 }
 0x46d   : > { %v4475_v35 = vsel %vm225_vm0, %v10191_v29, %v4346_v62  ;;  %v7481_v62 = vld [vmem:[#allocation3 + $0x188] sm:$0xff] }
 0x46f   : > { %v4434_v31 = vpop.permute.xlu1 %4433 }
 0x470   : > { %v4348_v57 = vpop.permute.xlu0 %4347  ;;  %v4491_v11 = vsel %vm637_vm8, %v4475_v35, %v4434_v31 }
 0x471   : > { %7049 = vmatprep.mubr.msk.f32.mxu0 %vm656_vm9, %v4491_v11  ;;  %v4476_v29 = vsel %vm225_vm0, %v10193_v9, %v4348_v57 }
 0x473   : > { %v5914_v28 = vpop.permute.xlu1 %5913 }
 0x474   : > { %v5828_v6 = vpop.permute.xlu0 %5827  ;;  %v5971_v8 = vsel %vm637_vm8, %v5955_v34, %v5914_v28 }
 0x475   : > { %7133 = vmatprep.mubr.msk.f32.mxu1 %vm656_vm9, %v5971_v8  ;;  %v5956_v56 = vsel %vm225_vm0, %v10188_v61, %v5828_v6 }
 0x477   : > { %v5916_v21 = vpop.permute.xlu1 %5915 }
 0x478   : > { %v4436_v36 = vpop.permute.xlu0 %4435  ;;  %v5972_v26 = vsel %vm637_vm8, %v5956_v56, %v5916_v21 }
 0x479   : > { %v4492_v7 = vsel %vm637_vm8, %v4476_v29, %v4436_v36  ;;  %7134 = vmatmul.mubr.msk.f32.gmra.mrb[22].mxu1 %vm656_vm9, %v5972_v26 }
 0x47a   : > { %7050 = vmatmul.mubr.msk.f32.gmra.mrb[22].mxu0 %vm656_vm9, %v4492_v7 }
 0x47b   : > { %v5830_v32 = vpop.permute.xlu1 %5829 }
 0x47c   : > { %v4350_v16 = vpop.permute.xlu0 %4349  ;;  %v5957_v9 = vsel %vm225_vm0, %v10230_v12, %v5830_v32 }
 0x47d   : > { %v4477_v17 = vsel %vm225_vm0, %v10235_v4, %v4350_v16 }
 0x47f   : > { %v4438_v18 = vpop.permute.xlu1 %4437 }
 0x480   : > { %v4352_v61 = vpop.permute.xlu0 %4351  ;;  %v4493_v45 = vsel %vm637_vm8, %v4477_v17, %v4438_v18 }
 0x481   : > { %7052 = vmatprep.mubr.msk.f32.mxu0 %vm656_vm9, %v4493_v45  ;;  %v4478_v4 = vsel %vm225_vm0, %v10237_v23, %v4352_v61  ;;  %v10533_v61 = vld [vmem:[%s10677_s4] ss:$0 sm:$0xff]  ;;  %v6561_v45 = vld [vmem:[%s7717_s27 + $0x88] sm:$0xff] }
 0x483   : > { %v5918_v39 = vpop.permute.xlu1 %5917 }
 0x484   : > { %v5832_v49 = vpop.permute.xlu0 %5831  ;;  %v5973_v10 = vsel %vm637_vm8, %v5957_v9, %v5918_v39 }
 0x485   : > { %7136 = vmatprep.mubr.msk.f32.mxu1 %vm656_vm9, %v5973_v10  ;;  %v5958_v38 = vsel %vm225_vm0, %v10232_v40, %v5832_v49  ;;  %v6560_v10 = vld [vmem:[%s7717_s27 + $0x80] sm:$0xff] }
 0x487   : > { %v5920_v33 = vpop.permute.xlu1 %5919 }
 0x488   : > { %v4440_v30 = vpop.permute.xlu0 %4439  ;;  %v5974_v53 = vsel %vm637_vm8, %v5958_v38, %v5920_v33 }
 0x489   : > { %v4494_v2 = vsel %vm637_vm8, %v4478_v4, %v4440_v30  ;;  %7137 = vmatmul.mubr.msk.f32.gmra.mrb[24].mxu1 %vm656_vm9, %v5974_v53  ;;  %v4718_v4 = vld [vmem:[%s7717_s27] sm:$0xff] }
 0x48a   : > { %7053 = vmatmul.mubr.msk.f32.gmra.mrb[24].mxu0 %vm656_vm9, %v4494_v2 }
 0x48b   : > { %v5834_v12 = vpop.permute.xlu1 %5833 }
 0x48c   : > { %v4354_v60 = vpop.permute.xlu0 %4353  ;;  %v5959_v23 = vsel %vm225_vm0, %v10274_v44, %v5834_v12 }
 0x48d   : > { %v4479_v14 = vsel %vm225_vm0, %v10279_v3, %v4354_v60 }
 0x48f   : > { %v4442_v13 = vpop.permute.xlu1 %4441 }
 0x490   : > { %v4356_v40 = vpop.permute.xlu0 %4355  ;;  %v4495_v25 = vsel %vm637_vm8, %v4479_v14, %v4442_v13 }
 0x491   : > { %7055 = vmatprep.mubr.msk.f32.mxu0 %vm656_vm9, %v4495_v25  ;;  %v4480_v3 = vsel %vm225_vm0, %v10281_v52, %v4356_v40  ;;  %v7480_v52 = vld [vmem:[#allocation3 + $0x180] sm:$0xff] }
 0x493   : > { %v5922_v42 = vpop.permute.xlu1 %5921 }
 0x494   : > { %v5836_v27 = vpop.permute.xlu0 %5835  ;;  %v5975_v37 = vsel %vm637_vm8, %v5959_v23, %v5922_v42 }
 0x495   : > { %7139 = vmatprep.mubr.msk.f32.mxu1 %vm656_vm9, %v5975_v37  ;;  %v5960_v15 = vsel %vm225_vm0, %v10276_v58, %v5836_v27  ;;  %v6563_v27 = vld [vmem:[%s7717_s27 + $0x98] sm:$0xff] }
 0x497   : > { %v5924_v54 = vpop.permute.xlu1 %5923 }
 0x498   : > { %v4444_v55 = vpop.permute.xlu0 %4443  ;;  %v5976_v48 = vsel %vm637_vm8, %v5960_v15, %v5924_v54  ;;  %v4721_v15 = vld [vmem:[%s7717_s27 + $0x18] sm:$0xff] }
 0x499   : > { %v4496_v19 = vsel %vm637_vm8, %v4480_v3, %v4444_v55  ;;  %7140 = vmatmul.mubr.msk.f32.gmra.mrb[26].mxu1 %vm656_vm9, %v5976_v48  ;;  %v6562_v55 = vld [vmem:[%s7717_s27 + $0x90] sm:$0xff] }
 0x49a   : > { %7056 = vmatmul.mubr.msk.f32.gmra.mrb[26].mxu0 %vm656_vm9, %v4496_v19 }
 0x49b   : > { %v5838_v44 = vpop.permute.xlu1 %5837 }
 0x49c   : > { %v4358_v1 = vpop.permute.xlu0 %4357  ;;  %v5961_v59 = vsel %vm225_vm0, %v7480_v52, %v5838_v44  ;;  %v4720_v44 = vld [vmem:[%s7717_s27 + $0x10] sm:$0xff] }
 0x49d   : > { %v4481_v41 = vsel %vm225_vm0, %v10319_v51, %v4358_v1 }
 0x49f   : > { %v4446_v50 = vpop.permute.xlu1 %4445 }
 0x4a0   : > { %v4360_v58 = vpop.permute.xlu0 %4359  ;;  %v4497_v24 = vsel %vm637_vm8, %v4481_v41, %v4446_v50 }
 0x4a1   : > { %7058 = vmatprep.mubr.msk.f32.mxu0 %vm656_vm9, %v4497_v24  ;;  %v4482_v51 = vsel %vm225_vm0, %v10321_v22, %v4360_v58 }
 0x4a3   : > { %v5926_v20 = vpop.permute.xlu1 %5925 }
 0x4a4   : > { %v5840_v0 = vpop.permute.xlu0 %5839  ;;  %v5977_v63 = vsel %vm637_vm8, %v5961_v59, %v5926_v20 }
 0x4a5   : > { %7142 = vmatprep.mubr.msk.f32.mxu1 %vm656_vm9, %v5977_v63  ;;  %v5962_v35 = vsel %vm225_vm0, %v7481_v62, %v5840_v0 }
 0x4a7   : > { %v5928_v31 = vpop.permute.xlu1 %5927 }
 0x4a8   : > { %v4448_v57 = vpop.permute.xlu0 %4447  ;;  %v5978_v11 = vsel %vm637_vm8, %v5962_v35, %v5928_v31  ;;  %v6565_v35 = vld [vmem:[%s7717_s27 + $0xa8] sm:$0xff] }
 0x4a9   : > { %v4498_v34 = vsel %vm637_vm8, %v4482_v51, %v4448_v57  ;;  %7143 = vmatmul.mubr.msk.f32.gmra.mrb[28].mxu1 %vm656_vm9, %v5978_v11  ;;  %v4723_v51 = vld [vmem:[%s7717_s27 + $0x28] sm:$0xff] }
 0x4aa   : > { %7059 = vmatmul.mubr.msk.f32.gmra.mrb[28].mxu0 %vm656_vm9, %v4498_v34  ;;  %v6564_v34 = vld [vmem:[%s7717_s27 + $0xa0] sm:$0xff] }
 0x4ab   : > { %v5842_v28 = vpop.permute.xlu1 %5841 }
 0x4ac   : > { %v4362_v6 = vpop.permute.xlu0 %4361  ;;  %v5963_v22 = vsel %vm225_vm0, %v10349_v5, %v5842_v28 }
 0x4ad   : > { %v4483_v8 = vsel %vm225_vm0, %v10360_v47, %v4362_v6 }
 0x4af   : > { %v4450_v56 = vpop.permute.xlu1 %4449 }
 0x4b0   : > { %v4364_v21 = vpop.permute.xlu0 %4363  ;;  %v4499_v29 = vsel %vm637_vm8, %v4483_v8, %v4450_v56  ;;  %v4722_v8 = vld [vmem:[%s7717_s27 + $0x20] sm:$0xff] }
 0x4b1   : > { %7061 = vmatprep.mubr.msk.f32.mxu0 %vm656_vm9, %v4499_v29  ;;  %v4484_v16 = vsel %vm225_vm0, %v10362_v46, %v4364_v21  ;;  %v4719_v46 = vld [vmem:[%s7717_s27 + $0x8] sm:$0xff] }
 0x4b3   : > { %v5930_v36 = vpop.permute.xlu1 %5929 }
 0x4b4   : > { %v5844_v26 = vpop.permute.xlu0 %5843  ;;  %v5979_v7 = vsel %vm637_vm8, %v5963_v22, %v5930_v36 }
 0x4b5   : > { %7145 = vmatprep.mubr.msk.f32.mxu1 %vm656_vm9, %v5979_v7  ;;  %v5964_v47 = vsel %vm225_vm0, %v10351_v43, %v5844_v26 }
 0x4b7   : > { %v5932_v32 = vpop.permute.xlu1 %5931 }
 0x4b8   : > { %v4452_v17 = vpop.permute.xlu0 %4451  ;;  %v5980_v18 = vsel %vm637_vm8, %v5964_v47, %v5932_v32 }
 0x4b9   : > { %v4500_v5 = vsel %vm637_vm8, %v4484_v16, %v4452_v17  ;;  %7146 = vmatmul.mubr.msk.f32.gmra.mrb[30].mxu1 %vm656_vm9, %v5980_v18  ;;  %v6567_v18 = vld [vmem:[%s7717_s27 + $0xb8] sm:$0xff] }
 0x4ba   : > { %7062 = vmatmul.mubr.msk.f32.gmra.mrb[30].mxu0 %vm656_vm9, %v4500_v5 }
 0x51c   : > { %v7126_v43 = vpop.f32.mrb[16].mxu1 }
 0x51d   : > { %v7042_v9 = vpop.f32.mrb[16].mxu0  ;;  %v7268_v39 = vadd.f32 %v7126_v43, %v10533_v61  ;;  %v6100_v49 = vpop.f32.mrb[17].mxu1  ;;  %v4725_v43 = vld [vmem:[%s7717_s27 + $0x38] sm:$0xff] }
 0x51e   : > { %v7252_v38 = vadd.f32 %v7042_v9, %v10533_v61  ;;  %v4621_v33 = vpop.f32.mrb[17].mxu0  ;;  %v7269_v30 = vadd.f32 %v10533_v61, %v6100_v49 }
 0x51f   : > { %v6214_v53 = vadd.f32 %v7268_v39, %v6561_v45  ;;  %v7253_v2 = vadd.f32 %v10533_v61, %v4621_v33 }
 0x520   : > { %v4735_v12 = vadd.f32 %v7252_v38, %v4719_v46  ;;  %v6213_v60 = vadd.f32 %v7269_v30, %v6560_v10  ;;  %v6566_v46 = vld [vmem:[%s7717_s27 + $0xb0] sm:$0xff] }
 0x521   : > { %v6230_v14 = vmax.f32 %v6214_v53, 0.0  ;;  %v4734_v13 = vadd.f32 %v7253_v2, %v4718_v4  ;;  %v4724_v10 = vld [vmem:[%s7717_s27 + $0x30] sm:$0xff] }
 0x522   : > { %v4751_v40 = vmax.f32 %v4735_v12, 0.0  ;;  %v6229_v25 = vmax.f32 %v6213_v60, 0.0 }
 0x523   : > { %6577 = vst.msk [vmem:[%s10548_s25 + $0x88] sm:$0xff] %vm225_vm0, %v6230_v14  ;;  %v4750_v23 = vmax.f32 %v4734_v13, 0.0 }
 0x524   : > { %4768 = vst.msk [vmem:[%s10548_s25 + $0x8] sm:$0xff] %vm225_vm0, %v4751_v40  ;;  %6576 = vst.msk [vmem:[%s10548_s25 + $0x80] sm:$0xff] %vm225_vm0, %v6229_v25  ;;  %v6569_v25 = vld [vmem:[%s7717_s27 + $0xc8] sm:$0xff] }
 0x525   : > { %4767 = vst.msk [vmem:[%s10548_s25] sm:$0xff] %vm225_vm0, %v4750_v23 }
 0x52c   : > { %v7129_v42 = vpop.f32.mrb[18].mxu1 }
 0x52d   : > { %v7045_v37 = vpop.f32.mrb[18].mxu0  ;;  %v7270_v54 = vadd.f32 %v7129_v42, %v10533_v61  ;;  %v6110_v3 = vpop.f32.mrb[19].mxu1  ;;  %v4727_v42 = vld [vmem:[%s7717_s27 + $0x48] sm:$0xff] }
 0x52e   : > { %v7254_v48 = vadd.f32 %v7045_v37, %v10533_v61  ;;  %v4631_v19 = vpop.f32.mrb[19].mxu0  ;;  %v7271_v1 = vadd.f32 %v10533_v61, %v6110_v3 }
 0x52f   : > { %v6216_v41 = vadd.f32 %v7270_v54, %v6563_v27  ;;  %v7255_v50 = vadd.f32 %v10533_v61, %v4631_v19 }
 0x530   : > { %v4737_v58 = vadd.f32 %v7254_v48, %v4721_v15  ;;  %v6215_v24 = vadd.f32 %v7271_v1, %v6562_v55  ;;  %v6568_v15 = vld [vmem:[%s7717_s27 + $0xc0] sm:$0xff] }
 0x531   : > { %v6232_v52 = vmax.f32 %v6216_v41, 0.0  ;;  %v4736_v59 = vadd.f32 %v7255_v50, %v4720_v44  ;;  %v4726_v55 = vld [vmem:[%s7717_s27 + $0x40] sm:$0xff] }
 0x532   : > { %v4753_v20 = vmax.f32 %v4737_v58, 0.0  ;;  %v6231_v0 = vmax.f32 %v6215_v24, 0.0 }
 0x533   : > { %6579 = vst.msk [vmem:[%s10548_s25 + $0x98] sm:$0xff] %vm225_vm0, %v6232_v52  ;;  %v4752_v63 = vmax.f32 %v4736_v59, 0.0 }
 0x534   : > { %4770 = vst.msk [vmem:[%s10548_s25 + $0x18] sm:$0xff] %vm225_vm0, %v4753_v20  ;;  %6578 = vst.msk [vmem:[%s10548_s25 + $0x90] sm:$0xff] %vm225_vm0, %v6231_v0  ;;  %v6571_v0 = vld [vmem:[%s7717_s27 + $0xd8] sm:$0xff] }
 0x535   : > { %4769 = vst.msk [vmem:[%s10548_s25 + $0x10] sm:$0xff] %vm225_vm0, %v4752_v63 }
 0x53c   : > { %v7132_v62 = vpop.f32.mrb[20].mxu1 }
 0x53d   : > { %v7048_v31 = vpop.f32.mrb[20].mxu0  ;;  %v7272_v57 = vadd.f32 %v7132_v62, %v10533_v61  ;;  %v6120_v11 = vpop.f32.mrb[21].mxu1  ;;  %v4729_v62 = vld [vmem:[%s7717_s27 + $0x58] sm:$0xff] }
 0x53e   : > { %v7256_v28 = vadd.f32 %v7048_v31, %v10533_v61  ;;  %v4641_v6 = vpop.f32.mrb[21].mxu0  ;;  %v7273_v56 = vadd.f32 %v10533_v61, %v6120_v11 }
 0x53f   : > { %v6218_v21 = vadd.f32 %v7272_v57, %v6565_v35  ;;  %v7257_v29 = vadd.f32 %v10533_v61, %v4641_v6 }
 0x540   : > { %v4739_v22 = vadd.f32 %v7256_v28, %v4723_v51  ;;  %v6217_v36 = vadd.f32 %v7273_v56, %v6564_v34  ;;  %v6570_v51 = vld [vmem:[%s7717_s27 + $0xd0] sm:$0xff] }
 0x541   : > { %v6234_v26 = vmax.f32 %v6218_v21, 0.0  ;;  %v4738_v7 = vadd.f32 %v7257_v29, %v4722_v8  ;;  %v4728_v34 = vld [vmem:[%s7717_s27 + $0x50] sm:$0xff] }
 0x542   : > { %v4755_v47 = vmax.f32 %v4739_v22, 0.0  ;;  %v6233_v32 = vmax.f32 %v6217_v36, 0.0 }
 0x543   : > { %6581 = vst.msk [vmem:[%s10548_s25 + $0xa8] sm:$0xff] %vm225_vm0, %v6234_v26  ;;  %v4754_v16 = vmax.f32 %v4738_v7, 0.0 }
 0x544   : > { %4772 = vst.msk [vmem:[%s10548_s25 + $0x28] sm:$0xff] %vm225_vm0, %v4755_v47  ;;  %6580 = vst.msk [vmem:[%s10548_s25 + $0xa0] sm:$0xff] %vm225_vm0, %v6233_v32  ;;  %v6573_v32 = vld [vmem:[%s7717_s27 + $0xe8] sm:$0xff] }
 0x545   : > { %4771 = vst.msk [vmem:[%s10548_s25 + $0x20] sm:$0xff] %vm225_vm0, %v4754_v16 }
 0x54c   : > { %v7135_v17 = vpop.f32.mrb[22].mxu1 }
 0x54d   : > { %v7051_v5 = vpop.f32.mrb[22].mxu0  ;;  %v7274_v45 = vadd.f32 %v7135_v17, %v10533_v61  ;;  %v6130_v9 = vpop.f32.mrb[23].mxu1  ;;  %v4731_v17 = vld [vmem:[%s7717_s27 + $0x68] sm:$0xff] }
 0x54e   : > { %v7258_v39 = vadd.f32 %v7051_v5, %v10533_v61  ;;  %v4651_v49 = vpop.f32.mrb[23].mxu0  ;;  %v7275_v38 = vadd.f32 %v10533_v61, %v6130_v9 }
 0x54f   : > { %v6220_v33 = vadd.f32 %v7274_v45, %v6567_v18  ;;  %v7259_v4 = vadd.f32 %v10533_v61, %v4651_v49 }
 0x550   : > { %v4741_v30 = vadd.f32 %v7258_v39, %v4725_v43  ;;  %v6219_v53 = vadd.f32 %v7275_v38, %v6566_v46  ;;  %v6572_v43 = vld [vmem:[%s7717_s27 + $0xe0] sm:$0xff] }
 0x551   : > { %v6236_v2 = vmax.f32 %v6220_v33, 0.0  ;;  %v4740_v12 = vadd.f32 %v7259_v4, %v4724_v10  ;;  %v4730_v46 = vld [vmem:[%s7717_s27 + $0x60] sm:$0xff] }
 0x552   : > { %v4757_v60 = vmax.f32 %v4741_v30, 0.0  ;;  %v6235_v14 = vmax.f32 %v6219_v53, 0.0 }
 0x553   : > { %6583 = vst.msk [vmem:[%s10548_s25 + $0xb8] sm:$0xff] %vm225_vm0, %v6236_v2  ;;  %v4756_v13 = vmax.f32 %v4740_v12, 0.0 }
 0x554   : > { %4774 = vst.msk [vmem:[%s10548_s25 + $0x38] sm:$0xff] %vm225_vm0, %v4757_v60  ;;  %6582 = vst.msk [vmem:[%s10548_s25 + $0xb0] sm:$0xff] %vm225_vm0, %v6235_v14  ;;  %v6575_v14 = vld [vmem:[%s7717_s27 + $0xf8] sm:$0xff] }
 0x555   : > { %4773 = vst.msk [vmem:[%s10548_s25 + $0x30] sm:$0xff] %vm225_vm0, %v4756_v13 }
 0x55c   : > { %v7138_v40 = vpop.f32.mrb[24].mxu1 }
 0x55d   : > { %v7054_v23 = vpop.f32.mrb[24].mxu0  ;;  %v7276_v27 = vadd.f32 %v7138_v40, %v10533_v61  ;;  %v6140_v37 = vpop.f32.mrb[25].mxu1  ;;  %v4733_v40 = vld [vmem:[%s7717_s27 + $0x78] sm:$0xff] }
 0x55e   : > { %v7260_v54 = vadd.f32 %v7054_v23, %v10533_v61  ;;  %v4661_v3 = vpop.f32.mrb[25].mxu0  ;;  %v7277_v48 = vadd.f32 %v10533_v61, %v6140_v37 }
 0x55f   : > { %v6222_v19 = vadd.f32 %v7276_v27, %v6569_v25  ;;  %v7261_v44 = vadd.f32 %v10533_v61, %v4661_v3 }
 0x560   : > { %v4743_v1 = vadd.f32 %v7260_v54, %v4727_v42  ;;  %v6221_v41 = vadd.f32 %v7277_v48, %v6568_v15  ;;  %v6574_v42 = vld [vmem:[%s7717_s27 + $0xf0] sm:$0xff] }
 0x561   : > { %v6238_v50 = vmax.f32 %v6222_v19, 0.0  ;;  %v4742_v58 = vadd.f32 %v7261_v44, %v4726_v55  ;;  %v4732_v15 = vld [vmem:[%s7717_s27 + $0x70] sm:$0xff] }
 0x562   : > { %v4759_v24 = vmax.f32 %v4743_v1, 0.0  ;;  %v6237_v52 = vmax.f32 %v6221_v41, 0.0 }
 0x563   : > { %6585 = vst.msk [vmem:[%s10548_s25 + $0xc8] sm:$0xff] %vm225_vm0, %v6238_v50  ;;  %v4758_v59 = vmax.f32 %v4742_v58, 0.0 }
 0x564   : > { %4776 = vst.msk [vmem:[%s10548_s25 + $0x48] sm:$0xff] %vm225_vm0, %v4759_v24  ;;  %6584 = vst.msk [vmem:[%s10548_s25 + $0xc0] sm:$0xff] %vm225_vm0, %v6237_v52 }
 0x565   : > { %4775 = vst.msk [vmem:[%s10548_s25 + $0x40] sm:$0xff] %vm225_vm0, %v4758_v59 }
 0x56c   : > { %v7141_v20 = vpop.f32.mrb[26].mxu1 }
 0x56d   : > { %v7057_v63 = vpop.f32.mrb[26].mxu0  ;;  %v7278_v35 = vadd.f32 %v7141_v20, %v10533_v61  ;;  %v6150_v31 = vpop.f32.mrb[27].mxu1 }
 0x56e   : > { %v7262_v57 = vadd.f32 %v7057_v63, %v10533_v61  ;;  %v4671_v11 = vpop.f32.mrb[27].mxu0  ;;  %v7279_v28 = vadd.f32 %v10533_v61, %v6150_v31 }
 0x56f   : > { %v6224_v6 = vadd.f32 %v7278_v35, %v6571_v0  ;;  %v7263_v8 = vadd.f32 %v10533_v61, %v4671_v11 }
 0x570   : > { %v4745_v56 = vadd.f32 %v7262_v57, %v4729_v62  ;;  %v6223_v21 = vadd.f32 %v7279_v28, %v6570_v51 }
 0x571   : > { %v6240_v29 = vmax.f32 %v6224_v6, 0.0  ;;  %v4744_v22 = vadd.f32 %v7263_v8, %v4728_v34 }
 0x572   : > { %v4761_v36 = vmax.f32 %v4745_v56, 0.0  ;;  %v6239_v26 = vmax.f32 %v6223_v21, 0.0 }
 0x573   : > { %6587 = vst.msk [vmem:[%s10548_s25 + $0xd8] sm:$0xff] %vm225_vm0, %v6240_v29  ;;  %v4760_v7 = vmax.f32 %v4744_v22, 0.0 }
 0x574   : > { %4778 = vst.msk [vmem:[%s10548_s25 + $0x58] sm:$0xff] %vm225_vm0, %v4761_v36  ;;  %6586 = vst.msk [vmem:[%s10548_s25 + $0xd0] sm:$0xff] %vm225_vm0, %v6239_v26 }
 0x575   : > { %4777 = vst.msk [vmem:[%s10548_s25 + $0x50] sm:$0xff] %vm225_vm0, %v4760_v7 }
 0x57c   : > { %v7144_v47 = vpop.f32.mrb[28].mxu1 }
 0x57d   : > { %v7060_v16 = vpop.f32.mrb[28].mxu0  ;;  %v7280_v18 = vadd.f32 %v7144_v47, %v10533_v61  ;;  %v6160_v5 = vpop.f32.mrb[29].mxu1 }
 0x57e   : > { %v7264_v45 = vadd.f32 %v7060_v16, %v10533_v61  ;;  %v4681_v9 = vpop.f32.mrb[29].mxu0  ;;  %v7281_v39 = vadd.f32 %v10533_v61, %v6160_v5 }
 0x57f   : > { %v6226_v49 = vadd.f32 %v7280_v18, %v6573_v32  ;;  %v7265_v10 = vadd.f32 %v10533_v61, %v4681_v9 }
 0x580   : > { %v4747_v38 = vadd.f32 %v7264_v45, %v4731_v17  ;;  %v6225_v33 = vadd.f32 %v7281_v39, %v6572_v43 }
 0x581   : > { %v6242_v4 = vmax.f32 %v6226_v49, 0.0  ;;  %v4746_v30 = vadd.f32 %v7265_v10, %v4730_v46 }
 0x582   : > { %v4763_v53 = vmax.f32 %v4747_v38, 0.0  ;;  %v6241_v2 = vmax.f32 %v6225_v33, 0.0 }
 0x583   : > { %6589 = vst.msk [vmem:[%s10548_s25 + $0xe8] sm:$0xff] %vm225_vm0, %v6242_v4  ;;  %v4762_v12 = vmax.f32 %v4746_v30, 0.0 }
 0x584   : > { %4780 = vst.msk [vmem:[%s10548_s25 + $0x68] sm:$0xff] %vm225_vm0, %v4763_v53  ;;  %6588 = vst.msk [vmem:[%s10548_s25 + $0xe0] sm:$0xff] %vm225_vm0, %v6241_v2 }
 0x585   : > { %4779 = vst.msk [vmem:[%s10548_s25 + $0x60] sm:$0xff] %vm225_vm0, %v4762_v12 }
 0x58c   : > { %v7147_v60 = vpop.f32.mrb[30].mxu1 }
 0x58d   : > { %v7063_v13 = vpop.f32.mrb[30].mxu0  ;;  %v7282_v25 = vadd.f32 %v7147_v60, %v10533_v61  ;;  %v6170_v23 = vpop.f32.mrb[31].mxu1 }
 0x58e   : > { %v7266_v27 = vadd.f32 %v7063_v13, %v10533_v61  ;;  %v4691_v37 = vpop.f32.mrb[31].mxu0  ;;  %v7283_v54 = vadd.f32 %v10533_v61, %v6170_v23 }
 0x58f   : > { %v6228_v3 = vadd.f32 %v7282_v25, %v6575_v14  ;;  %v7267_v55 = vadd.f32 %v10533_v61, %v4691_v37 }
 0x590   : > { %v4749_v48 = vadd.f32 %v7266_v27, %v4733_v40  ;;  %v6227_v19 = vadd.f32 %v7283_v54, %v6574_v42 }
 0x591   : > { %v6244_v44 = vmax.f32 %v6228_v3, 0.0  ;;  %v4748_v1 = vadd.f32 %v7267_v55, %v4732_v15 }
 0x592   : > { %v4765_v41 = vmax.f32 %v4749_v48, 0.0  ;;  %v6243_v50 = vmax.f32 %v6227_v19, 0.0 }
 0x593   : > { %6591 = vst.msk [vmem:[%s10548_s25 + $0xf8] sm:$0xff] %vm225_vm0, %v6244_v44  ;;  %v4764_v58 = vmax.f32 %v4748_v1, 0.0 }
 0x594   : > { %4782 = vst.msk [vmem:[%s10548_s25 + $0x78] sm:$0xff] %vm225_vm0, %v4765_v41  ;;  %6590 = vst.msk [vmem:[%s10548_s25 + $0xf0] sm:$0xff] %vm225_vm0, %v6243_v50 }
 0x595   : > { %4781 = vst.msk [vmem:[%s10548_s25 + $0x70] sm:$0xff] %vm225_vm0, %v4764_v58 }
 0x596 PF: > { %s15_s18 = sadd.s32 1, %s7488_s18  }
 0x597   : > { %p12_p4 = scmp.ge.s32.totalorder %s15_s18, 4  }
 0x599   :  { %14 = sbr.rel (!%p12_p4) target bundleno = 1 (0x1), region = 93 }

</bundles_post_ra>
